<compile_context>
chip_gen: v7x
topology: tpu7x:2x2x1
jax: 0.10.0
libtpu: 0.0.40
codegen_flags: <defaults>
</compile_context>

<pallas_src>
import functools

import jax
import jax.numpy as jnp
from jax import lax
from jax.experimental import pallas as pl
from jax.experimental.pallas import tpu as pltpu

EXPANSION = 4
_LP = 16  # left pad of the conv2 staging planes; multiple of the bf16 sublane tile.


def _bottleneck_kernel(*refs, H, W, Ho, Wo, Cmid, stride, has_projection,
                       fused_proj):
    it = iter(refs)
    x_ref = next(it)                        # (H*W, Cin)            bf16
    w1_ref = next(it)                       # (Cin, Cmid[+Cout])    bf16
    w2f_ref = next(it)                      # (3, 3*Cmid, Cmid)     bf16
    w3_ref = next(it)                       # (Cmid, Cout)          bf16
    s1_ref = next(it); b1_ref = next(it)    # (1, Cmid)             f32
    s2_ref = next(it); b2_ref = next(it)    # (1, Cmid)             f32
    s3_ref = next(it); b3_ref = next(it)    # (1, Cout)             f32
    ws_ref = ss_ref = bs_ref = xs_ref = None
    if has_projection:
        if not fused_proj:                  # stride > 1 projection
            ws_ref = next(it)               # (Cin, Cout)           bf16
        ss_ref = next(it); bs_ref = next(it)   # (1, Cout)          f32
        if stride > 1:
            xs_ref = next(it)               # (Ho*Wo, Cin)          bf16
    o_ref = next(it)                        # (Ho*Wo, Cout)
    acc_ref = next(it)                      # (Ho*Wo, Cmid)         f32
    if stride == 1:
        pad_ref = next(it)                  # (H+2, LP+W+1, Cmid)   bf16
    else:
        even_ref = next(it)                 # (H+1, LP+W//2, Cmid)  bf16
        odd_ref = next(it)                  # (H+1, W//2, Cmid)     bf16

    bf16 = jnp.bfloat16
    K3 = 3 * Cmid
    LP = _LP
    first_step = pl.program_id(0) == 0

    x2d = x_ref[...]                                        # (H*W, Cin) bf16

    # ---- conv1 (1x1) [+ fused stride-1 projection] + BN1 + ReLU -------------
    h1all = jnp.dot(x2d, w1_ref[...], preferred_element_type=jnp.float32)
    if fused_proj:
        sc = h1all[:, Cmid:] * ss_ref[...] + bs_ref[...]    # shortcut, f32
        h1 = h1all[:, :Cmid]
    else:
        h1 = h1all
    h1 = jnp.maximum(h1 * s1_ref[...] + b1_ref[...], 0.0)   # (H*W, Cmid) f32
    h1 = h1.reshape(H, W, Cmid)

    # ---- conv2 (3x3, stride, padding=1), wide-K (3*Cmid) matmul per tap row --
    s2 = s2_ref[...]
    b2 = b2_ref[...]
    if stride == 1:
        @pl.when(first_step)
        def _zero_halo():
            wp = pad_ref.shape[1]
            pad_ref[0:1, :, :] = jnp.zeros((1, wp, Cmid), bf16)
            pad_ref[H + 1:H + 2, :, :] = jnp.zeros((1, wp, Cmid), bf16)
            pad_ref[:, LP - 1:LP, :] = jnp.zeros((H + 2, 1, Cmid), bf16)
            pad_ref[:, LP + W:LP + W + 1, :] = jnp.zeros((H + 2, 1, Cmid), bf16)

        # Sublane-aligned interior store (column LP is a multiple of 16).
        pad_ref[1:H + 1, LP:LP + W, :] = h1.astype(bf16)

        for di in range(3):
            taps = [pad_ref[pl.ds(di, Ho), pl.ds(LP - 1 + dj, Wo), :]
                    for dj in range(3)]
            slab = jnp.concatenate(taps, axis=-1).reshape(Ho * Wo, K3)
            prod = jnp.dot(slab, w2f_ref[di], preferred_element_type=jnp.float32)
            if di == 0:
                acc_ref[...] = prod
            elif di == 1:
                acc_ref[...] += prod
            else:  # fuse BN2 + ReLU into the last tap (no extra acc round trip)
                h2 = jnp.maximum((acc_ref[...] + prod) * s2 + b2, 0.0)
    else:  # stride == 2: even/odd column-parity planes, no full padded buffer
        Wh = W // 2

        @pl.when(first_step)
        def _zero_halo():
            even_ref[0:1, :, :] = jnp.zeros((1, LP + Wh, Cmid), bf16)
            odd_ref[0:1, :, :] = jnp.zeros((1, Wh, Cmid), bf16)
            even_ref[:, LP - 1:LP, :] = jnp.zeros((H + 1, 1, Cmid), bf16)

        # x columns were pre-reordered to [even | odd] in the wrapper, so both
        # parity planes are filled with contiguous (aligned) stores:
        #   h1[:, :W/2] = original even columns -> padded ODD  columns 1..W-1
        #   h1[:, W/2:] = original odd  columns -> padded EVEN columns 2..W
        odd_ref[1:H + 1, 0:Wh, :] = h1[:, 0:Wh, :].astype(bf16)
        even_ref[1:H + 1, LP:LP + Wh, :] = h1[:, Wh:W, :].astype(bf16)

        for di in range(3):
            rows = pl.ds(di, Ho, 2)                        # padded rows di, di+2, ...
            t0 = even_ref[rows, pl.ds(LP - 1, Wo), :]      # tap dj=0 (pad col 2j)
            t1 = odd_ref[rows, pl.ds(0, Wo), :]            # tap dj=1 (pad col 2j+1)
            t2 = even_ref[rows, pl.ds(LP, Wo), :]          # tap dj=2 (pad col 2j+2)
            slab = jnp.concatenate([t0, t1, t2], axis=-1).reshape(Ho * Wo, K3)
            prod = jnp.dot(slab, w2f_ref[di], preferred_element_type=jnp.float32)
            if di == 0:
                acc_ref[...] = prod
            elif di == 1:
                acc_ref[...] += prod
            else:
                h2 = jnp.maximum((acc_ref[...] + prod) * s2 + b2, 0.0)

    # ---- conv3 (1x1) + BN3 ---------------------------------------------------
    h3 = jnp.dot(h2.astype(bf16), w3_ref[...],
                 preferred_element_type=jnp.float32)
    h3 = h3 * s3_ref[...] + b3_ref[...]

    # ---- shortcut + final ReLU -------------------------------------------------
    if has_projection:
        if not fused_proj:   # strided projection on the pre-subsampled input
            sc = jnp.dot(xs_ref[...], ws_ref[...],
                         preferred_element_type=jnp.float32)
            sc = sc * ss_ref[...] + bs_ref[...]
        # fused_proj: sc already computed from the fused conv1 matmul.
    else:
        # Identity shortcut (Cin == Cout, stride == 1).  Uses the bf16-rounded
        # x (small extra residual error vs. an f32 reference); documented.
        sc = x2d.astype(jnp.float32)

    o_ref[...] = jnp.maximum(h3 + sc, 0.0).astype(o_ref.dtype)


def _fold_bn(bn, eps):
    gamma, beta, mean, var = bn
    scale = gamma / jnp.sqrt(var + eps)
    bias = beta - mean * scale
    return (scale.reshape(1, -1).astype(jnp.float32),
            bias.reshape(1, -1).astype(jnp.float32))


def bottleneck_with_in_pallas(x, params, *, stride=1, task_idx=0, eps=1e-5,
                              out_dtype=None):
    """x: (N, H, W, Cin) NHWC float32. Returns (N, Ho, Wo, Cout)."""
    N, H, W, Cin = x.shape
    Cmid = params['w1'].shape[1]
    Cout = params['w3'].shape[1]
    assert stride in (1, 2), "only stride 1 or 2 supported"
    if stride == 2:
        assert H % 2 == 0 and W % 2 == 0, "stride-2 path assumes even H, W"
    Ho = (H - 1) // stride + 1
    Wo = (W - 1) // stride + 1
    has_projection = (stride != 1) or (Cin != Cout)
    fused_proj = has_projection and stride == 1
    # Pass out_dtype=jnp.bfloat16 when the consumer is bf16 (kernel is HBM-bound);
    # default keeps the input dtype so the demo compares against an f32 reference.
    out_dtype = x.dtype if out_dtype is None else out_dtype
    bf16 = jnp.bfloat16

    s1, b1 = _fold_bn(params['bns1'][task_idx], eps)
    s2, b2 = _fold_bn(params['bns2'][task_idx], eps)
    s3, b3 = _fold_bn(params['bns3'][task_idx], eps)

    if stride == 1:
        x_sp = x
    else:
        # De-interleave columns once on the XLA side ([even cols | odd cols]) so
        # the kernel's conv2 staging needs only contiguous stores/loads.
        x_sp = jnp.concatenate([x[:, :, 0::2, :], x[:, :, 1::2, :]], axis=2)
    x2d = x_sp.reshape(N, H * W, Cin).astype(bf16)

    w1 = params['w1'].astype(bf16)
    w2f = params['w2'].reshape(3, 3 * Cmid, Cmid).astype(bf16)  # (di, dj*Cmid+ci, co)
    w3 = params['w3'].astype(bf16)

    ws = ss = bs = x_s = None
    if has_projection:
        # The PyTorch module hard-codes 2 BN sets for the projection shortcut.
        assert task_idx < len(params['bnss']), \
            "task_idx out of range for the projection-shortcut BN sets"
        ss, bs = _fold_bn(params['bnss'][task_idx], eps)
        ws = params['ws'].astype(bf16)
        if fused_proj:
            w1 = jnp.concatenate([w1, ws], axis=1)          # (Cin, Cmid + Cout)
        else:
            # Strided subsample done once by XLA; kernel sees a dense slab.
            x_s = x[:, ::stride, ::stride, :].reshape(N, Ho * Wo, Cin).astype(bf16)
    C1 = w1.shape[1]

    inputs = [x2d, w1, w2f, w3, s1, b1, s2, b2, s3, b3]
    in_specs = [
        pl.BlockSpec((None, H * W, Cin), lambda n: (n, 0, 0)),
        pl.BlockSpec((Cin, C1), lambda n: (0, 0)),
        pl.BlockSpec((3, 3 * Cmid, Cmid), lambda n: (0, 0, 0)),
        pl.BlockSpec((Cmid, Cout), lambda n: (0, 0)),
        pl.BlockSpec((1, Cmid), lambda n: (0, 0)),
        pl.BlockSpec((1, Cmid), lambda n: (0, 0)),
        pl.BlockSpec((1, Cmid), lambda n: (0, 0)),
        pl.BlockSpec((1, Cmid), lambda n: (0, 0)),
        pl.BlockSpec((1, Cout), lambda n: (0, 0)),
        pl.BlockSpec((1, Cout), lambda n: (0, 0)),
    ]
    if has_projection:
        if not fused_proj:
            inputs.append(ws)
            in_specs.append(pl.BlockSpec((Cin, Cout), lambda n: (0, 0)))
        inputs += [ss, bs]
        in_specs += [pl.BlockSpec((1, Cout), lambda n: (0, 0)),
                     pl.BlockSpec((1, Cout), lambda n: (0, 0))]
        if stride > 1:
            inputs.append(x_s)
            in_specs.append(pl.BlockSpec((None, Ho * Wo, Cin), lambda n: (n, 0, 0)))

    scratch = [pltpu.VMEM((Ho * Wo, Cmid), jnp.float32)]          # conv2 accumulator
    if stride == 1:
        scratch.append(pltpu.VMEM((H + 2, _LP + W + 1, Cmid), bf16))   # padded h1
    else:
        Wh = W // 2
        scratch += [pltpu.VMEM((H + 1, _LP + Wh, Cmid), bf16),    # even pad columns
                    pltpu.VMEM((H + 1, Wh, Cmid), bf16)]          # odd  pad columns

    # Per-step VMEM footprint estimate -> scoped VMEM limit (v7x only has 64 MiB).
    blk = H * W * Cin * 2
    blk += Cin * C1 * 2 + 3 * 3 * Cmid * Cmid * 2 + Cmid * Cout * 2
    blk += 4 * 4 * Cmid + 2 * 4 * Cout
    if has_projection:
        blk += 2 * 4 * Cout
        if not fused_proj:
            blk += Cin * Cout * 2
        if stride > 1:
            blk += Ho * Wo * Cin * 2
    blk += Ho * Wo * Cout * jnp.dtype(out_dtype).itemsize
    scratch_bytes = Ho * Wo * Cmid * 4
    if stride == 1:
        scratch_bytes += (H + 2) * (_LP + W + 1) * Cmid * 2
    else:
        scratch_bytes += ((H + 1) * (_LP + W // 2) * Cmid * 2
                          + (H + 1) * (W // 2) * Cmid * 2)
    vmem_est = 2 * blk + scratch_bytes                     # double-buffered blocks
    vmem_limit = int(min(max(2 * vmem_est, 16 << 20), 48 << 20))

    kernel = functools.partial(
        _bottleneck_kernel, H=H, W=W, Ho=Ho, Wo=Wo, Cmid=Cmid,
        stride=stride, has_projection=has_projection, fused_proj=fused_proj)

    out = pl.pallas_call(
        kernel,
        out_shape=jax.ShapeDtypeStruct((N, Ho * Wo, Cout), out_dtype),
        grid_spec=pltpu.PrefetchScalarGridSpec(
            num_scalar_prefetch=0,
            grid=(N,),
            in_specs=in_specs,
            out_specs=pl.BlockSpec((None, Ho * Wo, Cout), lambda n: (n, 0, 0)),
            scratch_shapes=scratch),
        compiler_params=pltpu.CompilerParams(
            # "arbitrary" (sequential) so the one-shot halo zeroing at program 0
            # is valid on multi-TensorCore parts (scratch is per-core).
            # TODO(synk): switch to "parallel" + per-core-safe halo init together
            # with the v7x row-tiling grid axis.
            dimension_semantics=("arbitrary",),
            vmem_limit_bytes=vmem_limit),
    )(*inputs)
    return out.reshape(N, Ho, Wo, Cout)


# --------------------------- parameter init ------------------------------
def init_params(key, in_channels, out_channels, *, task_num=2, stride=1):
    Cmid = out_channels
    Cout = out_channels * EXPANSION
    keys = jax.random.split(key, 8)
    p = {}
    p['w1'] = 0.1 * jax.random.normal(keys[0], (in_channels, Cmid), jnp.float32)
    p['w2'] = 0.1 * jax.random.normal(keys[1], (3, 3, Cmid, Cmid), jnp.float32)
    p['w3'] = 0.1 * jax.random.normal(keys[2], (Cmid, Cout), jnp.float32)

    def bn_params(k, C):
        k1, k2, k3, k4 = jax.random.split(k, 4)
        gamma = 1.0 + 0.1 * jax.random.normal(k1, (C,), jnp.float32)
        beta = 0.1 * jax.random.normal(k2, (C,), jnp.float32)
        mean = 0.1 * jax.random.normal(k3, (C,), jnp.float32)
        var = 0.5 + jax.random.uniform(k4, (C,), jnp.float32)
        return gamma, beta, mean, var

    p['bns1'] = [bn_params(k, Cmid) for k in jax.random.split(keys[3], task_num)]
    p['bns2'] = [bn_params(k, Cmid) for k in jax.random.split(keys[4], task_num)]
    p['bns3'] = [bn_params(k, Cout) for k in jax.random.split(keys[5], task_num)]
    if stride != 1 or in_channels != Cout:
        p['ws'] = 0.1 * jax.random.normal(keys[6], (in_channels, Cout), jnp.float32)
        # The PyTorch module hard-codes 2 BN sets for the projection shortcut.
        p['bnss'] = [bn_params(k, Cout) for k in jax.random.split(keys[7], 2)]
    return p


# --------------------------- pure-JAX reference ---------------------------
def bottleneck_reference(x, params, *, stride=1, task_idx=0, eps=1e-5):
    dn = ('NHWC', 'HWIO', 'NHWC')

    def bn(y, bnp):
        gamma, beta, mean, var = bnp
        scale = gamma / jnp.sqrt(var + eps)
        return y * scale + (beta - mean * scale)

    h = lax.conv_general_dilated(x, params['w1'][None, None], (1, 1), 'VALID',
                                 dimension_numbers=dn)
    h = jax.nn.relu(bn(h, params['bns1'][task_idx]))
    h = lax.conv_general_dilated(h, params['w2'], (stride, stride),
                                 ((1, 1), (1, 1)), dimension_numbers=dn)
    h = jax.nn.relu(bn(h, params['bns2'][task_idx]))
    h = lax.conv_general_dilated(h, params['w3'][None, None], (1, 1), 'VALID',
                                 dimension_numbers=dn)
    h = bn(h, params['bns3'][task_idx])
    if 'ws' in params:
        sc = lax.conv_general_dilated(x, params['ws'][None, None],
                                      (stride, stride), 'VALID',
                                      dimension_numbers=dn)
        sc = bn(sc, params['bnss'][task_idx])
    else:
        sc = x
    return jax.nn.relu(h + sc)


if __name__ == "__main__":
    key = jax.random.PRNGKey(0)
    N, H, W = 2, 16, 16
    task_num, task_idx = 2, 0

    # (in_channels, out_channels, stride): identity shortcut / fused stride-1
    # projection / strided projection — covers all three kernel paths.
    cases = [(32, 8, 1), (16, 8, 1), (16, 8, 2)]
    for in_channels, out_channels, stride in cases:
        key, kx, kp = jax.random.split(key, 3)
        x = jax.random.normal(kx, (N, H, W, in_channels), jnp.float32)
        params = init_params(kp, in_channels, out_channels,
                             task_num=task_num, stride=stride)

        out = bottleneck_with_in_pallas(x, params, stride=stride,
                                        task_idx=task_idx)
        out = jax.block_until_ready(out)

        ref = bottleneck_reference(x, params, stride=stride, task_idx=task_idx)
        Ho = (H - 1) // stride + 1
        assert out.shape == (N, Ho, Ho, out_channels * EXPANSION), out.shape
        max_err = float(jnp.max(jnp.abs(out - ref)))
        # bf16 MXU operands (f32 accumulation) -> relaxed tolerance vs f32 ref.
        assert jnp.allclose(out, ref, atol=5e-2, rtol=5e-2), \
            (in_channels, out_channels, stride, max_err)

    print("KERNEL_OK")
</pallas_src>

<mosaic_0001>
module attributes {stable_mosaic.version = 11 : i64} {
  func.func @_bottleneck_kernel(%arg0: i32, %arg1: memref<1x256x32xbf16, #tpu.memory_space<vmem>>, %arg2: memref<32x8xbf16, #tpu.memory_space<vmem>>, %arg3: memref<3x24x8xbf16, #tpu.memory_space<vmem>>, %arg4: memref<8x32xbf16, #tpu.memory_space<vmem>>, %arg5: memref<1x8xf32, #tpu.memory_space<vmem>>, %arg6: memref<1x8xf32, #tpu.memory_space<vmem>>, %arg7: memref<1x8xf32, #tpu.memory_space<vmem>>, %arg8: memref<1x8xf32, #tpu.memory_space<vmem>>, %arg9: memref<1x32xf32, #tpu.memory_space<vmem>>, %arg10: memref<1x32xf32, #tpu.memory_space<vmem>>, %arg11: memref<1x256x32xf32, #tpu.memory_space<vmem>>, %arg12: memref<256x8xf32, #tpu.memory_space<vmem>>, %arg13: memref<18x33x8xbf16, #tpu.memory_space<vmem>>) attributes {dimension_semantics = [#tpu.dimension_semantics<arbitrary>], iteration_bounds = array<i64: 2>, scalar_prefetch = 0 : i64, scratch_operands = 2 : i64, tpu.core_type = #tpu.core_type<tc>, window_params = [{transform_indices = @transform_0, window_bounds = array<i64: 1, 256, 32>}, {pipeline_mode = #tpu.pipeline_mode<synchronous>, transform_indices = @transform_1, window_bounds = array<i64: 32, 8>}, {pipeline_mode = #tpu.pipeline_mode<synchronous>, transform_indices = @transform_2, window_bounds = array<i64: 3, 24, 8>}, {pipeline_mode = #tpu.pipeline_mode<synchronous>, transform_indices = @transform_3, window_bounds = array<i64: 8, 32>}, {pipeline_mode = #tpu.pipeline_mode<synchronous>, transform_indices = @transform_4, window_bounds = array<i64: 1, 8>}, {pipeline_mode = #tpu.pipeline_mode<synchronous>, transform_indices = @transform_5, window_bounds = array<i64: 1, 8>}, {pipeline_mode = #tpu.pipeline_mode<synchronous>, transform_indices = @transform_6, window_bounds = array<i64: 1, 8>}, {pipeline_mode = #tpu.pipeline_mode<synchronous>, transform_indices = @transform_7, window_bounds = array<i64: 1, 8>}, {pipeline_mode = #tpu.pipeline_mode<synchronous>, transform_indices = @transform_8, window_bounds = array<i64: 1, 32>}, {pipeline_mode = #tpu.pipeline_mode<synchronous>, transform_indices = @transform_9, window_bounds = array<i64: 1, 32>}, {transform_indices = @transform_10, window_bounds = array<i64: 1, 256, 32>}]} {
    %c0_i32 = arith.constant 0 : i32
    %0 = arith.cmpi eq, %arg0, %c0_i32 : i32
    %c0 = arith.constant 0 : index
    %c0_0 = arith.constant 0 : index
    %c0_1 = arith.constant 0 : index
    %1 = vector.load %arg1[%c0, %c0_0, %c0_1] : memref<1x256x32xbf16, #tpu.memory_space<vmem>>, vector<1x256x32xbf16>
    %2 = vector.shape_cast %1 : vector<1x256x32xbf16> to vector<256x32xbf16>
    %c0_2 = arith.constant 0 : index
    %c0_3 = arith.constant 0 : index
    %3 = vector.load %arg2[%c0_2, %c0_3] : memref<32x8xbf16, #tpu.memory_space<vmem>>, vector<32x8xbf16>
    %cst = arith.constant dense<0.000000e+00> : vector<256x8xf32>
    %4 = tpu.matmul %2, %3, %cst {dimension_numbers = #tpu.dot_dimension_numbers<[1], [0], [0], [1], [0, 0, 1, 1], [], []>} : vector<256x32xbf16>, vector<32x8xbf16>, vector<256x8xf32> -> vector<256x8xf32>
    %c0_4 = arith.constant 0 : index
    %c0_5 = arith.constant 0 : index
    %5 = vector.load %arg5[%c0_4, %c0_5] : memref<1x8xf32, #tpu.memory_space<vmem>>, vector<1x8xf32>
    %6 = vector.broadcast %5 : vector<1x8xf32> to vector<256x8xf32>
    %7 = arith.mulf %4, %6 : vector<256x8xf32>
    %c0_6 = arith.constant 0 : index
    %c0_7 = arith.constant 0 : index
    %8 = vector.load %arg6[%c0_6, %c0_7] : memref<1x8xf32, #tpu.memory_space<vmem>>, vector<1x8xf32>
    %9 = vector.broadcast %8 : vector<1x8xf32> to vector<256x8xf32>
    %10 = arith.addf %7, %9 : vector<256x8xf32>
    %cst_8 = arith.constant 0.000000e+00 : f32
    %11 = vector.broadcast %cst_8 : f32 to vector<256x8xf32>
    %12 = arith.maximumf %10, %11 : vector<256x8xf32>
    %13 = vector.shape_cast %12 : vector<256x8xf32> to vector<16x16x8xf32>
    %c0_9 = arith.constant 0 : index
    %c0_10 = arith.constant 0 : index
    %14 = vector.load %arg7[%c0_9, %c0_10] : memref<1x8xf32, #tpu.memory_space<vmem>>, vector<1x8xf32>
    %c0_11 = arith.constant 0 : index
    %c0_12 = arith.constant 0 : index
    %15 = vector.load %arg8[%c0_11, %c0_12] : memref<1x8xf32, #tpu.memory_space<vmem>>, vector<1x8xf32>
    %16 = arith.extui %0 : i1 to i32
    %c0_i32_13 = arith.constant 0 : i32
    %17 = arith.cmpi ne, %16, %c0_i32_13 : i32
    scf.if %17 {
      %cst_71 = arith.constant 0.000000e+00 : bf16
      %72 = vector.broadcast %cst_71 : bf16 to vector<1x33x8xbf16>
      %c0_72 = arith.constant 0 : index
      %c0_73 = arith.constant 0 : index
      %c0_74 = arith.constant 0 : index
      %73 = vector.load %arg13[%c0_72, %c0_73, %c0_74] : memref<18x33x8xbf16, #tpu.memory_space<vmem>>, vector<1x33x8xbf16>
      tpu.vector_store %arg13[%c0_72, %c0_73, %c0_74], %72 {strides = array<i32>} : memref<18x33x8xbf16, #tpu.memory_space<vmem>>, vector<1x33x8xbf16>,
      %cst_75 = arith.constant 0.000000e+00 : bf16
      %74 = vector.broadcast %cst_75 : bf16 to vector<1x33x8xbf16>
      %c17_76 = arith.constant 17 : index
      %c0_77 = arith.constant 0 : index
      %c0_78 = arith.constant 0 : index
      %75 = vector.load %arg13[%c17_76, %c0_77, %c0_78] : memref<18x33x8xbf16, #tpu.memory_space<vmem>>, vector<1x33x8xbf16>
      tpu.vector_store %arg13[%c17_76, %c0_77, %c0_78], %74 {strides = array<i32>} : memref<18x33x8xbf16, #tpu.memory_space<vmem>>, vector<1x33x8xbf16>,
      %cst_79 = arith.constant 0.000000e+00 : bf16
      %76 = vector.broadcast %cst_79 : bf16 to vector<18x1x8xbf16>
      %c0_80 = arith.constant 0 : index
      %c15_81 = arith.constant 15 : index
      %c0_82 = arith.constant 0 : index
      %77 = vector.load %arg13[%c0_80, %c15_81, %c0_82] : memref<18x33x8xbf16, #tpu.memory_space<vmem>>, vector<18x1x8xbf16>
      tpu.vector_store %arg13[%c0_80, %c15_81, %c0_82], %76 {strides = array<i32>} : memref<18x33x8xbf16, #tpu.memory_space<vmem>>, vector<18x1x8xbf16>,
      %cst_83 = arith.constant 0.000000e+00 : bf16
      %78 = vector.broadcast %cst_83 : bf16 to vector<18x1x8xbf16>
      %c0_84 = arith.constant 0 : index
      %c32 = arith.constant 32 : index
      %c0_85 = arith.constant 0 : index
      %79 = vector.load %arg13[%c0_84, %c32, %c0_85] : memref<18x33x8xbf16, #tpu.memory_space<vmem>>, vector<18x1x8xbf16>
      tpu.vector_store %arg13[%c0_84, %c32, %c0_85], %78 {strides = array<i32>} : memref<18x33x8xbf16, #tpu.memory_space<vmem>>, vector<18x1x8xbf16>,
    } else {
    }
    %18 = arith.truncf %13 : vector<16x16x8xf32> to vector<16x16x8xbf16>
    %c1 = arith.constant 1 : index
    %c16 = arith.constant 16 : index
    %c0_14 = arith.constant 0 : index
    %19 = vector.load %arg13[%c1, %c16, %c0_14] : memref<18x33x8xbf16, #tpu.memory_space<vmem>>, vector<16x16x8xbf16>
    tpu.vector_store %arg13[%c1, %c16, %c0_14], %18 {strides = array<i32>} : memref<18x33x8xbf16, #tpu.memory_space<vmem>>, vector<16x16x8xbf16>,
    %c0_15 = arith.constant 0 : index
    %c15 = arith.constant 15 : index
    %c0_16 = arith.constant 0 : index
    %20 = vector.load %arg13[%c0_15, %c15, %c0_16] : memref<18x33x8xbf16, #tpu.memory_space<vmem>>, vector<16x16x8xbf16>
    %c0_17 = arith.constant 0 : index
    %c16_18 = arith.constant 16 : index
    %c0_19 = arith.constant 0 : index
    %21 = vector.load %arg13[%c0_17, %c16_18, %c0_19] : memref<18x33x8xbf16, #tpu.memory_space<vmem>>, vector<16x16x8xbf16>
    %c0_20 = arith.constant 0 : index
    %c17 = arith.constant 17 : index
    %c0_21 = arith.constant 0 : index
    %22 = vector.load %arg13[%c0_20, %c17, %c0_21] : memref<18x33x8xbf16, #tpu.memory_space<vmem>>, vector<16x16x8xbf16>
    %23 = tpu.concatenate %20, %21, %22 in 2 : vector<16x16x8xbf16>, vector<16x16x8xbf16>, vector<16x16x8xbf16> -> vector<16x16x24xbf16>
    %24 = vector.shape_cast %23 : vector<16x16x24xbf16> to vector<256x24xbf16>
    %c0_22 = arith.constant 0 : index
    %c0_23 = arith.constant 0 : index
    %c0_24 = arith.constant 0 : index
    %25 = vector.load %arg3[%c0_22, %c0_23, %c0_24] : memref<3x24x8xbf16, #tpu.memory_space<vmem>>, vector<1x24x8xbf16>
    %26 = vector.shape_cast %25 : vector<1x24x8xbf16> to vector<24x8xbf16>
    %cst_25 = arith.constant dense<0.000000e+00> : vector<256x8xf32>
    %27 = tpu.matmul %24, %26, %cst_25 {dimension_numbers = #tpu.dot_dimension_numbers<[1], [0], [0], [1], [0, 0, 1, 1], [], []>} : vector<256x24xbf16>, vector<24x8xbf16>, vector<256x8xf32> -> vector<256x8xf32>
    %c0_26 = arith.constant 0 : index
    %c0_27 = arith.constant 0 : index
    %28 = vector.load %arg12[%c0_26, %c0_27] : memref<256x8xf32, #tpu.memory_space<vmem>>, vector<256x8xf32>
    tpu.vector_store %arg12[%c0_26, %c0_27], %27 {strides = array<i32>} : memref<256x8xf32, #tpu.memory_space<vmem>>, vector<256x8xf32>,
    %c1_28 = arith.constant 1 : index
    %c15_29 = arith.constant 15 : index
    %c0_30 = arith.constant 0 : index
    %29 = vector.load %arg13[%c1_28, %c15_29, %c0_30] : memref<18x33x8xbf16, #tpu.memory_space<vmem>>, vector<16x16x8xbf16>
    %c1_31 = arith.constant 1 : index
    %c16_32 = arith.constant 16 : index
    %c0_33 = arith.constant 0 : index
    %30 = vector.load %arg13[%c1_31, %c16_32, %c0_33] : memref<18x33x8xbf16, #tpu.memory_space<vmem>>, vector<16x16x8xbf16>
    %c1_34 = arith.constant 1 : index
    %c17_35 = arith.constant 17 : index
    %c0_36 = arith.constant 0 : index
    %31 = vector.load %arg13[%c1_34, %c17_35, %c0_36] : memref<18x33x8xbf16, #tpu.memory_space<vmem>>, vector<16x16x8xbf16>
    %32 = tpu.concatenate %29, %30, %31 in 2 : vector<16x16x8xbf16>, vector<16x16x8xbf16>, vector<16x16x8xbf16> -> vector<16x16x24xbf16>
    %33 = vector.shape_cast %32 : vector<16x16x24xbf16> to vector<256x24xbf16>
    %c1_37 = arith.constant 1 : index
    %c0_38 = arith.constant 0 : index
    %c0_39 = arith.constant 0 : index
    %34 = vector.load %arg3[%c1_37, %c0_38, %c0_39] : memref<3x24x8xbf16, #tpu.memory_space<vmem>>, vector<1x24x8xbf16>
    %35 = vector.shape_cast %34 : vector<1x24x8xbf16> to vector<24x8xbf16>
    %cst_40 = arith.constant dense<0.000000e+00> : vector<256x8xf32>
    %36 = tpu.matmul %33, %35, %cst_40 {dimension_numbers = #tpu.dot_dimension_numbers<[1], [0], [0], [1], [0, 0, 1, 1], [], []>} : vector<256x24xbf16>, vector<24x8xbf16>, vector<256x8xf32> -> vector<256x8xf32>
    %c0_41 = arith.constant 0 : index
    %c0_42 = arith.constant 0 : index
    %37 = vector.load %arg12[%c0_41, %c0_42] : memref<256x8xf32, #tpu.memory_space<vmem>>, vector<256x8xf32>
    %38 = arith.addf %37, %36 : vector<256x8xf32>
    %c0_43 = arith.constant 0 : index
    %c0_44 = arith.constant 0 : index
    %39 = vector.load %arg12[%c0_43, %c0_44] : memref<256x8xf32, #tpu.memory_space<vmem>>, vector<256x8xf32>
    tpu.vector_store %arg12[%c0_43, %c0_44], %38 {strides = array<i32>} : memref<256x8xf32, #tpu.memory_space<vmem>>, vector<256x8xf32>,
    %c2 = arith.constant 2 : index
    %c15_45 = arith.constant 15 : index
    %c0_46 = arith.constant 0 : index
    %40 = vector.load %arg13[%c2, %c15_45, %c0_46] : memref<18x33x8xbf16, #tpu.memory_space<vmem>>, vector<16x16x8xbf16>
    %c2_47 = arith.constant 2 : index
    %c16_48 = arith.constant 16 : index
    %c0_49 = arith.constant 0 : index
    %41 = vector.load %arg13[%c2_47, %c16_48, %c0_49] : memref<18x33x8xbf16, #tpu.memory_space<vmem>>, vector<16x16x8xbf16>
    %c2_50 = arith.constant 2 : index
    %c17_51 = arith.constant 17 : index
    %c0_52 = arith.constant 0 : index
    %42 = vector.load %arg13[%c2_50, %c17_51, %c0_52] : memref<18x33x8xbf16, #tpu.memory_space<vmem>>, vector<16x16x8xbf16>
    %43 = tpu.concatenate %40, %41, %42 in 2 : vector<16x16x8xbf16>, vector<16x16x8xbf16>, vector<16x16x8xbf16> -> vector<16x16x24xbf16>
    %44 = vector.shape_cast %43 : vector<16x16x24xbf16> to vector<256x24xbf16>
    %c2_53 = arith.constant 2 : index
    %c0_54 = arith.constant 0 : index
    %c0_55 = arith.constant 0 : index
    %45 = vector.load %arg3[%c2_53, %c0_54, %c0_55] : memref<3x24x8xbf16, #tpu.memory_space<vmem>>, vector<1x24x8xbf16>
    %46 = vector.shape_cast %45 : vector<1x24x8xbf16> to vector<24x8xbf16>
    %cst_56 = arith.constant dense<0.000000e+00> : vector<256x8xf32>
    %47 = tpu.matmul %44, %46, %cst_56 {dimension_numbers = #tpu.dot_dimension_numbers<[1], [0], [0], [1], [0, 0, 1, 1], [], []>} : vector<256x24xbf16>, vector<24x8xbf16>, vector<256x8xf32> -> vector<256x8xf32>
    %c0_57 = arith.constant 0 : index
    %c0_58 = arith.constant 0 : index
    %48 = vector.load %arg12[%c0_57, %c0_58] : memref<256x8xf32, #tpu.memory_space<vmem>>, vector<256x8xf32>
    %49 = arith.addf %48, %47 : vector<256x8xf32>
    %50 = vector.broadcast %14 : vector<1x8xf32> to vector<256x8xf32>
    %51 = arith.mulf %49, %50 : vector<256x8xf32>
    %52 = vector.broadcast %15 : vector<1x8xf32> to vector<256x8xf32>
    %53 = arith.addf %51, %52 : vector<256x8xf32>
    %cst_59 = arith.constant 0.000000e+00 : f32
    %54 = vector.broadcast %cst_59 : f32 to vector<256x8xf32>
    %55 = arith.maximumf %53, %54 : vector<256x8xf32>
    %56 = arith.truncf %55 : vector<256x8xf32> to vector<256x8xbf16>
    %c0_60 = arith.constant 0 : index
    %c0_61 = arith.constant 0 : index
    %57 = vector.load %arg4[%c0_60, %c0_61] : memref<8x32xbf16, #tpu.memory_space<vmem>>, vector<8x32xbf16>
    %cst_62 = arith.constant dense<0.000000e+00> : vector<256x32xf32>
    %58 = tpu.matmul %56, %57, %cst_62 {dimension_numbers = #tpu.dot_dimension_numbers<[1], [0], [0], [1], [0, 0, 1, 1], [], []>} : vector<256x8xbf16>, vector<8x32xbf16>, vector<256x32xf32> -> vector<256x32xf32>
    %c0_63 = arith.constant 0 : index
    %c0_64 = arith.constant 0 : index
    %59 = vector.load %arg9[%c0_63, %c0_64] : memref<1x32xf32, #tpu.memory_space<vmem>>, vector<1x32xf32>
    %60 = vector.broadcast %59 : vector<1x32xf32> to vector<256x32xf32>
    %61 = arith.mulf %58, %60 : vector<256x32xf32>
    %c0_65 = arith.constant 0 : index
    %c0_66 = arith.constant 0 : index
    %62 = vector.load %arg10[%c0_65, %c0_66] : memref<1x32xf32, #tpu.memory_space<vmem>>, vector<1x32xf32>
    %63 = vector.broadcast %62 : vector<1x32xf32> to vector<256x32xf32>
    %64 = arith.addf %61, %63 : vector<256x32xf32>
    %65 = arith.extf %2 : vector<256x32xbf16> to vector<256x32xf32>
    %66 = arith.addf %64, %65 : vector<256x32xf32>
    %cst_67 = arith.constant 0.000000e+00 : f32
    %67 = vector.broadcast %cst_67 : f32 to vector<256x32xf32>
    %68 = arith.maximumf %66, %67 : vector<256x32xf32>
    %c0_68 = arith.constant 0 : index
    %c0_69 = arith.constant 0 : index
    %c0_70 = arith.constant 0 : index
    %69 = vector.load %arg11[%c0_68, %c0_69, %c0_70] : memref<1x256x32xf32, #tpu.memory_space<vmem>>, vector<1x256x32xf32>
    %70 = vector.shape_cast %69 : vector<1x256x32xf32> to vector<256x32xf32>
    %71 = vector.shape_cast %68 : vector<256x32xf32> to vector<1x256x32xf32>
    tpu.vector_store %arg11[%c0_68, %c0_69, %c0_70], %71 {strides = array<i32>} : memref<1x256x32xf32, #tpu.memory_space<vmem>>, vector<1x256x32xf32>,
    return
  }
  func.func @transform_0(%arg0: i32) -> (i32, i32, i32) {
    %c0_i32 = arith.constant 0 : i32
    %c0_i32_0 = arith.constant 0 : i32
    %c0_i32_1 = arith.constant 0 : i32
    return %arg0, %c0_i32, %c0_i32_0 : i32, i32, i32
  }
  func.func @transform_1(%arg0: i32) -> (i32, i32) {
    %c0_i32 = arith.constant 0 : i32
    %c0_i32_0 = arith.constant 0 : i32
    %c0_i32_1 = arith.constant 0 : i32
    return %c0_i32, %c0_i32_0 : i32, i32
  }
  func.func @transform_2(%arg0: i32) -> (i32, i32, i32) {
    %c0_i32 = arith.constant 0 : i32
    %c0_i32_0 = arith.constant 0 : i32
    %c0_i32_1 = arith.constant 0 : i32
    %c0_i32_2 = arith.constant 0 : i32
    return %c0_i32, %c0_i32_0, %c0_i32_1 : i32, i32, i32
  }
  func.func @transform_3(%arg0: i32) -> (i32, i32) {
    %c0_i32 = arith.constant 0 : i32
    %c0_i32_0 = arith.constant 0 : i32
    %c0_i32_1 = arith.constant 0 : i32
    return %c0_i32, %c0_i32_0 : i32, i32
  }
  func.func @transform_4(%arg0: i32) -> (i32, i32) {
    %c0_i32 = arith.constant 0 : i32
    %c0_i32_0 = arith.constant 0 : i32
    %c0_i32_1 = arith.constant 0 : i32
    return %c0_i32, %c0_i32_0 : i32, i32
  }
  func.func @transform_5(%arg0: i32) -> (i32, i32) {
    %c0_i32 = arith.constant 0 : i32
    %c0_i32_0 = arith.constant 0 : i32
    %c0_i32_1 = arith.constant 0 : i32
    return %c0_i32, %c0_i32_0 : i32, i32
  }
  func.func @transform_6(%arg0: i32) -> (i32, i32) {
    %c0_i32 = arith.constant 0 : i32
    %c0_i32_0 = arith.constant 0 : i32
    %c0_i32_1 = arith.constant 0 : i32
    return %c0_i32, %c0_i32_0 : i32, i32
  }
  func.func @transform_7(%arg0: i32) -> (i32, i32) {
    %c0_i32 = arith.constant 0 : i32
    %c0_i32_0 = arith.constant 0 : i32
    %c0_i32_1 = arith.constant 0 : i32
    return %c0_i32, %c0_i32_0 : i32, i32
  }
  func.func @transform_8(%arg0: i32) -> (i32, i32) {
    %c0_i32 = arith.constant 0 : i32
    %c0_i32_0 = arith.constant 0 : i32
    %c0_i32_1 = arith.constant 0 : i32
    return %c0_i32, %c0_i32_0 : i32, i32
  }
  func.func @transform_9(%arg0: i32) -> (i32, i32) {
    %c0_i32 = arith.constant 0 : i32
    %c0_i32_0 = arith.constant 0 : i32
    %c0_i32_1 = arith.constant 0 : i32
    return %c0_i32, %c0_i32_0 : i32, i32
  }
  func.func @transform_10(%arg0: i32) -> (i32, i32, i32) {
    %c0_i32 = arith.constant 0 : i32
    %c0_i32_0 = arith.constant 0 : i32
    %c0_i32_1 = arith.constant 0 : i32
    return %arg0, %c0_i32, %c0_i32_0 : i32, i32, i32
  }
}

</mosaic_0001>

<bundles_post_ra>
// kernel: tpu_custom_call.1
= control target key start
LH: loop header
LB: loop body
LE: loop exit
PB: predicated region body
PF: predicated region fallthrough
CT: control target
= control target key end

     0   :  { %s6269_s13 = smov 0   ;;  %s8709_s0 = inlined_call_operand.vmem [shape: bf16[2,256,32], index: 0, kind: input, shape index: {}]   ;;  %s8710_s1 = inlined_call_operand.vmem [shape: bf16[32,8], index: 1, kind: input, shape index: {}]   ;;  %s8711_s2 = inlined_call_operand.vmem [shape: bf16[3,24,8], index: 2, kind: input, shape index: {}]   ;;  %s8712_s3 = inlined_call_operand.vmem [shape: bf16[8,32], index: 3, kind: input, shape index: {}]   ;;  %s8713_s4 = inlined_call_operand.vmem [shape: f32[1,8], index: 4, kind: input, shape index: {}]   ;;  %s8714_s5 = inlined_call_operand.vmem [shape: f32[1,8], index: 5, kind: input, shape index: {}]   ;;  %s8715_s6 = inlined_call_operand.vmem [shape: f32[1,8], index: 6, kind: input, shape index: {}]   ;;  %s8716_s7 = inlined_call_operand.vmem [shape: f32[1,8], index: 7, kind: input, shape index: {}]   ;;  %s8717_s8 = inlined_call_operand.vmem [shape: f32[1,32], index: 8, kind: input, shape index: {}]   ;;  %s8718_s9 = inlined_call_operand.vmem [shape: f32[1,32], index: 9, kind: input, shape index: {}]   ;;  %s8719_s10 = inlined_call_operand.vmem [shape: f32[2,256,32], index: 10, kind: output, shape index: {}]  }
   0x1 LB: > { %s6275_s14 = sadd.s32 4294967295, %s6209_s13   ;;  %p5318_p0 = scmp.ge.s32.totalorder %s6209_s13, 1  ;;  %s6209_s13 = sphi %s6269_s13, %s20_s13  }
   0x2   : > { %p312_p1 = scmp.lt.s32.totalorder %s6209_s13, 3 }
   0x4   : > { %p313_p2 = pnand %p5318_p0, %p312_p1 }
   0x6   : > { %316 = sbr.rel (%p313_p2) target bundleno = 1182 (0x49e), region = 60 }
   0xd   : > { %v5986_v0 = vld [vmem:[%s8710_s1] sm:$0xff]   ;;  %p350_p3 = scmp.lt.s32.totalorder %s6275_s14, 1  ;;  %v5987_v1 = vld [vmem:[%s8710_s1 + $0x8] sm:$0xff]   ;;  %vm490_vm0 = vcmask 261120   ;;  %p5359_p4 = scmp.ne.s32.totalorder %s6275_s14, 0 }
   0xe   : > { %5789 = vmatprep.subr.bf16.mxu0 %v5986_v0  ;;  %5967 = vmatprep.subr.bf16.mxu1 %v5986_v0  ;;  %v6380_v18 = vld [vmem:[%s8715_s6] ss:$0 sm:$0xff]  ;;  %vm815_vm1 = vcmask (!%p5359_p4), 60416   ;;  %vm820_vm2 = vcmask (!%p5359_p4), 57344   ;;  %vm821_vm3 = vsmask.f32 (!%p5359_p4), 256 }
   0xf   : > { %s351_s19 = scalar_select %p350_p3, %s6275_s14, 1  ;;  %5790 = vmatpush3.bf16.msra.mxu0 %v5986_v0  ;;  %5969 = vmatpush3.bf16.msra.mxu1 %v5986_v0  ;;  %8799 = vst [vmem:[#allocation20_spill] sm:$0xff] %v6380_v18  ;;  %v6385_v19 = vld [vmem:[%s8716_s7] ss:$0 sm:$0xff] }
  0x10   : > { %5791 = vmatprep.subr.bf16.mxu0 %v5987_v1  ;;  %5968 = vmatprep.subr.bf16.mxu1 %v5987_v1  ;;  %8800 = vst [vmem:[#allocation21_spill] sm:$0xff] %v6385_v19  ;;  %v6390_v20 = vld [vmem:[%s8713_s4] ss:$0 sm:$0xff]  ;;  %vm6558_vm4 = vmand (!%p5359_p4), %vm820_vm2, %vm821_vm3  ;;  %vm834_vm5 = vcmask (!%p5359_p4), 60419   ;;  %vm835_vm6 = vsmask.f32 (!%p5359_p4), 7950 }
  0x11   : > { %s5666_s20 = sshll.u32 %s351_s19, 7  ;;  %s5667_s21 = sshll.u32 %s351_s19, 8  ;;  %v6395_v22 = vld [vmem:[%s8714_s5] ss:$0 sm:$0xff]  ;;  %v840_v50 = vld [vmem:[#allocation3 + $0x18] sm:$0x8] (!%p5359_p4)  ;;  %vm6566_vm7 = vmand (!%p5359_p4), %vm834_vm5, %vm835_vm6 }
  0x12   : > { %s6290_s24 = scalar_lea.vmem %s8709_s0, %s5666_s20  ;;  %s6295_s27 = scalar_lea.vmem %s8719_s10, %s5667_s21  ;;  %v855_v42 = vld [vmem:[#allocation3 + $0x7c] sm:$0x8] (!%p5359_p4)  ;;  %v861_v46 = vld [vmem:[#allocation3 + $0xa4] sm:$0x8] (!%p5359_p4) }
  0x13   : > { %v6298_v2 = vld [vmem:[%s6290_s24] sm:$0xff]   ;;  %v6304_v4 = vld [vmem:[%s6290_s24 + $0x8] sm:$0xff]   ;;  %5792 = vmatpush3.bf16.msra.mxu0 %v5987_v1  ;;  %5970 = vmatpush3.bf16.msra.mxu1 %v5987_v1  ;;  %v6310_v6 = vld [vmem:[%s6290_s24 + $0x10] sm:$0xff]  }
  0x14   : > { %8783 = vst [vmem:[#allocation4_spill] sm:$0xff] %v6298_v2  ;;  %v6301_v3 = vld [vmem:[%s6290_s24 + $0x40] sm:$0xff]   ;;  %8785 = vst [vmem:[#allocation6_spill] sm:$0xff] %v6304_v4  ;;  %v6307_v5 = vld [vmem:[%s6290_s24 + $0x48] sm:$0xff]   ;;  %5793 = vmatprep.mubr.msk.bf16.mxu0 %vm490_vm0, %v6298_v2 }
  0x15   : > { %8784 = vst [vmem:[#allocation5_spill] sm:$0xff] %v6301_v3  ;;  %8786 = vst [vmem:[#allocation7_spill] sm:$0xff] %v6307_v5  ;;  %v6313_v7 = vld [vmem:[%s6290_s24 + $0x50] sm:$0xff]   ;;  %5809 = vmatprep.mubr.msk.bf16.mxu1 %vm490_vm0, %v6301_v3  ;;  %v6328_v8 = vld [vmem:[%s6290_s24 + $0x18] sm:$0xff]  }
  0x16   : > { %8787 = vst [vmem:[#allocation8_spill] sm:$0xff] %v6310_v6  ;;  %8788 = vst [vmem:[#allocation9_spill] sm:$0xff] %v6313_v7  ;;  %5794 = vmatmul.mubr.msk.bf16.vlgmr.msra.gmra.mrb[0].mxu0 %vm490_vm0, %v6304_v4  ;;  %5810 = vmatmul.mubr.msk.bf16.vlgmr.msra.gmra.mrb[0].mxu1 %vm490_vm0, %v6307_v5  ;;  %v6331_v9 = vld [vmem:[%s6290_s24 + $0x58] sm:$0xff]   ;;  %v6334_v10 = vld [vmem:[%s6290_s24 + $0x20] sm:$0xff]  }
  0x17   : > { %5797 = vmatprep.mubr.msk.bf16.mxu0 %vm490_vm0, %v6310_v6  ;;  %5813 = vmatprep.mubr.msk.bf16.mxu1 %vm490_vm0, %v6313_v7  ;;  %8789 = vst [vmem:[#allocation10_spill] sm:$0xff] %v6328_v8  ;;  %8790 = vst [vmem:[#allocation11_spill] sm:$0xff] %v6331_v9  ;;  %v6337_v11 = vld [vmem:[%s6290_s24 + $0x60] sm:$0xff]   ;;  %v6348_v12 = vld [vmem:[%s6290_s24 + $0x28] sm:$0xff]  }
  0x18   : > { %8791 = vst [vmem:[#allocation12_spill] sm:$0xff] %v6334_v10  ;;  %8792 = vst [vmem:[#allocation13_spill] sm:$0xff] %v6337_v11  ;;  %v6351_v13 = vld [vmem:[%s6290_s24 + $0x68] sm:$0xff]   ;;  %v6354_v14 = vld [vmem:[%s6290_s24 + $0x30] sm:$0xff]  }
  0x19   : > { %8793 = vst [vmem:[#allocation14_spill] sm:$0xff] %v6348_v12  ;;  %8794 = vst [vmem:[#allocation15_spill] sm:$0xff] %v6351_v13  ;;  %v6357_v15 = vld [vmem:[%s6290_s24 + $0x70] sm:$0xff]   ;;  %v6368_v16 = vld [vmem:[%s6290_s24 + $0x38] sm:$0xff]  }
  0x1a   : > { %8795 = vst [vmem:[#allocation16_spill] sm:$0xff] %v6354_v14  ;;  %8796 = vst [vmem:[#allocation17_spill] sm:$0xff] %v6357_v15  ;;  %v6371_v17 = vld [vmem:[%s6290_s24 + $0x78] sm:$0xff]  }
  0x1b   : > { %8797 = vst [vmem:[#allocation18_spill] sm:$0xff] %v6368_v16  ;;  %8798 = vst [vmem:[#allocation19_spill] sm:$0xff] %v6371_v17 }
  0x1e   : > { %5798 = vmatmul.mubr.msk.bf16.gmra.mrb[4].mxu0 %vm490_vm0, %v6328_v8  ;;  %5814 = vmatmul.mubr.msk.bf16.gmra.mrb[4].mxu1 %vm490_vm0, %v6331_v9 }
  0x1f   : > { %5801 = vmatprep.mubr.msk.bf16.mxu0 %vm490_vm0, %v6334_v10  ;;  %5817 = vmatprep.mubr.msk.bf16.mxu1 %vm490_vm0, %v6337_v11 }
  0x26   : > { %5802 = vmatmul.mubr.msk.bf16.gmra.mrb[8].mxu0 %vm490_vm0, %v6348_v12  ;;  %5818 = vmatmul.mubr.msk.bf16.gmra.mrb[8].mxu1 %vm490_vm0, %v6351_v13 }
  0x27   : > { %5805 = vmatprep.mubr.msk.bf16.mxu0 %vm490_vm0, %v6354_v14  ;;  %5821 = vmatprep.mubr.msk.bf16.mxu1 %vm490_vm0, %v6357_v15 }
  0x2e   : > { %5806 = vmatmul.mubr.msk.bf16.gmra.mrb[12].mxu0 %vm490_vm0, %v6368_v16  ;;  %5822 = vmatmul.mubr.msk.bf16.gmra.mrb[12].mxu1 %vm490_vm0, %v6371_v17 }
  0xe9   : > { %v5795_v21 = vpop.f32.mrb[0].mxu0  ;;  %v5811_v23 = vpop.f32.mrb[0].mxu1 }
  0xea   : > { %v709_v24 = vmul.f32 %v5795_v21, %v6390_v20  ;;  %v725_v25 = vmul.f32 %v5811_v23, %v6390_v20  ;;  %v573_v26 = vpop.f32.mrb[1].mxu0  ;;  %v637_v27 = vpop.f32.mrb[1].mxu1 }
  0xeb   : > { %v707_v28 = vmul.f32 %v6390_v20, %v573_v26  ;;  %v723_v29 = vmul.f32 %v6390_v20, %v637_v27  ;;  %v5796_v30 = vpop.f32.mrb[2].mxu0  ;;  %v5812_v31 = vpop.f32.mrb[2].mxu1 }
  0xec   : > { %v6402_v32 = vadd.f32 %v6395_v22, %v709_v24  ;;  %v6405_v33 = vadd.f32 %v6395_v22, %v725_v25  ;;  %v710_v34 = vmul.f32 %v5796_v30, %v6390_v20  ;;  %v726_v35 = vmul.f32 %v5812_v31, %v6390_v20  ;;  %v576_v36 = vpop.f32.mrb[3].mxu0  ;;  %v640_v37 = vpop.f32.mrb[3].mxu1 }
  0xed   : > { %v6410_v38 = vadd.f32 %v6395_v22, %v707_v28  ;;  %v6413_v39 = vadd.f32 %v6395_v22, %v723_v29  ;;  %v708_v40 = vmul.f32 %v6390_v20, %v576_v36  ;;  %v724_v41 = vmul.f32 %v6390_v20, %v640_v37  ;;  %v846_v36 = vld [vmem:[#allocation3 + $0x40] sm:$0x8] (!%p5359_p4) }
  0xee   : > { %v6420_v44 = vadd.f32 %v6395_v22, %v710_v34  ;;  %v6423_v45 = vadd.f32 %v6395_v22, %v726_v35 }
  0xef   : > { %v6428_v48 = vadd.f32 %v6395_v22, %v708_v40  ;;  %v6431_v49 = vadd.f32 %v6395_v22, %v724_v41 }
  0xf1   : > { %v5799_v54 = vpop.f32.mrb[4].mxu0  ;;  %v5815_v55 = vpop.f32.mrb[4].mxu1 }
  0xf2   : > { %v713_v56 = vmul.f32 %v5799_v54, %v6390_v20  ;;  %v729_v57 = vmul.f32 %v5815_v55, %v6390_v20  ;;  %v589_v58 = vpop.f32.mrb[5].mxu0  ;;  %v653_v59 = vpop.f32.mrb[5].mxu1 }
  0xf3   : > { %v711_v60 = vmul.f32 %v6390_v20, %v589_v58  ;;  %v727_v61 = vmul.f32 %v6390_v20, %v653_v59  ;;  %v5800_v62 = vpop.f32.mrb[6].mxu0  ;;  %v5816_v63 = vpop.f32.mrb[6].mxu1 }
  0xf4   : > { %v6442_v0 = vadd.f32 %v6395_v22, %v713_v56  ;;  %v6445_v1 = vadd.f32 %v6395_v22, %v729_v57  ;;  %v714_v21 = vmul.f32 %v5800_v62, %v6390_v20  ;;  %v730_v23 = vmul.f32 %v5816_v63, %v6390_v20  ;;  %v592_v24 = vpop.f32.mrb[7].mxu0  ;;  %v656_v25 = vpop.f32.mrb[7].mxu1 }
  0xf5   : > { %v6450_v26 = vadd.f32 %v6395_v22, %v711_v60  ;;  %v6453_v27 = vadd.f32 %v6395_v22, %v727_v61  ;;  %v712_v28 = vmul.f32 %v6390_v20, %v592_v24  ;;  %v728_v29 = vmul.f32 %v6390_v20, %v656_v25 }
  0xf6   : > { %v6460_v34 = vadd.f32 %v6395_v22, %v714_v21  ;;  %v6463_v35 = vadd.f32 %v6395_v22, %v730_v23 }
  0xf7   : > { %v6468_v40 = vadd.f32 %v6395_v22, %v712_v28  ;;  %v6471_v41 = vadd.f32 %v6395_v22, %v728_v29 }
  0xf9   : > { %v5803_v58 = vpop.f32.mrb[8].mxu0  ;;  %v5819_v59 = vpop.f32.mrb[8].mxu1 }
  0xfa   : > { %v717_v60 = vmul.f32 %v5803_v58, %v6390_v20  ;;  %v733_v61 = vmul.f32 %v5819_v59, %v6390_v20  ;;  %v605_v62 = vpop.f32.mrb[9].mxu0  ;;  %v669_v63 = vpop.f32.mrb[9].mxu1 }
  0xfb   : > { %v715_v21 = vmul.f32 %v6390_v20, %v605_v62  ;;  %v731_v23 = vmul.f32 %v6390_v20, %v669_v63  ;;  %v5804_v24 = vpop.f32.mrb[10].mxu0  ;;  %v5820_v25 = vpop.f32.mrb[10].mxu1 }
  0xfc   : > { %v6482_v28 = vadd.f32 %v6395_v22, %v717_v60  ;;  %v6485_v29 = vadd.f32 %v6395_v22, %v733_v61  ;;  %v718_v55 = vmul.f32 %v5804_v24, %v6390_v20  ;;  %v734_v58 = vmul.f32 %v5820_v25, %v6390_v20  ;;  %v608_v31 = vpop.f32.mrb[11].mxu0  ;;  %v672_v59 = vpop.f32.mrb[11].mxu1 }
  0xfd   : > { %v6490_v51 = vadd.f32 %v6395_v22, %v715_v21  ;;  %v6493_v62 = vadd.f32 %v6395_v22, %v731_v23  ;;  %v716_v63 = vmul.f32 %v6390_v20, %v608_v31  ;;  %v732_v60 = vmul.f32 %v6390_v20, %v672_v59 }
  0xfe   : > { %v6500_v24 = vadd.f32 %v6395_v22, %v718_v55  ;;  %v6503_v25 = vadd.f32 %v6395_v22, %v734_v58 }
  0xff   : > { %v6508_v23 = vadd.f32 %v6395_v22, %v716_v63  ;;  %v6511_v31 = vadd.f32 %v6395_v22, %v732_v60 }
 0x101   : > { %v5807_v58 = vpop.f32.mrb[12].mxu0  ;;  %v5823_v53 = vpop.f32.mrb[12].mxu1  ;;  %814 = sbr.rel (%p5359_p4) target bundleno = 296 (0x128), region = 64 }
 0x102   : > { %v721_v47 = vmul.f32 %v5807_v58, %v6390_v20  ;;  %v737_v57 = vmul.f32 %v5823_v53, %v6390_v20  ;;  %v621_v43 = vpop.f32.mrb[13].mxu0  ;;  %v685_v63 = vpop.f32.mrb[13].mxu1 }
 0x103   : > { %v719_v54 = vmul.f32 %v6390_v20, %v621_v43  ;;  %v735_v60 = vmul.f32 %v6390_v20, %v685_v63  ;;  %v5808_v30 = vpop.f32.mrb[14].mxu0  ;;  %v5824_v59 = vpop.f32.mrb[14].mxu1 }
 0x104   : > { %v6522_v61 = vadd.f32 %v6395_v22, %v721_v47  ;;  %v6525_v55 = vadd.f32 %v6395_v22, %v737_v57  ;;  %v722_v37 = vmul.f32 %v5808_v30, %v6390_v20  ;;  %v738_v58 = vmul.f32 %v5824_v59, %v6390_v20  ;;  %v624_v21 = vpop.f32.mrb[15].mxu0  ;;  %v688_v53 = vpop.f32.mrb[15].mxu1 }
 0x105   : > { %v6530_v56 = vadd.f32 %v6395_v22, %v719_v54  ;;  %v6533_v43 = vadd.f32 %v6395_v22, %v735_v60  ;;  %v720_v63 = vmul.f32 %v6390_v20, %v624_v21  ;;  %v736_v47 = vmul.f32 %v6390_v20, %v688_v53 }
 0x106   : > { %v6540_v30 = vadd.f32 %v6395_v22, %v722_v37  ;;  %v6543_v59 = vadd.f32 %v6395_v22, %v738_v58  ;;  %v6211_v58 = vmov (!%p5359_p4), 0   ;;  %v841_v37 = vsel (!%p5359_p4), %vm6566_vm7, 0, %v840_v50 }
 0x107   : > { %v6548_v60 = vadd.f32 %v6395_v22, %v720_v63  ;;  %v6551_v21 = vadd.f32 %v6395_v22, %v736_v47  ;;  %817 = vst.msk [vmem:[#allocation3 + $0x4] sm:$0xf] (!%p5359_p4), %vm815_vm1, %v6211_v58  ;;  %818 = vst.msk [vmem:[#allocation3 + $0x8] sm:$0xf] (!%p5359_p4), %vm815_vm1, %v6211_v58  ;;  %v823_v63 = vld [vmem:[#allocation3 + $0x10] sm:$0x1] (!%p5359_p4) }
 0x108   : > { %819 = vst.msk [vmem:[#allocation3 + $0xc] sm:$0xf] %vm815_vm1, %v6211_v58  ;;  %828 = vst.msk [vmem:[#allocation3 + $0x158] sm:$0xf] %vm815_vm1, %v6211_v58  ;;  %v831_v47 = vld [vmem:[#allocation3 + $0x164] sm:$0x1] }
 0x109   : > { %829 = vst.msk [vmem:[#allocation3 + $0x15c] sm:$0xf] %vm815_vm1, %v6211_v58  ;;  %830 = vst.msk [vmem:[#allocation3 + $0x160] sm:$0xf] %vm815_vm1, %v6211_v58  ;;  %v824_v53 = vsel %vm6558_vm4, 0, %v823_v63  ;;  %v832_v57 = vsel %vm6558_vm4, 0, %v831_v47 }
 0x10a   : > { %825 = vst [vmem:[#allocation3 + $0x10] sm:$0x1] %v824_v53  ;;  %833 = vst [vmem:[#allocation3 + $0x164] sm:$0x1] %v832_v57  ;;  %v843_v58 = vld [vmem:[#allocation3 + $0x2c] sm:$0x8] }
 0x10b   : > { %v844_v54 = vsel %vm6566_vm7, 0, %v843_v58  ;;  %v847_v63 = vsel %vm6566_vm7, 0, %v846_v36  ;;  %v849_v47 = vld [vmem:[#allocation3 + $0x54] sm:$0x8]  ;;  %842 = vst [vmem:[#allocation3 + $0x18] sm:$0x8] %v841_v37 }
 0x10c   : > { %845 = vst [vmem:[#allocation3 + $0x2c] sm:$0x8] %v844_v54  ;;  %848 = vst [vmem:[#allocation3 + $0x40] sm:$0x8] %v847_v63  ;;  %v850_v57 = vsel %vm6566_vm7, 0, %v849_v47  ;;  %v856_v50 = vsel %vm6566_vm7, 0, %v855_v42 }
 0x10d   : > { %v852_v53 = vld [vmem:[#allocation3 + $0x68] sm:$0x8]  ;;  %851 = vst [vmem:[#allocation3 + $0x54] sm:$0x8] %v850_v57  ;;  %v858_v58 = vld [vmem:[#allocation3 + $0x90] sm:$0x8] }
 0x10e   : > { %v853_v52 = vsel %vm6566_vm7, 0, %v852_v53  ;;  %857 = vst [vmem:[#allocation3 + $0x7c] sm:$0x8] %v856_v50  ;;  %v859_v36 = vsel %vm6566_vm7, 0, %v858_v58  ;;  %v862_v54 = vsel %vm6566_vm7, 0, %v861_v46 }
 0x10f   : > { %854 = vst [vmem:[#allocation3 + $0x68] sm:$0x8] %v853_v52  ;;  %v864_v37 = vld [vmem:[#allocation3 + $0xb8] sm:$0x8]  ;;  %v867_v63 = vld [vmem:[#allocation3 + $0xcc] sm:$0x8] }
 0x110   : > { %v837_v47 = vld [vmem:[#allocation3 + $0x4] sm:$0x8]  ;;  %860 = vst [vmem:[#allocation3 + $0x90] sm:$0x8] %v859_v36  ;;  %863 = vst [vmem:[#allocation3 + $0xa4] sm:$0x8] %v862_v54 }
 0x111   : > { %v865_v57 = vsel %vm6566_vm7, 0, %v864_v37  ;;  %v868_v42 = vsel %vm6566_vm7, 0, %v867_v63  ;;  %v870_v53 = vld [vmem:[#allocation3 + $0xe0] sm:$0x8]  ;;  %v838_v52 = vsel %vm6566_vm7, 0, %v837_v47 }
 0x112   : > { %866 = vst [vmem:[#allocation3 + $0xb8] sm:$0x8] %v865_v57  ;;  %869 = vst [vmem:[#allocation3 + $0xcc] sm:$0x8] %v868_v42  ;;  %v871_v46 = vsel %vm6566_vm7, 0, %v870_v53 }
 0x113   : > { %v873_v50 = vld [vmem:[#allocation3 + $0xf4] sm:$0x8]  ;;  %v876_v58 = vld [vmem:[#allocation3 + $0x108] sm:$0x8]  ;;  %839 = vst [vmem:[#allocation3 + $0x4] sm:$0x8] %v838_v52 }
 0x114   : > { %872 = vst [vmem:[#allocation3 + $0xe0] sm:$0x8] %v871_v46  ;;  %v874_v36 = vsel %vm6566_vm7, 0, %v873_v50  ;;  %v877_v54 = vsel %vm6566_vm7, 0, %v876_v58  ;;  %v879_v37 = vld [vmem:[#allocation3 + $0x11c] sm:$0x8] }
 0x115   : > { %v882_v63 = vld [vmem:[#allocation3 + $0x130] sm:$0x8]  ;;  %875 = vst [vmem:[#allocation3 + $0xf4] sm:$0x8] %v874_v36  ;;  %878 = vst [vmem:[#allocation3 + $0x108] sm:$0x8] %v877_v54 }
 0x116   : > { %v880_v47 = vsel %vm6566_vm7, 0, %v879_v37  ;;  %v883_v57 = vsel %vm6566_vm7, 0, %v882_v63  ;;  %v885_v42 = vld [vmem:[#allocation3 + $0x144] sm:$0x8]  ;;  %v888_v53 = vld [vmem:[#allocation3 + $0x158] sm:$0x8] }
 0x117   : > { %881 = vst [vmem:[#allocation3 + $0x11c] sm:$0x8] %v880_v47  ;;  %884 = vst [vmem:[#allocation3 + $0x130] sm:$0x8] %v883_v57  ;;  %v886_v52 = vsel %vm6566_vm7, 0, %v885_v42  ;;  %v889_v46 = vsel %vm6566_vm7, 0, %v888_v53 }
 0x118   : > { %v891_v50 = vld [vmem:[#allocation3 + $0x10] sm:$0x1]  ;;  %v894_v58 = vld [vmem:[#allocation3 + $0x24] sm:$0x1]  ;;  %887 = vst [vmem:[#allocation3 + $0x144] sm:$0x8] %v886_v52 }
 0x119   : > { %890 = vst [vmem:[#allocation3 + $0x158] sm:$0x8] %v889_v46  ;;  %v892_v36 = vsel %vm6558_vm4, 0, %v891_v50  ;;  %v895_v54 = vsel %vm6558_vm4, 0, %v894_v58  ;;  %v897_v37 = vld [vmem:[#allocation3 + $0x38] sm:$0x1] }
 0x11a   : > { %v900_v63 = vld [vmem:[#allocation3 + $0x4c] sm:$0x1]  ;;  %893 = vst [vmem:[#allocation3 + $0x10] sm:$0x1] %v892_v36  ;;  %896 = vst [vmem:[#allocation3 + $0x24] sm:$0x1] %v895_v54 }
 0x11b   : > { %v898_v47 = vsel %vm6558_vm4, 0, %v897_v37  ;;  %v901_v20 = vsel %vm6558_vm4, 0, %v900_v63  ;;  %v903_v57 = vld [vmem:[#allocation3 + $0x60] sm:$0x1]  ;;  %v906_v42 = vld [vmem:[#allocation3 + $0x74] sm:$0x1] }
 0x11c   : > { %899 = vst [vmem:[#allocation3 + $0x38] sm:$0x1] %v898_v47  ;;  %902 = vst [vmem:[#allocation3 + $0x4c] sm:$0x1] %v901_v20  ;;  %v904_v53 = vsel %vm6558_vm4, 0, %v903_v57  ;;  %v907_v52 = vsel %vm6558_vm4, 0, %v906_v42 }
 0x11d   : > { %v909_v46 = vld [vmem:[#allocation3 + $0x88] sm:$0x1]  ;;  %v912_v50 = vld [vmem:[#allocation3 + $0x9c] sm:$0x1]  ;;  %905 = vst [vmem:[#allocation3 + $0x60] sm:$0x1] %v904_v53 }
 0x11e   : > { %908 = vst [vmem:[#allocation3 + $0x74] sm:$0x1] %v907_v52  ;;  %v910_v58 = vsel %vm6558_vm4, 0, %v909_v46  ;;  %v913_v36 = vsel %vm6558_vm4, 0, %v912_v50  ;;  %v915_v54 = vld [vmem:[#allocation3 + $0xb0] sm:$0x1] }
 0x11f   : > { %v918_v37 = vld [vmem:[#allocation3 + $0xc4] sm:$0x1]  ;;  %911 = vst [vmem:[#allocation3 + $0x88] sm:$0x1] %v910_v58  ;;  %914 = vst [vmem:[#allocation3 + $0x9c] sm:$0x1] %v913_v36 }
 0x120   : > { %v916_v63 = vsel %vm6558_vm4, 0, %v915_v54  ;;  %v919_v47 = vsel %vm6558_vm4, 0, %v918_v37  ;;  %v921_v20 = vld [vmem:[#allocation3 + $0xd8] sm:$0x1]  ;;  %v924_v57 = vld [vmem:[#allocation3 + $0xec] sm:$0x1] }
 0x121   : > { %917 = vst [vmem:[#allocation3 + $0xb0] sm:$0x1] %v916_v63  ;;  %920 = vst [vmem:[#allocation3 + $0xc4] sm:$0x1] %v919_v47  ;;  %v922_v42 = vsel %vm6558_vm4, 0, %v921_v20  ;;  %v925_v53 = vsel %vm6558_vm4, 0, %v924_v57 }
 0x122   : > { %v927_v52 = vld [vmem:[#allocation3 + $0x100] sm:$0x1]  ;;  %v930_v46 = vld [vmem:[#allocation3 + $0x114] sm:$0x1]  ;;  %923 = vst [vmem:[#allocation3 + $0xd8] sm:$0x1] %v922_v42 }
 0x123   : > { %926 = vst [vmem:[#allocation3 + $0xec] sm:$0x1] %v925_v53  ;;  %v928_v50 = vsel %vm6558_vm4, 0, %v927_v52  ;;  %v931_v58 = vsel %vm6558_vm4, 0, %v930_v46  ;;  %v933_v36 = vld [vmem:[#allocation3 + $0x128] sm:$0x1] }
 0x124   : > { %v936_v54 = vld [vmem:[#allocation3 + $0x13c] sm:$0x1]  ;;  %929 = vst [vmem:[#allocation3 + $0x100] sm:$0x1] %v928_v50  ;;  %932 = vst [vmem:[#allocation3 + $0x114] sm:$0x1] %v931_v58 }
 0x125   : > { %v934_v37 = vsel %vm6558_vm4, 0, %v933_v36  ;;  %v937_v63 = vsel %vm6558_vm4, 0, %v936_v54  ;;  %v939_v47 = vld [vmem:[#allocation3 + $0x150] sm:$0x1]  ;;  %v942_v20 = vld [vmem:[#allocation3 + $0x164] sm:$0x1] }
 0x126   : > { %935 = vst [vmem:[#allocation3 + $0x128] sm:$0x1] %v934_v37  ;;  %938 = vst [vmem:[#allocation3 + $0x13c] sm:$0x1] %v937_v63  ;;  %v940_v57 = vsel %vm6558_vm4, 0, %v939_v47  ;;  %v943_v42 = vsel %vm6558_vm4, 0, %v942_v20 }
 0x127   : > { %941 = vst [vmem:[#allocation3 + $0x150] sm:$0x1] %v940_v57  ;;  %944 = vst [vmem:[#allocation3 + $0x164] sm:$0x1] %v943_v42 }
 0x128 PF: > { %v8805_v46 = vmax.f32 %v6410_v38, 0.0  ;;  %v8806_v58 = vmax.f32 %v6428_v48, 0.0  ;;  %v8807_v54 = vmax.f32 %v6402_v32, 0.0  ;;  %v8808_v37 = vmax.f32 %v6420_v44, 0.0  ;;  %s6212_s14 = smov 16   ;;  %s6213_s18 = smov 8  }
 0x129   : > { %v6021_v20 = vld [vmem:[#allocation3 + $0x10] ss:$0 sps:$4 sm:$0x11]   ;;  %vm1523_vm8 = vcmask 1042432   ;;  %v8809_v38 = vmax.f32 %v6450_v26, 0.0  ;;  %v8810_v48 = vmax.f32 %v6468_v40, 0.0 }
 0x12a   : > { %v5668_v50 = vpack.c.bf16 %v8805_v46, %v8805_v46  ;;  %v5669_v36 = vpack.c.bf16 %v8806_v58, %v8806_v58  ;;  %v5670_v22 = vpack.c.bf16 %v8807_v54, %v8807_v54  ;;  %v5671_v63 = vpack.c.bf16 %v8808_v37, %v8808_v37  ;;  %v6999_v6 = vld [vmem:[#allocation3 + $0x38] ss:$0 sps:$4 sm:$0x11]  }
 0x12b   : > { %v5672_v57 = vpack.c.bf16 %v8809_v38, %v8809_v38  ;;  %v5673_v42 = vpack.c.bf16 %v8810_v48, %v8810_v48  ;;  %vm1074_vm9 = vcmask 60416   ;;  %v8811_v32 = vmax.f32 %v6490_v51, 0.0 }
 0x12c   : > { %v8812_v46 = vmax.f32 %v6508_v23, 0.0  ;;  %v8813_v54 = vmax.f32 %v6442_v0, 0.0  ;;  %v1525_v17 = vrot.slane %v6021_v20, 5  ;;  %1075 = vst.msk [vmem:[#allocation3 + $0x1c] sm:$0xf] %vm1074_vm9, %v5668_v50  ;;  %v8814_v51 = vmax.f32 %v6460_v34, 0.0 }
 0x12d   : > { %v5676_v44 = vpack.c.bf16 %v8811_v32, %v8811_v32  ;;  %1076 = vst.msk [vmem:[#allocation3 + $0x20] sm:$0xf] %vm1074_vm9, %v5669_v36  ;;  %1077 = vst.msk [vmem:[#allocation3 + $0x30] sm:$0xf] %vm1074_vm9, %v5670_v22  ;;  %v8815_v40 = vmax.f32 %v6530_v56, 0.0  ;;  %v8816_v50 = vmax.f32 %v6548_v60, 0.0 }
 0x12e   : > { %v6642_v53 = vld [vmem:[#allocation3 + $0x8] sm:$0xf]  ;;  %v5677_v58 = vpack.c.bf16 %v8812_v46, %v8812_v46  ;;  %v5674_v37 = vpack.c.bf16 %v8813_v54, %v8813_v54  ;;  %1078 = vst.msk [vmem:[#allocation3 + $0x34] sm:$0xf] %vm1074_vm9, %v5671_v63  ;;  %1079 = vst.msk [vmem:[#allocation3 + $0x44] sm:$0xf] %vm1074_vm9, %v5672_v57  ;;  %v5675_v0 = vpack.c.bf16 %v8814_v51, %v8814_v51 }
 0x12f   : > { %v6644_v52 = vld [vmem:[#allocation3 + $0xc] sm:$0xf]  ;;  %1080 = vst.msk [vmem:[#allocation3 + $0x48] sm:$0xf] %vm1074_vm9, %v5673_v42  ;;  %1083 = vst.msk [vmem:[#allocation3 + $0x6c] sm:$0xf] %vm1074_vm9, %v5676_v44  ;;  %v5680_v23 = vpack.c.bf16 %v8815_v40, %v8815_v40  ;;  %v5681_v36 = vpack.c.bf16 %v8816_v50, %v8816_v50 }
 0x130   : > { %v5424_v47 = vcombine.low %v6642_v53, %v6644_v52  ;;  %1084 = vst.msk [vmem:[#allocation3 + $0x70] sm:$0xf] %vm1074_vm9, %v5677_v58  ;;  %1081 = vst.msk [vmem:[#allocation3 + $0x58] sm:$0xf] %vm1074_vm9, %v5674_v37  ;;  %v8817_v34 = vmax.f32 %v6482_v28, 0.0  ;;  %v8818_v56 = vmax.f32 %v6500_v24, 0.0 }
 0x131   : > { %1082 = vst.msk [vmem:[#allocation3 + $0x5c] sm:$0xf] %vm1074_vm9, %v5675_v0  ;;  %1087 = vst.msk [vmem:[#allocation3 + $0x94] sm:$0xf] %vm1074_vm9, %v5680_v23  ;;  %v8820_v28 = vmax.f32 %v6431_v49, 0.0  ;;  %v8822_v46 = vmax.f32 %v6540_v30, 0.0 }
 0x132   : > { %v1524_v26 = vrot.slane %v5424_v47, 5  ;;  %v1316_v15 = vshrl.u32 %v5424_v47, 16  ;;  %v1319_v38 = vshll.u32 %v5424_v47, 16  ;;  %v6694_v47 = vld [vmem:[#allocation3 + $0x24] ss:$0 sps:$4 sm:$0x11]   ;;  %v5678_v20 = vpack.c.bf16 %v8817_v34, %v8817_v34 }
 0x133   : > { %1088 = vst.msk [vmem:[#allocation3 + $0x98] sm:$0xf] %vm1074_vm9, %v5681_v36  ;;  %v5679_v60 = vpack.c.bf16 %v8818_v56, %v8818_v56  ;;  %v5685_v42 = vpack.c.bf16 %v8820_v28, %v8820_v28  ;;  %v5683_v24 = vpack.c.bf16 %v8822_v46, %v8822_v46  ;;  %v6719_v58 = vld [vmem:[#allocation3 + $0x38] ss:$0 sps:$4 sm:$0x11]   ;;  %v8825_v30 = vmax.f32 %v6405_v33, 0.0 }
 0x134   : > { %1572 = vrot.lane.b32.xlu1 %v1524_v26, %s6212_s14  ;;  %v1318_v22 = vrot.slane %v1316_v15, 4  ;;  %v1321_v63 = vrot.slane %v1319_v38, 5  ;;  %v1526_v57 = vsel %vm1523_vm8, %v1524_v26, %v1525_v17  ;;  %v8819_v15 = vmax.f32 %v6413_v39, 0.0  ;;  %1085 = vst.msk [vmem:[#allocation3 + $0x80] sm:$0xf] %vm1074_vm9, %v5678_v20 }
 0x135   : > { %v8821_v17 = vmax.f32 %v6522_v61, 0.0  ;;  %1086 = vst.msk [vmem:[#allocation3 + $0x84] sm:$0xf] %vm1074_vm9, %v5679_v60  ;;  %1092 = vst.msk [vmem:[#allocation3 + $0xc0] sm:$0xf] %vm1074_vm9, %v5685_v42  ;;  %v8823_v39 = vmax.f32 %v6453_v27, 0.0  ;;  %v5686_v37 = vpack.c.bf16 %v8825_v30, %v8825_v30 }
 0x136   : > { %v5684_v48 = vpack.c.bf16 %v8819_v15, %v8819_v15  ;;  %v1322_v32 = vor.u32 %v1321_v63, %v1318_v22  ;;  %v8824_v61 = vmax.f32 %v6471_v41, 0.0  ;;  %v1528_v26 = vrot.slane %v6694_v47, 5  ;;  %1090 = vst.msk [vmem:[#allocation3 + $0xac] sm:$0xf] %vm1074_vm9, %v5683_v24  ;;  %v6747_v40 = vld [vmem:[#allocation3 + $0x1c] sm:$0xf] }
 0x137   : > { %v5682_v44 = vpack.c.bf16 %v8821_v17, %v8821_v17  ;;  %v5688_v49 = vpack.c.bf16 %v8823_v39, %v8823_v39  ;;  %v8826_v27 = vmax.f32 %v6423_v45, 0.0  ;;  %v8827_v38 = vmax.f32 %v6493_v62, 0.0  ;;  %v6749_v23 = vld [vmem:[#allocation3 + $0x20] sm:$0xf]  ;;  %v6751_v50 = vld [vmem:[#allocation3 + $0x30] sm:$0xf] }
 0x138   : > { %1091 = vst.msk [vmem:[#allocation3 + $0xbc] sm:$0xf] %vm1074_vm9, %v5684_v48  ;;  %v5689_v54 = vpack.c.bf16 %v8824_v61, %v8824_v61  ;;  %1443 = vrot.lane.b32.xlu0 %v1322_v32, %s6213_s18  ;;  %1574 = vrot.lane.b32.xlu1 %v1526_v57, %s6212_s14  ;;  %v8828_v51 = vmax.f32 %v6511_v31, 0.0  ;;  %1093 = vst.msk [vmem:[#allocation3 + $0xd0] sm:$0xf] %vm1074_vm9, %v5686_v37  ;;  %v8829_v45 = vmax.f32 %v6445_v1, 0.0 }
 0x139   : > { %1089 = vst.msk [vmem:[#allocation3 + $0xa8] sm:$0xf] %vm1074_vm9, %v5682_v44  ;;  %v5687_v41 = vpack.c.bf16 %v8826_v27, %v8826_v27  ;;  %v5692_v33 = vpack.c.bf16 %v8827_v38, %v8827_v38  ;;  %1095 = vst.msk [vmem:[#allocation3 + $0xe4] sm:$0xf] %vm1074_vm9, %v5688_v49  ;;  %v8830_v31 = vmax.f32 %v6463_v35, 0.0  ;;  %v8831_v22 = vmax.f32 %v6485_v29, 0.0 }
 0x13a   : > { %v5693_v0 = vpack.c.bf16 %v8828_v51, %v8828_v51  ;;  %1096 = vst.msk [vmem:[#allocation3 + $0xe8] sm:$0xf] %vm1074_vm9, %v5689_v54  ;;  %v5690_v62 = vpack.c.bf16 %v8829_v45, %v8829_v45  ;;  %v8832_v47 = vmax.f32 %v6503_v25, 0.0  ;;  %v5425_v20 = vcombine.low %v6747_v40, %v6749_v23  ;;  %v6770_v57 = vld [vmem:[#allocation3 + $0x34] sm:$0xf]  ;;  %v6064_v44 = vld [vmem:[%s8711_s2] sm:$0xff]  }
 0x13b   : > { %v5691_v36 = vpack.c.bf16 %v8830_v31, %v8830_v31  ;;  %v5694_v63 = vpack.c.bf16 %v8831_v22, %v8831_v22  ;;  %v6772_v1 = vld [vmem:[#allocation3 + $0x44] sm:$0xf]  ;;  %v6774_v56 = vld [vmem:[#allocation3 + $0x48] sm:$0xf]  ;;  %1094 = vst.msk [vmem:[#allocation3 + $0xd4] sm:$0xf] %vm1074_vm9, %v5687_v41  ;;  %v5426_v15 = vcombine.low %v6751_v50, %v6770_v57  ;;  %5825 = vmatprep.subr.bf16.mxu1 %v6064_v44 }
 0x13c   : > { %v5695_v34 = vpack.c.bf16 %v8832_v47, %v8832_v47  ;;  %1099 = vst.msk [vmem:[#allocation3 + $0x10c] sm:$0xf] %vm1074_vm9, %v5692_v33  ;;  %1100 = vst.msk [vmem:[#allocation3 + $0x110] sm:$0xf] %vm1074_vm9, %v5693_v0  ;;  %v8833_v35 = vmax.f32 %v6533_v43, 0.0  ;;  %v8834_v25 = vmax.f32 %v6551_v21, 0.0  ;;  %v6790_v28 = vcombine.low %v6772_v1, %v6774_v56  ;;  %5826 = vmatpush3.bf16.msra.mxu1 %v6064_v44 }
 0x13d   : > { %v1531_v48 = vrot.slane %v6719_v58, 5  ;;  %v6792_v42 = vld [vmem:[#allocation3 + $0x6c] sm:$0xf]  ;;  %1097 = vst.msk [vmem:[#allocation3 + $0xf8] sm:$0xf] %vm1074_vm9, %v5690_v62  ;;  %v1527_v43 = vrot.slane %v5425_v20, 5 }
 0x13e   : > { %v5696_v29 = vpack.c.bf16 %v8833_v35, %v8833_v35  ;;  %v5697_v60 = vpack.c.bf16 %v8834_v25, %v8834_v25  ;;  %8835 = vst [vmem:[#allocation22_spill] sm:$0xff] %v6792_v42  ;;  %1098 = vst.msk [vmem:[#allocation3 + $0xfc] sm:$0xf] %vm1074_vm9, %v5691_v36  ;;  %v1324_v21 = vshrl.u32 %v5425_v20, 16  ;;  %v1327_v32 = vshll.u32 %v5425_v20, 16 }
 0x13f   : > { %1101 = vst.msk [vmem:[#allocation3 + $0x120] sm:$0xf] %vm1074_vm9, %v5694_v63  ;;  %1102 = vst.msk [vmem:[#allocation3 + $0x124] sm:$0xf] %vm1074_vm9, %v5695_v34  ;;  %v6798_v17 = vld [vmem:[#allocation3 + $0x70] sm:$0xf]  ;;  %1576 = vrot.lane.b32.xlu0 %v1527_v43, %s6212_s14  ;;  %v1529_v49 = vsel %vm1523_vm8, %v1527_v43, %v1528_v26 }
 0x140   : > { %8836 = vst [vmem:[#allocation23_spill] sm:$0xff] %v6798_v17  ;;  %1103 = vst.msk [vmem:[#allocation3 + $0x134] sm:$0xf] %vm1074_vm9, %v5696_v29  ;;  %v1530_v46 = vrot.slane %v5426_v15, 5  ;;  %v1340_v24 = vshrl.u32 %v6790_v28, 16  ;;  %v1343_v58 = vshll.u32 %v6790_v28, 16  ;;  %1578 = vrot.lane.b32.xlu1 %v1529_v49, %s6212_s14  ;;  %v6812_v41 = vcombine.low %v6792_v42, %v6798_v17 }
 0x141   : > { %1104 = vst.msk [vmem:[#allocation3 + $0x138] sm:$0xf] %vm1074_vm9, %v5697_v60  ;;  %v1332_v39 = vshrl.u32 %v5426_v15, 16  ;;  %v1326_v61 = vrot.slane %v1324_v21, 4  ;;  %v1329_v54 = vrot.slane %v1327_v32, 5  ;;  %v1335_v30 = vshll.u32 %v5426_v15, 16 }
 0x142   : > { %v1342_v37 = vrot.slane %v1340_v24, 4  ;;  %v1345_v27 = vrot.slane %v1343_v58, 5  ;;  %v6814_v38 = vld [vmem:[#allocation3 + $0x58] sm:$0xf]  ;;  %v6816_v33 = vld [vmem:[#allocation3 + $0x5c] sm:$0xf]  ;;  %v1532_v51 = vsel %vm1523_vm8, %v1530_v46, %v1531_v48 }
 0x143   : > { %8837 = vst [vmem:[#allocation24_spill] sm:$0xff] %v6814_v38  ;;  %v6027_v26 = vld [vmem:[#allocation3 + $0x4c] ss:$0 sps:$4 sm:$0x11]   ;;  %1580 = vrot.lane.b32.xlu0 %v1530_v46, %s6212_s14  ;;  %v1330_v0 = vor.u32 %v1329_v54, %v1326_v61  ;;  %v1334_v45 = vrot.slane %v1332_v39, 4  ;;  %v1337_v62 = vrot.slane %v1335_v30, 5  ;;  %v5428_v31 = vcombine.low %v6814_v38, %v6816_v33 }
 0x144   : > { %1582 = vrot.lane.b32.xlu1 %v1532_v51, %s6212_s14  ;;  %v1346_v36 = vor.u32 %v1345_v27, %v1342_v37  ;;  %v1356_v22 = vshrl.u32 %v6812_v41, 16  ;;  %v1359_v63 = vshll.u32 %v6812_v41, 16  ;;  %v1533_v47 = vrot.slane %v6790_v28, 5  ;;  %v6030_v15 = vld [vmem:[#allocation3 + $0x60] ss:$0 sps:$4 sm:$0x11]  }
 0x145   : > { %v1534_v34 = vrot.slane %v6027_v26, 5  ;;  %v1338_v20 = vor.u32 %v1337_v62, %v1334_v45  ;;  %v1348_v35 = vshrl.u32 %v5428_v31, 16  ;;  %v1351_v29 = vshll.u32 %v5428_v31, 16  ;;  %v6829_v43 = vld [vmem:[#allocation3 + $0x94] sm:$0xf] }
 0x146   : > { %v1358_v25 = vrot.slane %v1356_v22, 4  ;;  %v1361_v60 = vrot.slane %v1359_v63, 5  ;;  %8838 = vst [vmem:[#allocation25_spill] sm:$0xff] %v6829_v43  ;;  %v6831_v21 = vld [vmem:[#allocation3 + $0x98] sm:$0xf]  ;;  %v1536_v39 = vrot.slane %v5428_v31, 5 }
 0x147   : > { %1445 = vrot.lane.b32.xlu0 %v1330_v0, %s6213_s18  ;;  %v1535_v48 = vsel %vm1523_vm8, %v1533_v47, %v1534_v34  ;;  %8839 = vst [vmem:[#allocation26_spill] sm:$0xff] %v6831_v21  ;;  %v1350_v28 = vrot.slane %v1348_v35, 4  ;;  %v1353_v32 = vrot.slane %v1351_v29, 5  ;;  %v6837_v46 = vcombine.low %v6829_v43, %v6831_v21  ;;  %v6839_v24 = vld [vmem:[#allocation3 + $0x80] sm:$0xf] }
 0x148   : > { %1449 = vrot.lane.b32.xlu1 %v1346_v36, %s6213_s18  ;;  %v1362_v44 = vor.u32 %v1361_v60, %v1358_v25  ;;  %v6841_v58 = vld [vmem:[#allocation3 + $0x84] sm:$0xf]  ;;  %v1537_v49 = vrot.slane %v6030_v15, 5  ;;  %v6031_v61 = vld [vmem:[#allocation3 + $0x74] ss:$0 sps:$4 sm:$0x11]  }
 0x149   : > { %8840 = vst [vmem:[#allocation27_spill] sm:$0xff] %v6841_v58  ;;  %v1354_v54 = vor.u32 %v1353_v32, %v1350_v28  ;;  %v5430_v30 = vcombine.low %v6839_v24, %v6841_v58  ;;  %v1372_v37 = vshrl.u32 %v6837_v46, 16  ;;  %v1375_v27 = vshll.u32 %v6837_v46, 16  ;;  %v6034_v22 = vld [vmem:[#allocation3 + $0x88] ss:$0 sps:$4 sm:$0x11]  }
 0x14a   : > { %v1538_v51 = vsel %vm1523_vm8, %v1536_v39, %v1537_v49  ;;  %v1539_v26 = vrot.slane %v6812_v41, 5  ;;  %v1540_v0 = vrot.slane %v6031_v61, 5  ;;  %v6856_v34 = vld [vmem:[#allocation3 + $0xc0] sm:$0xf]  ;;  %v6864_v25 = vld [vmem:[#allocation3 + $0xa8] sm:$0xf] }
 0x14b   : > { %1447 = vrot.lane.b32.xlu0 %v1338_v20, %s6213_s18  ;;  %v1364_v45 = vshrl.u32 %v5430_v30, 16  ;;  %v1367_v62 = vshll.u32 %v5430_v30, 16  ;;  %v1374_v31 = vrot.slane %v1372_v37, 4  ;;  %v1377_v36 = vrot.slane %v1375_v27, 5  ;;  %8841 = vst [vmem:[#allocation28_spill] sm:$0xff] %v6856_v34 }
 0x14c   : > { %1586 = vrot.lane.b32.xlu1 %v1535_v48, %s6212_s14  ;;  %v1541_v63 = vsel %vm1523_vm8, %v1539_v26, %v1540_v0  ;;  %v6866_v60 = vld [vmem:[#allocation3 + $0xac] sm:$0xf]  ;;  %v1542_v15 = vrot.slane %v5430_v30, 5  ;;  %v1543_v48 = vrot.slane %v6034_v22, 5  ;;  %vm2084_vm10 = vcmask 1043456  }
 0x14d   : > { %v1366_v20 = vrot.slane %v1364_v45, 4  ;;  %v1369_v41 = vrot.slane %v1367_v62, 5  ;;  %v1378_v35 = vor.u32 %v1377_v36, %v1374_v31  ;;  %8842 = vst [vmem:[#allocation29_spill] sm:$0xff] %v6866_v60  ;;  %v6035_v28 = vld [vmem:[#allocation3 + $0x9c] ss:$0 sps:$4 sm:$0x11]  }
 0x14e   : > { %v1544_v61 = vsel %vm1523_vm8, %v1542_v15, %v1543_v48  ;;  %v1546_v37 = vrot.slane %v6035_v28, 5  ;;  %v6038_v0 = vld [vmem:[#allocation3 + $0xb0] ss:$0 sps:$4 sm:$0x11]   ;;  %v6879_v62 = vld [vmem:[#allocation3 + $0xe4] sm:$0xf] }
 0x14f   : > { %1584 = vrot.lane.b32.xlu0 %v1533_v47, %s6212_s14  ;;  %v6854_v47 = vld [vmem:[#allocation3 + $0xbc] sm:$0xf]  ;;  %v1370_v32 = vor.u32 %v1369_v41, %v1366_v20  ;;  %v6881_v31 = vld [vmem:[#allocation3 + $0xe8] sm:$0xf]  ;;  %v6889_v20 = vld [vmem:[#allocation3 + $0xd0] sm:$0xf] }
 0x150   : > { %1453 = vrot.lane.b32.xlu1 %v1362_v44, %s6213_s18  ;;  %v6862_v29 = vcombine.low %v6854_v47, %v6856_v34  ;;  %v5432_v44 = vcombine.low %v6864_v25, %v6866_v60  ;;  %8843 = vst [vmem:[#allocation30_spill] sm:$0xff] %v6881_v31  ;;  %8844 = vst [vmem:[#allocation31_spill] sm:$0xff] %v6889_v20  ;;  %v6891_v41 = vld [vmem:[#allocation3 + $0xd4] sm:$0xf]  ;;  %v1549_v48 = vrot.slane %v6038_v0, 5  ;;  %vm1636_vm11 = vcmask 64512  }
 0x151   : > { %8845 = vst [vmem:[#allocation32_spill] sm:$0xff] %v6891_v41  ;;  %v6039_v28 = vld [vmem:[#allocation3 + $0xc4] ss:$0 sps:$4 sm:$0x11]   ;;  %v2282_v13 = vld [vmem:[#allocation3 + $0x1c] sm:$0xf] }
 0x152   : > { %v1391_v49 = vshll.u32 %v6862_v29, 16  ;;  %v1380_v30 = vshrl.u32 %v5432_v44, 16  ;;  %v1383_v27 = vshll.u32 %v5432_v44, 16  ;;  %v1154_v9 = vld [vmem:[#allocation3 + $0x138] sm:$0xf]  ;;  %vm1717_vm12 = vcmask 130048  }
 0x153   : > { %1451 = vrot.lane.b32.xlu0 %v1354_v54, %s6213_s18  ;;  %v1545_v54 = vrot.slane %v6837_v46, 5  ;;  %v3520_v16 = vld [vmem:[#allocation3 + $0x48] sm:$0xf]  ;;  %v7073_v21 = vld [vmem:[#allocation3 + $0x40] sm:$0x8]  ;;  %vm2035_vm14 = vcmask 195584  }
 0x154   : > { %1590 = vrot.lane.b32.xlu1 %v1538_v51, %s6212_s14  ;;  %v1382_v36 = vrot.slane %v1380_v30, 4  ;;  %v1385_v46 = vrot.slane %v1383_v27, 5  ;;  %v1552_v30 = vrot.slane %v6039_v28, 5  ;;  %vm1782_vm13 = vsmask.f32 4352 }
 0x155   : > { %v1547_v45 = vsel %vm1523_vm8, %v1545_v54, %v1546_v37  ;;  %v1551_v37 = vrot.slane %v6862_v29, 5  ;;  %v7213_v38 = vld [vmem:[#allocation3 + $0x7c] sm:$0x8] }
 0x157   : > { %1588 = vrot.lane.b32.xlu0 %v1536_v39, %s6212_s14  ;;  %v1388_v39 = vshrl.u32 %v6862_v29, 16  ;;  %v1553_v0 = vsel %vm1523_vm8, %v1551_v37, %v1552_v30  ;;  %v6043_v30 = vld [vmem:[#allocation3 + $0xec] ss:$0 sps:$4 sm:$0x11]  }
 0x158   : > { %1594 = vrot.lane.b32.xlu1 %v1541_v63, %s6212_s14  ;;  %v6887_v63 = vcombine.low %v6879_v62, %v6881_v31 }
 0x159   : > { %v1390_v51 = vrot.slane %v1388_v39, 4 }
 0x15a   : > { %v1404_v39 = vshrl.u32 %v6887_v63, 16 }
 0x15b   : > { %1592 = vrot.lane.b32.xlu0 %v1539_v26, %s6212_s14  ;;  %v1393_v26 = vrot.slane %v1391_v49, 5  ;;  %v1407_v49 = vshll.u32 %v6887_v63, 16 }
 0x15c   : > { %1457 = vrot.lane.b32.xlu1 %v1378_v35, %s6213_s18  ;;  %v1548_v35 = vrot.slane %v5432_v44, 5 }
 0x15d   : > { %v1394_v22 = vor.u32 %v1393_v26, %v1390_v51  ;;  %v1406_v51 = vrot.slane %v1404_v39, 4  ;;  %v1409_v26 = vrot.slane %v1407_v49, 5  ;;  %v6914_v39 = vld [vmem:[#allocation3 + $0xfc] sm:$0xf] }
 0x15f   : > { %1455 = vrot.lane.b32.xlu0 %v1370_v32, %s6213_s18  ;;  %v1386_v32 = vor.u32 %v1385_v46, %v1382_v36  ;;  %v6904_v36 = vld [vmem:[#allocation3 + $0x110] sm:$0xf] }
 0x160   : > { %1598 = vrot.lane.b32.xlu1 %v1544_v61, %s6212_s14  ;;  %v1550_v61 = vsel %vm1523_vm8, %v1548_v35, %v1549_v48  ;;  %8846 = vst [vmem:[#allocation33_spill] sm:$0xff] %v6904_v36  ;;  %v1410_v48 = vor.u32 %v1409_v26, %v1406_v51 }
 0x163   : > { %1596 = vrot.lane.b32.xlu0 %v1542_v15, %s6212_s14  ;;  %v5434_v15 = vcombine.low %v6889_v20, %v6891_v41 }
 0x164   : > { %1602 = vrot.lane.b32.xlu1 %v1547_v45, %s6212_s14  ;;  %v1147_v45 = vld [vmem:[#allocation3 + $0x10c] sm:$0xf] }
 0x165   : > { %v1396_v44 = vshrl.u32 %v5434_v15, 16  ;;  %v1399_v27 = vshll.u32 %v5434_v15, 16  ;;  %v6912_v28 = vcombine.low %v1147_v45, %v6904_v36  ;;  %v1554_v49 = vrot.slane %v5434_v15, 5  ;;  %v6046_v45 = vld [vmem:[#allocation3 + $0x100] ss:$0 sps:$4 sm:$0x11]  }
 0x167   : > { %1600 = vrot.lane.b32.xlu0 %v1545_v54, %s6212_s14  ;;  %v6042_v54 = vld [vmem:[#allocation3 + $0xd8] ss:$0 sps:$4 sm:$0x11]   ;;  %v1398_v46 = vrot.slane %v1396_v44, 4  ;;  %v1401_v29 = vrot.slane %v1399_v27, 5  ;;  %v1420_v51 = vshrl.u32 %v6912_v28, 16 }
 0x168   : > { %1461 = vrot.lane.b32.xlu1 %v1394_v22, %s6213_s18  ;;  %v6066_v22 = vld [vmem:[%s8711_s2 + $0x8] ss:$0 sps:$4 sm:$0xff]   ;;  %v1423_v26 = vshll.u32 %v6912_v28, 16 }
 0x169   : > { %5971 = vmatprep.subr.msk.bf16.mxu1 %vm2084_vm10, %v6066_v22  ;;  %v1402_v44 = vor.u32 %v1401_v29, %v1398_v46 }
 0x16a   : > { %v1425_v46 = vrot.slane %v1423_v26, 5  ;;  %v6047_v26 = vld [vmem:[#allocation3 + $0x114] ss:$0 sps:$4 sm:$0x11]  }
 0x16b   : > { %1459 = vrot.lane.b32.xlu0 %v1386_v32, %s6213_s18  ;;  %v1144_v32 = vld [vmem:[#allocation3 + $0xf8] sm:$0xf] }
 0x16c   : > { %1606 = vrot.lane.b32.xlu1 %v1550_v61, %s6212_s14  ;;  %v1555_v61 = vrot.slane %v6042_v54, 5  ;;  %v5436_v27 = vcombine.low %v1144_v32, %v6914_v39  ;;  %v1557_v54 = vrot.slane %v6887_v63, 5  ;;  %v6928_v32 = vld [vmem:[#allocation3 + $0x34] sm:$0xf]  ;;  %v1561_v63 = vrot.slane %v6046_v45, 5 }
 0x16e   : > { %v1556_v15 = vsel %vm1523_vm8, %v1554_v49, %v1555_v61 }
 0x16f   : > { %1604 = vrot.lane.b32.xlu0 %v1548_v35, %s6212_s14  ;;  %v2086_v35 = vsel %vm2084_vm10, %v6066_v22, 0  ;;  %v1412_v22 = vshrl.u32 %v5436_v27, 16 }
 0x170   : > { %1610 = vrot.lane.b32.xlu1 %v1553_v0, %s6212_s14  ;;  %5828 = vmatpush3.bf16.msra.mxu1 %v2086_v35  ;;  %v1558_v0 = vrot.slane %v6043_v30, 5  ;;  %v1415_v35 = vshll.u32 %v5436_v27, 16 }
 0x171   : > { %v1414_v61 = vrot.slane %v1412_v22, 4 }
 0x172   : > { %v1559_v29 = vsel %vm1523_vm8, %v1557_v54, %v1558_v0  ;;  %v1417_v11 = vrot.slane %v1415_v35, 5  ;;  %v1563_v35 = vrot.slane %v6912_v28, 5 }
 0x173   : > { %1608 = vrot.lane.b32.xlu0 %v1551_v37, %s6212_s14  ;;  %v1422_v37 = vrot.slane %v1420_v51, 4  ;;  %v1560_v51 = vrot.slane %v5436_v27, 5 }
 0x174   : > { %1465 = vrot.lane.b32.xlu1 %v1410_v48, %s6213_s18  ;;  %v2285_v48 = vld [vmem:[#allocation3 + $0x30] sm:$0xf]  ;;  %v1418_v0 = vor.u32 %v1417_v11, %v1414_v61 }
 0x175   : > { %v1426_v30 = vor.u32 %v1425_v46, %v1422_v37  ;;  %v1562_v22 = vsel %vm1523_vm8, %v1560_v51, %v1561_v63  ;;  %v1564_v37 = vrot.slane %v6047_v26, 5  ;;  %v1150_v46 = vld [vmem:[#allocation3 + $0x120] sm:$0xf] }
 0x177   : > { %1463 = vrot.lane.b32.xlu0 %v1402_v44, %s6213_s18  ;;  %v6933_v44 = vcombine.low %v2285_v48, %v6928_v32  ;;  %v6050_v48 = vld [vmem:[#allocation3 + $0x24] ss:$0 sps:$4 sm:$0x11]   ;;  %v1565_v61 = vsel %vm1523_vm8, %v1563_v35, %v1564_v37 }
 0x178   : > { %1614 = vrot.lane.b32.xlu1 %v1556_v15, %s6212_s14  ;;  %v6935_v15 = vld [vmem:[#allocation3 + $0x20] sm:$0xf] }
 0x179   : > { %v5506_v7 = vcombine.low %v2282_v13, %v6935_v15  ;;  %v2501_v45 = vshll.u32 %v6933_v44, 16 }
 0x17b   : > { %1612 = vrot.lane.b32.xlu0 %v1554_v49, %s6212_s14  ;;  %v2498_v49 = vshrl.u32 %v6933_v44, 16  ;;  %v2490_v27 = vshrl.u32 %v5506_v7, 16  ;;  %v2503_v13 = vrot.slane %v2501_v45, 5 }
 0x17c   : > { %1618 = vrot.lane.b32.xlu1 %v1559_v29, %s6212_s14  ;;  %v2493_v29 = vshll.u32 %v5506_v7, 16 }
 0x17d   : > { %v2500_v11 = vrot.slane %v2498_v49, 4  ;;  %v2492_v28 = vrot.slane %v2490_v27, 4  ;;  %v2698_v49 = vrot.slane %v6050_v48, 5  ;;  %v6054_v48 = vld [vmem:[#allocation3 + $0x128] ss:$0 sps:$4 sm:$0x11]  }
 0x17e   : > { %v2495_v26 = vrot.slane %v2493_v29, 5  ;;  %v6053_v29 = vld [vmem:[#allocation3 + $0x38] ss:$0 sps:$4 sm:$0x11]  }
 0x17f   : > { %1616 = vrot.lane.b32.xlu0 %v1557_v54, %s6212_s14  ;;  %v6945_v54 = vld [vmem:[#allocation3 + $0x124] sm:$0xf] }
 0x180   : > { %1469 = vrot.lane.b32.xlu1 %v1426_v30, %s6213_s18  ;;  %8847 = vst [vmem:[#allocation34_spill] sm:$0xff] %v6945_v54  ;;  %v1153_v30 = vld [vmem:[#allocation3 + $0x134] sm:$0xf]  ;;  %v6950_v63 = vcombine.low %v1150_v46, %v6945_v54  ;;  %v2496_v5 = vor.u32 %v2495_v26, %v2492_v28  ;;  %v7071_v54 = vld [vmem:[#allocation3 + $0x18] sm:$0x8] }
 0x181   : > { %v6954_v3 = vcombine.low %v1153_v30, %v1154_v9  ;;  %v2291_v9 = vld [vmem:[#allocation3 + $0x58] sm:$0xf]  ;;  %v2289_v30 = vld [vmem:[#allocation3 + $0x48] sm:$0xf] }
 0x182   : > { %v1428_v45 = vshrl.u32 %v6950_v63, 16  ;;  %v1431_v37 = vshll.u32 %v6950_v63, 16 }
 0x183   : > { %1467 = vrot.lane.b32.xlu0 %v1418_v0, %s6213_s18  ;;  %v2504_v0 = vor.u32 %v2503_v13, %v2500_v11  ;;  %v1439_v46 = vshll.u32 %v6954_v3, 16  ;;  %v2292_v11 = vld [vmem:[#allocation3 + $0x5c] sm:$0xf] }
 0x184   : > { %1622 = vrot.lane.b32.xlu1 %v1562_v22, %s6212_s14  ;;  %v2697_v22 = vrot.slane %v5506_v7, 5  ;;  %v1430_v7 = vrot.slane %v1428_v45, 4  ;;  %v1433_v13 = vrot.slane %v1431_v37, 5  ;;  %v6966_v14 = vcombine.low %v2291_v9, %v2292_v11 }
 0x185   : > { %v1441_v26 = vrot.slane %v1439_v46, 5  ;;  %v2701_v37 = vrot.slane %v6053_v29, 5  ;;  %v6976_v46 = vld [vmem:[#allocation3 + $0x4c] ss:$0 sps:$4 sm:$0x11]   ;;  %v1566_v9 = vrot.slane %v6950_v63, 5 }
 0x186   : > { %v2699_v27 = vsel %vm1523_vm8, %v2697_v22, %v2698_v49  ;;  %v3519_v49 = vld [vmem:[#allocation3 + $0x44] sm:$0xf]  ;;  %v1434_v45 = vor.u32 %v1433_v13, %v1430_v7  ;;  %v1567_v11 = vrot.slane %v6054_v48, 5  ;;  %v8851_v8 = vrot.slane %v6976_v46, 5 }
 0x187   : > { %1620 = vrot.lane.b32.xlu0 %v1560_v51, %s6212_s14  ;;  %v1436_v51 = vshrl.u32 %v6954_v3, 16  ;;  %v2298_v13 = vld [vmem:[#allocation3 + $0x84] sm:$0xf] }
 0x188   : > { %1626 = vrot.lane.b32.xlu1 %v1565_v61, %s6212_s14  ;;  %v2288_v61 = vld [vmem:[#allocation3 + $0x44] sm:$0xf] }
 0x189   : > { %v1438_v28 = vrot.slane %v1436_v51, 4  ;;  %v6968_v10 = vcombine.low %v2288_v61, %v2289_v30  ;;  %v2514_v51 = vshrl.u32 %v6966_v14, 16  ;;  %v2297_v61 = vld [vmem:[#allocation3 + $0x80] sm:$0xf] }
 0x18b   : > { %1624 = vrot.lane.b32.xlu0 %v1563_v35, %s6212_s14  ;;  %v2700_v35 = vrot.slane %v6933_v44, 5  ;;  %v1442_v44 = vor.u32 %v1441_v26, %v1438_v28  ;;  %v2506_v29 = vshrl.u32 %v6968_v10, 16  ;;  %v2509_v7 = vshll.u32 %v6968_v10, 16  ;;  %v3517_v28 = vld [vmem:[#allocation3 + $0x34] sm:$0xf] }
 0x18c   : > { %2619 = vrot.lane.b32.xlu1 %v2504_v0, %s6213_s18  ;;  %v6055_v0 = vld [vmem:[#allocation3 + $0x13c] ss:$0 sps:$4 sm:$0x11]   ;;  %v6989_v48 = vrot.slane %v2514_v51, 4  ;;  %v2295_v26 = vld [vmem:[#allocation3 + $0x70] sm:$0xf] }
 0x18d   : > { %v1570_v30 = vrot.slane %v6055_v0, 5  ;;  %v2702_v63 = vsel %vm1523_vm8, %v2700_v35, %v2701_v37  ;;  %v6992_v0 = vld [vmem:[#allocation3 + $0x60] ss:$0 sps:$4 sm:$0x11]   ;;  %v8852_v51 = vrot.slane %v6968_v10, 5 }
 0x18f   : > { %2617 = vrot.lane.b32.xlu0 %v2496_v5, %s6213_s18  ;;  %v6096_v5 = vld [vmem:[%s8711_s2 + $0xc] sm:$0xff]  }
 0x190   : > { %2747 = vrot.lane.b32.xlu1 %v2699_v27, %s6212_s14  ;;  %v6978_v27 = vcombine.low %v3519_v49, %v3520_v16  ;;  %5861 = vmatprep.subr.bf16.mxu0 %v6096_v5  ;;  %v3516_v16 = vld [vmem:[#allocation3 + $0x30] sm:$0xf] }
 0x191   : > { %5862 = vmatpush3.bf16.msra.mxu0 %v6096_v5  ;;  %v1568_v5 = vsel %vm1523_vm8, %v1566_v9, %v1567_v11  ;;  %v6997_v12 = vcombine.low %v3516_v16, %v3517_v28  ;;  %v2294_v11 = vld [vmem:[#allocation3 + $0x6c] sm:$0xf]  ;;  %v6098_v16 = vld [vmem:[%s8711_s2 + $0x14] ss:$0 sps:$4 sm:$0xff]  }
 0x192   : > { %v3732_v49 = vshrl.u32 %v6978_v27, 16  ;;  %5972 = vmatprep.subr.msk.bf16.mxu0 %vm2084_vm10, %v6098_v16  ;;  %v3255_v2 = vsel %vm2084_vm10, %v6098_v16, 0  ;;  %v3526_v16 = vld [vmem:[#allocation3 + $0x70] sm:$0xf] }
 0x193   : > { %2745 = vrot.lane.b32.xlu0 %v2697_v22, %s6212_s14  ;;  %v2517_v22 = vshll.u32 %v6966_v14, 16 }
 0x194   : > { %2749 = vrot.lane.b32.xlu1 %v2700_v35, %s6212_s14  ;;  %v8848_v35 = vrot.slane %v6954_v3, 5  ;;  %v7022_v4 = vrot.slane %v3732_v49, 4  ;;  %v7049_v49 = vld [vmem:[#allocation3 + $0x88] ss:$0 sps:$4 sm:$0x11]  }
 0x195   : > { %v2519_v28 = vrot.slane %v2517_v22, 5  ;;  %v3724_v22 = vshrl.u32 %v6997_v12, 16  ;;  %5864 = vmatpush3.bf16.msra.mxu0 %v3255_v2 }
 0x196   : > { %v1571_v37 = vsel %vm1523_vm8, %v8848_v35, %v1570_v30  ;;  %v7016_v30 = vcombine.low %v2297_v61, %v2298_v13  ;;  %v2511_v35 = vrot.slane %v2509_v7, 5  ;;  %v7030_v61 = vld [vmem:[#allocation3 + $0x4] sm:$0x8]  ;;  %v3727_v7 = vshll.u32 %v6997_v12, 16 }
 0x197   : > { %1471 = vrot.lane.b32.xlu0 %v1434_v45, %s6213_s18  ;;  %v3735_v45 = vshll.u32 %v6978_v27, 16  ;;  %v7067_v18 = vrot.slane %v3724_v22, 4  ;;  %v7086_v22 = vld [vmem:[#allocation3 + $0x2c] sm:$0x8] }
 0x198   : > { %1473 = vrot.lane.b32.xlu1 %v1442_v44, %s6213_s18  ;;  %8849 = vst [vmem:[#allocation35_spill] sm:$0xff] %v7016_v30  ;;  %v2707_v44 = vrot.slane %v6992_v0, 5  ;;  %v3932_v0 = vrot.slane %v6999_v6, 5  ;;  %v2530_v2 = vshrl.u32 %v7016_v30, 16 }
 0x199   : > { %v7024_v19 = vrot.slane %v3735_v45, 5  ;;  %v7045_v6 = vld [vmem:[#allocation3 + $0x74] ss:$0 sps:$4 sm:$0x11]  }
 0x19b   : > { %2751 = vrot.lane.b32.xlu0 %v2702_v63, %s6212_s14  ;;  %v7013_v63 = vrot.slane %v2506_v29, 4  ;;  %v7027_v29 = vcombine.low %v2294_v11, %v2295_v26  ;;  %v2520_v26 = vor.u32 %v2519_v28, %v6989_v48  ;;  %v3525_v11 = vld [vmem:[#allocation3 + $0x6c] sm:$0xf]  ;;  %v8850_v48 = vrot.slane %v6954_v3, 5 }
 0x19c   : > { %1630 = vrot.lane.b32.xlu1 %v1568_v5, %s6212_s14  ;;  %v7035_v5 = vld [vmem:[#allocation3 + $0x4c] ss:$0 sps:$4 sm:$0x11]   ;;  %v7069_v28 = vrot.slane %v3727_v7, 5  ;;  %v7075_v58 = vcombine.low %v3525_v11, %v3526_v16  ;;  %v2705_v3 = vsel %vm1523_vm8, %v8852_v51, %v8851_v8  ;;  %v3523_v11 = vld [vmem:[#allocation3 + $0x5c] sm:$0xf]  ;;  %v3738_v34 = vor.u32 %v7024_v19, %v7022_v4 }
 0x19d   : > { %v2522_v45 = vshrl.u32 %v7027_v29, 16  ;;  %v2525_v13 = vshll.u32 %v7027_v29, 16  ;;  %v7089_v16 = vrot.slane %v2530_v2, 4  ;;  %v7095_v8 = vld [vmem:[#allocation3 + $0x68] sm:$0x8] }
 0x19e   : > { %8853 = vst [vmem:[#allocation36_spill] sm:$0xff] %v7095_v8  ;;  %v7097_v51 = vld [vmem:[#allocation3 + $0x54] sm:$0x8]  ;;  %v3748_v60 = vshrl.u32 %v7075_v58, 16  ;;  %v3751_v20 = vshll.u32 %v7075_v58, 16 }
 0x19f   : > { %1628 = vrot.lane.b32.xlu0 %v1566_v9, %s6212_s14  ;;  %v2533_v9 = vshll.u32 %v7016_v30, 16  ;;  %8854 = vst [vmem:[#allocation37_spill] sm:$0xff] %v7097_v51  ;;  %v7104_v7 = vrot.slane %v2525_v13, 5  ;;  %v8856_v13 = vrot.slane %v6997_v12, 5  ;;  %v2300_v19 = vld [vmem:[#allocation3 + $0x94] sm:$0xf] }
 0x1a0   : > { %1634 = vrot.lane.b32.xlu1 %v1571_v37, %s6212_s14  ;;  %v2512_v37 = vor.u32 %v2511_v35, %v7013_v63  ;;  %v5392_v63 = vcombine.low %v7030_v61, %v6642_v53  ;;  %v3935_v35 = vrot.slane %v7035_v5, 5  ;;  %v8855_v53 = vrot.slane %v6966_v14, 5  ;;  %v2301_v2 = vld [vmem:[#allocation3 + $0x98] sm:$0xf] }
 0x1a1   : > { %v7102_v5 = vrot.slane %v2522_v45, 4  ;;  %v2304_v45 = vld [vmem:[#allocation3 + $0xac] sm:$0xf] }
 0x1a2   : > { %v2708_v61 = vsel %vm1523_vm8, %v8855_v53, %v2707_v44  ;;  %v2303_v44 = vld [vmem:[#allocation3 + $0xa8] sm:$0xf]  ;;  %v7120_v53 = vsel %vm1523_vm8, %v8856_v13, %v3932_v0  ;;  %v8860_v13 = vrot.slane %v6968_v10, 5  ;;  %v8862_v10 = vrot.slane %v6966_v14, 5 }
 0x1a3   : > { %1632 = vrot.lane.b32.xlu0 %v8850_v48, %s6212_s14  ;;  %v3522_v48 = vld [vmem:[#allocation3 + $0x58] sm:$0xf]  ;;  %v7155_v42 = vcombine.low %v2303_v44, %v2304_v45 }
 0x1a4   : > { %2623 = vrot.lane.b32.xlu1 %v2520_v26, %s6213_s18  ;;  %v7091_v26 = vrot.slane %v2533_v9, 5  ;;  %v7107_v9 = vld [vmem:[#allocation3 + $0x60] ss:$0 sps:$4 sm:$0x11]   ;;  %v7114_v17 = vcombine.low %v3522_v48, %v3523_v11  ;;  %v3730_v11 = vor.u32 %v7069_v28, %v7067_v18  ;;  %v8858_v18 = vmax.f32 %v6525_v55, 0.0 }
 0x1a6   : > { %v1573_v46 = vpop.permute.xlu1 %1572  ;;  %v5698_v28 = vpack.c.bf16 %v8858_v18, %v8858_v18  ;;  %v3740_v41 = vshrl.u32 %v7114_v17, 16 }
 0x1a7   : > { %2621 = vrot.lane.b32.xlu0 %v2512_v37, %s6213_s18  ;;  %v3743_v37 = vshll.u32 %v7114_v17, 16 }
 0x1a8   : > { %2755 = vrot.lane.b32.xlu1 %v2705_v3, %s6212_s14  ;;  %v8857_v3 = vrot.slane %v6978_v27, 5  ;;  %1105 = vst.msk [vmem:[#allocation3 + $0x148] sm:$0xf] %vm1074_vm9, %v5698_v28  ;;  %v8866_v28 = vrot.slane %v7049_v49, 5  ;;  %v7210_v8 = vrot.slane %v3740_v41, 4 }
 0x1aa   : > { %v7133_v0 = vsel %vm1523_vm8, %v8857_v3, %v3935_v35  ;;  %v8859_v35 = vmax.f32 %v6543_v59, 0.0  ;;  %v1444_v4 = vpop.permute.xlu0 %1443  ;;  %v1575_v31 = vpop.permute.xlu1 %1574  ;;  %v8861_v59 = vcombine.low %v6644_v52, %v6644_v52  ;;  %v7173_v52 = vcombine.low %v2300_v19, %v2301_v2 }
 0x1ab   : > { %2753 = vrot.lane.b32.xlu0 %v8860_v13, %s6212_s14  ;;  %v1639_v55 = vsel %vm1636_vm11, %v5392_v63, %v1444_v4  ;;  %v7169_v63 = vrot.slane %v3748_v60, 4  ;;  %v2546_v60 = vshrl.u32 %v7155_v42, 16 }
 0x1ac   : > { %v5699_v3 = vpack.c.bf16 %v8859_v35, %v8859_v35  ;;  %v1641_v18 = vsel %vm1636_vm11, %v8861_v59, %v1444_v4  ;;  %2759 = vrot.lane.b32.xlu1 %v2708_v61, %s6212_s14  ;;  %v1719_v44 = vsel %vm1717_vm12, %v1639_v55, %v1573_v46  ;;  %v7171_v35 = vld [vmem:[#allocation3 + $0x74] ss:$0 sps:$4 sm:$0x11]   ;;  %v7180_v46 = vrot.slane %v3751_v20, 5 }
 0x1ad   : > { %v1721_v45 = vsel %vm1717_vm12, %v1641_v18, %v1575_v31  ;;  %v1783_v4 = vshrl.u32 %v1719_v44, 16  ;;  %v1786_v61 = vshll.u32 %v1719_v44, 16  ;;  %v2549_v31 = vshll.u32 %v7155_v42, 16  ;;  %v7185_v44 = vld [vmem:[#allocation3 + $0x90] sm:$0x8] }
 0x1ae   : > { %1106 = vst.msk [vmem:[#allocation3 + $0x14c] sm:$0xf] %vm1074_vm9, %v5699_v3  ;;  %v1790_v59 = vshrl.u32 %v1721_v45, 16  ;;  %v1793_v48 = vshll.u32 %v1721_v45, 16  ;;  %8863 = vst [vmem:[#allocation38_spill] sm:$0xff] %v7185_v44  ;;  %v8865_v20 = vrot.slane %v7027_v29, 5 }
 0x1af   : > { %2757 = vrot.lane.b32.xlu0 %v8862_v10, %s6212_s14  ;;  %v6076_v3 = vld [vmem:[#allocation3 + $0x9c] ss:$0 sps:$4 sm:$0x11]   ;;  %v1785_v55 = vrot.slane %v1783_v4, 3  ;;  %v1788_v18 = vrot.slane %v1786_v61, 4  ;;  %v8864_v10 = vrot.slane %v7045_v6, 5 }
 0x1b0   : > { %v1792_v2 = vrot.slane %v1790_v59, 3  ;;  %v1795_v19 = vrot.slane %v1793_v48, 4  ;;  %3853 = vrot.lane.b32.xlu1 %v3738_v34, %s6213_s18  ;;  %v8867_v59 = vrot.slane %v7016_v30, 5  ;;  %v2538_v34 = vshrl.u32 %v7173_v52, 16  ;;  %v7208_v6 = vld [vmem:[%s8711_s2 + $0x18] sm:$0xff]  }
 0x1b1   : > { %v7187_v14 = vpop.permute.xlu0 %1576  ;;  %v7194_v45 = vsel %vm1523_vm8, %v8865_v20, %v8864_v10  ;;  %v2541_v4 = vshll.u32 %v7173_v52, 16  ;;  %v6077_v61 = vld [vmem:[#allocation3 + $0xb0] ss:$0 sps:$4 sm:$0x11]   ;;  %v1789_v10 = vor.u32 %v1788_v18, %v1785_v55  ;;  %v3941_v49 = vrot.slane %v7171_v35, 5  ;;  %5897 = vmatprep.subr.bf16.mxu1 %v7208_v6 }
 0x1b2   : > { %v7201_v48 = vsel %vm1523_vm8, %v8867_v59, %v8866_v28  ;;  %v1579_v13 = vpop.permute.xlu1 %1578  ;;  %v1796_v20 = vor.u32 %v1795_v19, %v1792_v2  ;;  %v7218_v59 = vrot.slane %v3743_v37, 5  ;;  %v3531_v55 = vld [vmem:[#allocation3 + $0x94] sm:$0xf]  ;;  %v3532_v2 = vld [vmem:[#allocation3 + $0x98] sm:$0xf]  ;;  %v7229_v35 = vrot.slane %v2549_v31, 5 }
 0x1b3   : > { %3851 = vrot.lane.b32.xlu0 %v3730_v11, %s6213_s18  ;;  %v7227_v11 = vrot.slane %v2546_v60, 4  ;;  %v2716_v37 = vrot.slane %v6076_v3, 5  ;;  %v7231_v19 = vld [vmem:[#allocation3 + $0xb8] sm:$0x8]  ;;  %v7234_v51 = vrot.slane %v2538_v34, 4  ;;  %v7236_v28 = vrot.slane %v2541_v4, 5 }
 0x1b4   : > { %3981 = vrot.lane.b32.xlu1 %v7120_v53, %s6212_s14  ;;  %v1797_v41 = vsel %vm1782_vm13, %v1789_v10, %v1796_v20  ;;  %v2719_v43 = vrot.slane %v6077_v61, 5  ;;  %v7239_v53 = vld [vmem:[#allocation3 + $0xa4] sm:$0x8]  ;;  %v7243_v31 = vcombine.low %v3531_v55, %v3532_v2  ;;  %v3528_v3 = vld [vmem:[#allocation3 + $0x80] sm:$0xf]  ;;  %v8868_v61 = vrot.slane %v6997_v12, 5 }
 0x1b5   : > { %v1581_v18 = vpop.permute.xlu0 %1580  ;;  %5829 = vmatprep.mubr.msk.bf16.mxu1 %vm2035_vm14, %v1797_v41  ;;  %v3529_v20 = vld [vmem:[#allocation3 + $0x84] sm:$0xf]  ;;  %v7245_v44 = vld [vmem:[#allocation3 + $0xe0] sm:$0x8]  ;;  %v8869_v2 = vrot.slane %v7107_v9, 5  ;;  %v8870_v60 = vrot.slane %v7114_v17, 5 }
 0x1b6   : > { %v1583_v10 = vpop.permute.xlu1 %1582  ;;  %v8871_v34 = vrot.slane %v7075_v58, 5  ;;  %v7290_v12 = vcombine.low %v3528_v3, %v3529_v20  ;;  %v3764_v36 = vshrl.u32 %v7243_v31, 16 }
 0x1b7   : > { %3979 = vrot.lane.b32.xlu0 %v8868_v61, %s6212_s14  ;;  %v7263_v30 = vsel %vm1523_vm8, %v8870_v60, %v8869_v2  ;;  %v8872_v61 = vrot.slane %v7173_v52, 5  ;;  %v8875_v2 = vcombine.low %v6749_v23, %v6749_v23  ;;  %v8877_v23 = vrot.slane %v6978_v27, 5 }
 0x1b8   : > { %v7268_v4 = vsel %vm1523_vm8, %v8871_v34, %v3941_v49  ;;  %3985 = vrot.lane.b32.xlu1 %v7133_v0, %s6212_s14  ;;  %v8873_v0 = vrot.slane %v7155_v42, 5  ;;  %v8881_v27 = vcombine.low %v6770_v57, %v6770_v57 }
 0x1b9   : > { %v7277_v9 = vsel %vm1523_vm8, %v8872_v61, %v2716_v37  ;;  %v1446_v55 = vpop.permute.xlu0 %1445  ;;  %v8874_v61 = vcombine.low %v7071_v54, %v6747_v40  ;;  %v8876_v40 = vcombine.low %v6774_v56, %v6774_v56  ;;  %v3756_v56 = vshrl.u32 %v7290_v12, 16 }
 0x1ba   : > { %v7288_v34 = vsel %vm1523_vm8, %v8873_v0, %v2719_v43  ;;  %v1646_v49 = vsel %vm1636_vm11, %v8875_v2, %v1446_v55  ;;  %v1450_v41 = vpop.permute.xlu1 %1449 }
 0x1bb   : > { %v1644_v60 = vsel %vm1636_vm11, %v8874_v61, %v1446_v55  ;;  %v1725_v20 = vsel %vm1717_vm12, %v1646_v49, %v1579_v13  ;;  %v1656_v54 = vsel %vm1636_vm11, %v8876_v40, %v1450_v41  ;;  %3983 = vrot.lane.b32.xlu0 %v8877_v23, %s6212_s14  ;;  %v3767_v55 = vshll.u32 %v7243_v31, 16 }
 0x1bc   : > { %v1723_v3 = vsel %vm1717_vm12, %v1644_v60, %v7187_v14  ;;  %v1805_v61 = vshrl.u32 %v1725_v20, 16  ;;  %v1808_v43 = vshll.u32 %v1725_v20, 16  ;;  %v8878_v14 = vor.u32 %v7091_v26, %v7089_v16  ;;  %v7329_v26 = vld [vmem:[#allocation3 + $0x88] ss:$0 sps:$4 sm:$0x11]  }
 0x1bd   : > { %v1798_v2 = vshrl.u32 %v1723_v3, 16  ;;  %v1801_v0 = vshll.u32 %v1723_v3, 16  ;;  %v1448_v13 = vpop.permute.xlu0 %1447  ;;  %v8879_v20 = vcombine.low %v7073_v21, %v6772_v1  ;;  %v8880_v60 = vcombine.low %v7086_v22, %v6751_v50 }
 0x1be   : > { %2627 = vrot.lane.b32.xlu1 %v8878_v14, %s6213_s18  ;;  %v1807_v3 = vrot.slane %v1805_v61, 3  ;;  %v1587_v16 = vpop.permute.xlu1 %1586  ;;  %v1810_v14 = vrot.slane %v1808_v43, 4  ;;  %v8882_v1 = vor.u32 %v7104_v7, %v7102_v5  ;;  %v7360_v5 = vrot.slane %v3764_v36, 4  ;;  %v8885_v36 = vld [vmem:[#allocation35_spill] sm:$0xff] }
 0x1bf   : > { %v1800_v40 = vrot.slane %v1798_v2, 3  ;;  %v1803_v23 = vrot.slane %v1801_v0, 4  ;;  %v1654_v37 = vsel %vm1636_vm11, %v8879_v20, %v1450_v41  ;;  %v1649_v49 = vsel %vm1636_vm11, %v8880_v60, %v1448_v13 }
 0x1c0   : > { %v1651_v2 = vsel %vm1636_vm11, %v8881_v27, %v1448_v13  ;;  %v1733_v0 = vsel %vm1717_vm12, %v1656_v54, %v1587_v16  ;;  %2625 = vrot.lane.b32.xlu0 %v8882_v1, %s6213_s18  ;;  %v1727_v21 = vsel %vm1717_vm12, %v1649_v49, %v1581_v18  ;;  %v3944_v18 = vrot.slane %v7329_v26, 5 }
 0x1c1   : > { %v1729_v41 = vsel %vm1717_vm12, %v1651_v2, %v1583_v10  ;;  %v1835_v43 = vshrl.u32 %v1733_v0, 16  ;;  %v1838_v50 = vshll.u32 %v1733_v0, 16  ;;  %v1813_v22 = vshrl.u32 %v1727_v21, 16  ;;  %v1585_v60 = vpop.permute.xlu0 %1584  ;;  %v7353_v10 = vld [vmem:[#allocation3 + $0x9c] ss:$0 sps:$4 sm:$0x11]  }
 0x1c2   : > { %2763 = vrot.lane.b32.xlu1 %v7194_v45, %s6212_s14  ;;  %v1816_v57 = vshll.u32 %v1727_v21, 16  ;;  %v1820_v61 = vshrl.u32 %v1729_v41, 16  ;;  %v1823_v13 = vshll.u32 %v1729_v41, 16  ;;  %v1731_v54 = vsel %vm1717_vm12, %v1654_v37, %v1585_v60  ;;  %v7349_v27 = vpop.permute.xlu1 %1453 }
 0x1c3   : > { %v1804_v7 = vor.u32 %v1803_v23, %v1800_v40  ;;  %v1815_v49 = vrot.slane %v1813_v22, 3  ;;  %v8883_v2 = vrot.slane %v7027_v29, 5  ;;  %v1837_v0 = vrot.slane %v1835_v43, 3  ;;  %v6123_v22 = vld [vmem:[%s8711_s2 + $0x20] ss:$0 sps:$4 sm:$0xff]  }
 0x1c4   : > { %v1818_v20 = vrot.slane %v1816_v57, 4  ;;  %v1822_v16 = vrot.slane %v1820_v61, 3  ;;  %v1825_v45 = vrot.slane %v1823_v13, 4  ;;  %v1840_v1 = vrot.slane %v1838_v50, 4 }
 0x1c5   : > { %2761 = vrot.lane.b32.xlu0 %v8883_v2, %s6212_s14  ;;  %v1828_v37 = vshrl.u32 %v1731_v54, 16  ;;  %v1831_v21 = vshll.u32 %v1731_v54, 16  ;;  %v1811_v40 = vor.u32 %v1810_v14, %v1807_v3  ;;  %v1452_v23 = vpop.permute.xlu0 %1451  ;;  %v8884_v43 = vcombine.low %v6816_v33, %v6816_v33  ;;  %v8888_v2 = vld [vmem:[#allocation23_spill] sm:$0xff] }
 0x1c6   : > { %2767 = vrot.lane.b32.xlu1 %v7201_v48, %s6212_s14  ;;  %v1819_v41 = vor.u32 %v1818_v20, %v1815_v49  ;;  %v1826_v60 = vor.u32 %v1825_v45, %v1822_v16  ;;  %v1591_v61 = vpop.permute.xlu1 %1590  ;;  %v7369_v13 = vrot.slane %v3767_v55, 5  ;;  %v8886_v14 = vrot.slane %v8885_v36, 5 }
 0x1c7   : > { %v1830_v57 = vrot.slane %v1828_v37, 3  ;;  %v1833_v29 = vrot.slane %v1831_v21, 4  ;;  %v1661_v50 = vsel %vm1636_vm11, %v8884_v43, %v1452_v23  ;;  %v1812_v48 = vsel %vm1782_vm13, %v1804_v7, %v1811_v40  ;;  %v7383_v7 = vld [vmem:[#allocation3 + $0xcc] sm:$0x8] }
 0x1c8   : > { %v1737_v3 = vsel %vm1717_vm12, %v1661_v50, %v1591_v61  ;;  %v1827_v54 = vsel %vm1782_vm13, %v1819_v41, %v1826_v60  ;;  %v3947_v49 = vrot.slane %v7353_v10, 5  ;;  %v1841_v20 = vor.u32 %v1840_v1, %v1837_v0  ;;  %5830 = vmatmul.mubr.msk.bf16.vlgmr.msra.gmra.mrb[16].mxu1 %vm2035_vm14, %v1812_v48  ;;  %v8890_v10 = vld [vmem:[#allocation37_spill] sm:$0xff]  ;;  %v8891_v0 = vld [vmem:[#allocation24_spill] sm:$0xff] }
 0x1c9   : > { %2765 = vrot.lane.b32.xlu0 %v8886_v14, %s6212_s14  ;;  %v1834_v16 = vor.u32 %v1833_v29, %v1830_v57  ;;  %v1850_v33 = vshrl.u32 %v1737_v3, 16  ;;  %v1853_v45 = vshll.u32 %v1737_v3, 16  ;;  %v8887_v55 = vor.u32 %v7180_v46, %v7169_v63  ;;  %5833 = vmatprep.mubr.msk.bf16.mxu1 %vm2035_vm14, %v1827_v54  ;;  %v1589_v41 = vpop.permute.xlu0 %1588  ;;  %v2309_v46 = vld [vmem:[#allocation3 + $0xd0] sm:$0xf]  ;;  %v2310_v60 = vld [vmem:[#allocation3 + $0xd4] sm:$0xf] }
 0x1ca   : > { %v8889_v37 = vcombine.low %v8888_v2, %v8888_v2  ;;  %v8892_v1 = vcombine.low %v8890_v10, %v8891_v0  ;;  %v7397_v63 = vrot.slane %v3756_v56, 4  ;;  %5898 = vmatpush3.bf16.msra.mxu1 %v7208_v6  ;;  %v4489_v57 = vsel %vm2084_vm10, %v6123_v22, 0  ;;  %v1595_v61 = vpop.permute.xlu1 %1594  ;;  %v8894_v6 = vld [vmem:[#allocation31_spill] sm:$0xff]  ;;  %v2306_v54 = vld [vmem:[#allocation3 + $0xbc] sm:$0xf]  ;;  %v8896_v2 = vld [vmem:[#allocation36_spill] sm:$0xff] }
 0x1cb   : > { %3857 = vrot.lane.b32.xlu1 %v8887_v55, %s6213_s18  ;;  %v1852_v29 = vrot.slane %v1850_v33, 3  ;;  %v1855_v43 = vrot.slane %v1853_v45, 4  ;;  %5973 = vmatprep.subr.msk.bf16.mxu1 %vm2084_vm10, %v6123_v22  ;;  %v8893_v36 = vor.u32 %v7218_v59, %v7210_v8  ;;  %v2307_v33 = vld [vmem:[#allocation3 + $0xc0] sm:$0xf]  ;;  %v8895_v22 = vshll.u32 %v7290_v12, 16  ;;  %v8897_v8 = vld [vmem:[#allocation22_spill] sm:$0xff] }
 0x1cc   : > { %v1666_v21 = vsel %vm1636_vm11, %v8889_v37, %v7349_v27  ;;  %v1659_v40 = vsel %vm1636_vm11, %v8892_v1, %v1452_v23  ;;  %v1842_v23 = vsel %vm1782_vm13, %v1834_v16, %v1841_v20  ;;  %v7417_v16 = vcombine.low %v2309_v46, %v2310_v60 }
 0x1cd   : > { %v1735_v50 = vsel %vm1717_vm12, %v1659_v40, %v1589_v41  ;;  %v1741_v56 = vsel %vm1717_vm12, %v1666_v21, %v1595_v61  ;;  %3855 = vrot.lane.b32.xlu0 %v8893_v36, %s6213_s18  ;;  %v7415_v20 = vrot.slane %v8895_v22, 5  ;;  %v8898_v59 = vcombine.low %v8896_v2, %v8897_v8  ;;  %v1593_v0 = vpop.permute.xlu0 %1592 }
 0x1ce   : > { %v1843_v48 = vshrl.u32 %v1735_v50, 16  ;;  %v1846_v3 = vshll.u32 %v1735_v50, 16  ;;  %v1865_v45 = vshrl.u32 %v1741_v56, 16  ;;  %v1868_v55 = vshll.u32 %v1741_v56, 16  ;;  %5900 = vmatpush3.bf16.msra.mxu1 %v4489_v57  ;;  %v7432_v60 = vpop.permute.xlu1 %1457 }
 0x1cf   : > { %3989 = vrot.lane.b32.xlu1 %v7263_v30, %s6212_s14  ;;  %v1664_v37 = vsel %vm1636_vm11, %v8898_v59, %v7349_v27  ;;  %v8899_v1 = vrot.slane %v7290_v12, 5  ;;  %v1856_v40 = vor.u32 %v1855_v43, %v1852_v29  ;;  %v7434_v50 = vcombine.low %v2306_v54, %v2307_v33 }
 0x1d0   : > { %v1845_v21 = vrot.slane %v1843_v48, 3  ;;  %v1848_v10 = vrot.slane %v1846_v3, 4  ;;  %v1867_v41 = vrot.slane %v1865_v45, 3  ;;  %v1739_v46 = vsel %vm1717_vm12, %v1664_v37, %v1593_v0  ;;  %5834 = vmatmul.mubr.msk.bf16.gmra.mrb[20].mxu1 %vm2035_vm14, %v1842_v23  ;;  %v7456_v45 = vld [vmem:[#allocation3 + $0xd8] ss:$0 sps:$4 sm:$0x11]  }
 0x1d1   : > { %v7429_v30 = vsel %vm1523_vm8, %v8899_v1, %v3944_v18  ;;  %v1870_v61 = vrot.slane %v1868_v55, 4  ;;  %v1858_v48 = vshrl.u32 %v1739_v46, 16  ;;  %v1861_v3 = vshll.u32 %v1739_v46, 16  ;;  %v1456_v54 = vpop.permute.xlu0 %1455  ;;  %v8902_v55 = vld [vmem:[#allocation27_spill] sm:$0xff] }
 0x1d2   : > { %v1849_v27 = vor.u32 %v1848_v10, %v1845_v21  ;;  %v8900_v26 = vrot.slane %v7114_v17, 5  ;;  %v8901_v29 = vrot.slane %v7243_v31, 5  ;;  %v2562_v56 = vshrl.u32 %v7417_v16, 16  ;;  %v7452_v17 = vld [vmem:[#allocation3 + $0xc4] ss:$0 sps:$4 sm:$0x11]  }
 0x1d3   : > { %3993 = vrot.lane.b32.xlu1 %v7268_v4, %s6212_s14  ;;  %v1860_v36 = vrot.slane %v1858_v48, 3  ;;  %v1863_v23 = vrot.slane %v1861_v3, 4  ;;  %v2565_v33 = vshll.u32 %v7417_v16, 16  ;;  %v8903_v22 = vcombine.low %v8902_v55, %v8902_v55 }
 0x1d4   : > { %3987 = vrot.lane.b32.xlu0 %v8900_v26, %s6212_s14  ;;  %v7449_v43 = vsel %vm1523_vm8, %v8901_v29, %v3947_v49  ;;  %v1857_v4 = vsel %vm1782_vm13, %v1849_v27, %v1856_v40  ;;  %v1599_v49 = vpop.permute.xlu1 %1598  ;;  %v2554_v8 = vshrl.u32 %v7434_v50, 16  ;;  %v2557_v59 = vshll.u32 %v7434_v50, 16 }
 0x1d5   : > { %v1671_v2 = vsel %vm1636_vm11, %v8903_v22, %v1456_v54  ;;  %5837 = vmatprep.mubr.msk.bf16.mxu1 %vm2035_vm14, %v1857_v4  ;;  %v8781_v37 = vrot.slane %v7417_v16, 5  ;;  %v1871_v21 = vor.u32 %v1870_v61, %v1867_v41  ;;  %v1864_v10 = vor.u32 %v1863_v23, %v1860_v36  ;;  %v7478_v61 = vld [vmem:[#allocation3 + $0x108] sm:$0x8]  ;;  %v1597_v29 = vpop.permute.xlu0 %1596 }
 0x1d6   : > { %v1745_v0 = vsel %vm1717_vm12, %v1671_v2, %v1599_v49  ;;  %v8904_v1 = vrot.slane %v7075_v58, 5  ;;  %v2721_v40 = vrot.slane %v7434_v50, 5  ;;  %v8905_v48 = vor.u32 %v7229_v35, %v7227_v11  ;;  %v7488_v11 = vld [vmem:[#allocation3 + $0xf4] sm:$0x8]  ;;  %v8907_v35 = vld [vmem:[#allocation26_spill] sm:$0xff] }
 0x1d7   : > { %v1880_v46 = vshrl.u32 %v1745_v0, 16  ;;  %v1883_v27 = vshll.u32 %v1745_v0, 16  ;;  %v7475_v3 = vrot.slane %v2562_v56, 4  ;;  %v2722_v41 = vrot.slane %v7452_v17, 5  ;;  %v3538_v2 = vld [vmem:[#allocation3 + $0xc0] sm:$0xf] }
 0x1d8   : > { %3991 = vrot.lane.b32.xlu0 %v8904_v1, %s6212_s14  ;;  %2631 = vrot.lane.b32.xlu1 %v8905_v48, %s6213_s18  ;;  %v8906_v26 = vcombine.low %v7213_v38, %v6839_v24  ;;  %v1872_v36 = vsel %vm1782_vm13, %v1864_v10, %v1871_v21  ;;  %v7485_v23 = vrot.slane %v2565_v33, 5  ;;  %v2725_v4 = vrot.slane %v7456_v45, 5  ;;  %v1603_v24 = vpop.permute.xlu1 %1602  ;;  %v7501_v10 = vld [vmem:[#allocation3 + $0x10c] sm:$0xf]  ;;  %v3534_v1 = vld [vmem:[#allocation3 + $0xa8] sm:$0xf] }
 0x1d9   : > { %v8908_v56 = vcombine.low %v8907_v35, %v8907_v35  ;;  %v1882_v55 = vrot.slane %v1880_v46, 3  ;;  %v1885_v22 = vrot.slane %v1883_v27, 4  ;;  %v8909_v45 = vor.u32 %v7236_v28, %v7234_v51  ;;  %v3535_v46 = vld [vmem:[#allocation3 + $0xac] sm:$0xf]  ;;  %5838 = vmatmul.mubr.msk.bf16.gmra.mrb[24].mxu1 %vm2035_vm14, %v1872_v36  ;;  %v8910_v28 = vld [vmem:[#allocation38_spill] sm:$0xff] }
 0x1da   : > { %v1669_v58 = vsel %vm1636_vm11, %v8906_v26, %v1456_v54  ;;  %v3537_v54 = vld [vmem:[#allocation3 + $0xbc] sm:$0xf]  ;;  %v7508_v26 = vrot.slane %v2554_v8, 4  ;;  %v7522_v0 = vcombine.low %v3534_v1, %v3535_v46  ;;  %v7542_v46 = vld [vmem:[#allocation3 + $0xb0] ss:$0 sps:$4 sm:$0x11]  }
 0x1db   : > { %v1676_v17 = vsel %vm1636_vm11, %v8908_v56, %v7432_v60  ;;  %v1743_v38 = vsel %vm1717_vm12, %v1669_v58, %v1597_v29  ;;  %v7510_v58 = vld [vmem:[#allocation3 + $0xf8] sm:$0xf]  ;;  %v8911_v29 = vld [vmem:[#allocation25_spill] sm:$0xff]  ;;  %v7519_v36 = vcombine.low %v3537_v54, %v3538_v2 }
 0x1dc   : > { %v1873_v49 = vshrl.u32 %v1743_v38, 16  ;;  %v1876_v33 = vshll.u32 %v1743_v38, 16  ;;  %v1749_v21 = vsel %vm1717_vm12, %v1676_v17, %v1603_v24  ;;  %2629 = vrot.lane.b32.xlu0 %v8909_v45, %s6213_s18  ;;  %2771 = vrot.lane.b32.xlu1 %v7277_v9, %s6212_s14  ;;  %v8912_v35 = vcombine.low %v8910_v28, %v8911_v29  ;;  %v1601_v24 = vpop.permute.xlu0 %1600  ;;  %v1462_v45 = vpop.permute.xlu1 %1461  ;;  %v8914_v54 = vld [vmem:[#allocation34_spill] sm:$0xff] }
 0x1dd   : > { %v1895_v27 = vshrl.u32 %v1749_v21, 16  ;;  %v1898_v48 = vshll.u32 %v1749_v21, 16  ;;  %v1886_v21 = vor.u32 %v1885_v22, %v1882_v55  ;;  %v8913_v28 = vrot.slane %v7173_v52, 5 }
 0x1de   : > { %v1674_v56 = vsel %vm1636_vm11, %v8912_v35, %v7432_v60  ;;  %v1875_v17 = vrot.slane %v1873_v49, 3  ;;  %v1878_v38 = vrot.slane %v1876_v33, 4  ;;  %v2568_v60 = vor.u32 %v7485_v23, %v7475_v3 }
 0x1df   : > { %v1897_v9 = vrot.slane %v1895_v27, 3  ;;  %v1747_v8 = vsel %vm1717_vm12, %v1674_v56, %v1601_v24  ;;  %v1900_v51 = vrot.slane %v1898_v48, 4  ;;  %v7531_v55 = vrot.slane %v2557_v59, 5  ;;  %v8915_v27 = vld [vmem:[#allocation29_spill] sm:$0xff] }
 0x1e0   : > { %v1879_v14 = vor.u32 %v1878_v38, %v1875_v17  ;;  %v1888_v57 = vshrl.u32 %v1747_v8, 16  ;;  %v1891_v18 = vshll.u32 %v1747_v8, 16  ;;  %2769 = vrot.lane.b32.xlu0 %v8913_v28, %s6212_s14  ;;  %2775 = vrot.lane.b32.xlu1 %v7288_v34, %s6212_s14  ;;  %v7536_v22 = vsel %vm1523_vm8, %v2721_v40, %v2722_v41  ;;  %v1460_v52 = vpop.permute.xlu0 %1459  ;;  %v1607_v29 = vpop.permute.xlu1 %1606  ;;  %v7561_v24 = vld [vmem:[#allocation3 + $0xc4] ss:$0 sps:$4 sm:$0x11]  }
 0x1e1   : > { %v3780_v34 = vshrl.u32 %v7519_v36, 16  ;;  %v8916_v59 = vcombine.low %v8915_v27, %v8915_v27  ;;  %v1901_v41 = vor.u32 %v1900_v51, %v1897_v9  ;;  %v8917_v17 = vrot.slane %v7155_v42, 5 }
 0x1e2   : > { %v1890_v49 = vrot.slane %v1888_v57, 3  ;;  %v1893_v33 = vrot.slane %v1891_v18, 4  ;;  %v1887_v1 = vsel %vm1782_vm13, %v1879_v14, %v1886_v21  ;;  %v7552_v57 = vsel %vm1523_vm8, %v8781_v37, %v2725_v4 }
 0x1e3   : > { %v1681_v48 = vsel %vm1636_vm11, %v8916_v59, %v1460_v52  ;;  %5841 = vmatprep.mubr.msk.bf16.mxu1 %vm2035_vm14, %v1887_v1  ;;  %v3783_v18 = vshll.u32 %v7519_v36, 16  ;;  %v3952_v14 = vrot.slane %v7519_v36, 5  ;;  %v3772_v38 = vshrl.u32 %v7522_v0, 16  ;;  %v8920_v59 = vld [vmem:[#allocation28_spill] sm:$0xff] }
 0x1e4   : > { %v1894_v35 = vor.u32 %v1893_v33, %v1890_v49  ;;  %v1753_v56 = vsel %vm1717_vm12, %v1681_v48, %v1607_v29  ;;  %2773 = vrot.lane.b32.xlu0 %v8917_v17, %s6212_s14  ;;  %v8918_v4 = vor.u32 %v7369_v13, %v7360_v5  ;;  %v3775_v51 = vshll.u32 %v7522_v0, 16  ;;  %v1605_v49 = vpop.permute.xlu0 %1604  ;;  %v1611_v17 = vpop.permute.xlu1 %1610 }
 0x1e5   : > { %v1910_v21 = vshrl.u32 %v1753_v56, 16  ;;  %v1913_v8 = vshll.u32 %v1753_v56, 16  ;;  %v3949_v9 = vrot.slane %v7522_v0, 5  ;;  %v8919_v28 = vcombine.low %v7239_v53, %v6864_v25 }
 0x1e6   : > { %3861 = vrot.lane.b32.xlu1 %v8918_v4, %s6213_s18  ;;  %v1902_v33 = vsel %vm1782_vm13, %v1894_v35, %v1901_v41  ;;  %v7574_v1 = vrot.slane %v3780_v34, 4  ;;  %v3950_v27 = vrot.slane %v7542_v46, 5  ;;  %v8921_v5 = vcombine.low %v8920_v59, %v8920_v59  ;;  %v7588_v46 = vld [vmem:[#allocation3 + $0x2c] sm:$0x8]  ;;  %v2315_v41 = vld [vmem:[#allocation3 + $0xf8] sm:$0xf] }
 0x1e7   : > { %v1679_v42 = vsel %vm1636_vm11, %v8919_v28, %v1460_v52  ;;  %v1912_v48 = vrot.slane %v1910_v21, 3  ;;  %v1915_v29 = vrot.slane %v1913_v8, 4  ;;  %5842 = vmatmul.mubr.msk.bf16.gmra.mrb[28].mxu1 %vm2035_vm14, %v1902_v33  ;;  %v8922_v34 = vor.u32 %v7415_v20, %v7397_v63  ;;  %v2316_v35 = vld [vmem:[#allocation3 + $0xfc] sm:$0xf]  ;;  %v7590_v21 = vld [vmem:[#allocation3 + $0x138] sm:$0xf] }
 0x1e8   : > { %v1686_v13 = vsel %vm1636_vm11, %v8921_v5, %v1462_v45  ;;  %v1751_v56 = vsel %vm1717_vm12, %v1679_v42, %v1605_v49  ;;  %v7596_v42 = vrot.slane %v3783_v18, 5  ;;  %v3953_v49 = vrot.slane %v7561_v24, 5  ;;  %v7599_v63 = vld [vmem:[#allocation3 + $0x18] sm:$0x8]  ;;  %v1466_v24 = vpop.permute.xlu1 %1465 }
 0x1e9   : > { %v1903_v25 = vshrl.u32 %v1751_v56, 16  ;;  %v1906_v53 = vshll.u32 %v1751_v56, 16  ;;  %v1757_v52 = vsel %vm1717_vm12, %v1686_v13, %v1611_v17  ;;  %3859 = vrot.lane.b32.xlu0 %v8922_v34, %s6213_s18  ;;  %v8923_v20 = vcombine.low %v7231_v19, %v6854_v47  ;;  %v1609_v13 = vpop.permute.xlu0 %1608  ;;  %v2312_v17 = vld [vmem:[#allocation3 + $0xe4] sm:$0xf] }
 0x1ea   : > { %v1925_v4 = vshrl.u32 %v1757_v52, 16  ;;  %v1928_v28 = vshll.u32 %v1757_v52, 16  ;;  %3997 = vrot.lane.b32.xlu1 %v7429_v30, %s6212_s14  ;;  %v2560_v56 = vor.u32 %v7531_v55, %v7508_v26  ;;  %v2313_v52 = vld [vmem:[#allocation3 + $0xe8] sm:$0xf]  ;;  %v1916_v30 = vor.u32 %v1915_v29, %v1912_v48  ;;  %v7617_v55 = vld [vmem:[#allocation3 + $0x30] sm:$0xf] }
 0x1eb   : > { %v1684_v33 = vsel %vm1636_vm11, %v8923_v20, %v1462_v45  ;;  %v1905_v59 = vrot.slane %v1903_v25, 3  ;;  %v1908_v5 = vrot.slane %v1906_v53, 4  ;;  %v7608_v8 = vcombine.low %v2315_v41, %v2316_v35  ;;  %v7621_v29 = vld [vmem:[#allocation3 + $0x1c] sm:$0xf] }
 0x1ec   : > { %v1927_v18 = vrot.slane %v1925_v4, 3  ;;  %v1755_v34 = vsel %vm1717_vm12, %v1684_v33, %v1609_v13  ;;  %v1930_v37 = vrot.slane %v1928_v28, 4  ;;  %v8924_v45 = vrot.slane %v7290_v12, 5  ;;  %v1615_v33 = vpop.permute.xlu1 %1614 }
 0x1ed   : > { %v1909_v2 = vor.u32 %v1908_v5, %v1905_v59  ;;  %v1918_v47 = vshrl.u32 %v1755_v34, 16  ;;  %v1921_v19 = vshll.u32 %v1755_v34, 16  ;;  %v7615_v26 = vrot.slane %v3772_v38, 4  ;;  %v1464_v35 = vpop.permute.xlu0 %1463  ;;  %v8925_v38 = vld [vmem:[#allocation32_spill] sm:$0xff] }
 0x1ee   : > { %3995 = vrot.lane.b32.xlu0 %v8924_v45, %s6212_s14  ;;  %4001 = vrot.lane.b32.xlu1 %v7449_v43, %s6212_s14  ;;  %v5476_v48 = vcombine.low %v7588_v46, %v7617_v55  ;;  %v5474_v25 = vcombine.low %v7599_v63, %v7621_v29  ;;  %v7625_v53 = vcombine.low %v2312_v17, %v2313_v52  ;;  %v7628_v43 = vrot.slane %v3775_v51, 5  ;;  %v7652_v34 = vld [vmem:[#allocation3 + $0xec] ss:$0 sps:$4 sm:$0x11]   ;;  %v7846_v63 = vld [vmem:[#allocation3 + $0x40] sm:$0x8] }
 0x1ef   : > { %v1920_v41 = vrot.slane %v1918_v47, 3  ;;  %v1923_v12 = vrot.slane %v1921_v19, 4  ;;  %v1917_v4 = vsel %vm1782_vm13, %v1909_v2, %v1916_v30  ;;  %v8926_v28 = vcombine.low %v8925_v38, %v8925_v38  ;;  %v7854_v46 = vld [vmem:[#allocation3 + $0x128] ss:$0 sps:$4 sm:$0x11]  }
 0x1f0   : > { %5845 = vmatprep.mubr.msk.bf16.mxu1 %vm2035_vm14, %v1917_v4  ;;  %v3786_v59 = vor.u32 %v7596_v42, %v7574_v1  ;;  %v7640_v5 = vsel %vm1523_vm8, %v3949_v9, %v3950_v27  ;;  %v7645_v2 = vsel %vm1523_vm8, %v3952_v14, %v3953_v49  ;;  %v1931_v51 = vor.u32 %v1930_v37, %v1927_v18  ;;  %v8929_v4 = vld [vmem:[#allocation30_spill] sm:$0xff]  ;;  %v8935_v42 = vld [vmem:[#allocation33_spill] sm:$0xff]  ;;  %v2322_v1 = vld [vmem:[#allocation3 + $0x124] sm:$0xf] }
 0x1f1   : > { %v1691_v20 = vsel %vm1636_vm11, %v8926_v28, %v1464_v35  ;;  %v1924_v13 = vor.u32 %v1923_v12, %v1920_v41  ;;  %v8927_v52 = vrot.slane %v7243_v31, 5  ;;  %v2578_v30 = vshrl.u32 %v7608_v8, 16  ;;  %v1613_v19 = vpop.permute.xlu0 %1612 }
 0x1f2   : > { %v1761_v17 = vsel %vm1717_vm12, %v1691_v20, %v1615_v33  ;;  %2635 = vrot.lane.b32.xlu1 %v2568_v60, %s6213_s18  ;;  %v2581_v37 = vshll.u32 %v7608_v8, 16  ;;  %v2570_v49 = vshrl.u32 %v7625_v53, 16  ;;  %v8928_v18 = vcombine.low %v7383_v7, %v8894_v6  ;;  %v1619_v20 = vpop.permute.xlu1 %1618 }
 0x1f3   : > { %3999 = vrot.lane.b32.xlu0 %v8927_v52, %s6212_s14  ;;  %v1940_v47 = vshrl.u32 %v1761_v17, 16  ;;  %v1943_v27 = vshll.u32 %v1761_v17, 16  ;;  %v1932_v45 = vsel %vm1782_vm13, %v1924_v13, %v1931_v51  ;;  %v2573_v41 = vshll.u32 %v7625_v53, 16  ;;  %v7676_v51 = vld [vmem:[#allocation3 + $0x11c] sm:$0x8] }
 0x1f4   : > { %v1689_v31 = vsel %vm1636_vm11, %v8928_v18, %v1464_v35  ;;  %v8782_v12 = vrot.slane %v7625_v53, 5  ;;  %v8930_v3 = vcombine.low %v8929_v4, %v8929_v4  ;;  %5846 = vmatmul.mubr.msk.bf16.gmra.mrb[32].mxu1 %vm2035_vm14, %v1932_v45  ;;  %v2728_v33 = vrot.slane %v7652_v34, 5  ;;  %v7692_v4 = vld [vmem:[#allocation3 + $0x100] ss:$0 sps:$4 sm:$0x11]  }
 0x1f5   : > { %v1942_v60 = vrot.slane %v1940_v47, 3  ;;  %v1945_v38 = vrot.slane %v1943_v27, 4  ;;  %v1759_v28 = vsel %vm1717_vm12, %v1689_v31, %v1613_v19  ;;  %v7680_v52 = vrot.slane %v2578_v30, 4  ;;  %v7684_v27 = vld [vmem:[#allocation3 + $0x130] sm:$0x8]  ;;  %v1617_v19 = vpop.permute.xlu0 %1616 }
 0x1f6   : > { %v1696_v23 = vsel %vm1636_vm11, %v8930_v3, %v1466_v24  ;;  %v1933_v7 = vshrl.u32 %v1759_v28, 16  ;;  %v1936_v6 = vshll.u32 %v1759_v28, 16  ;;  %2779 = vrot.lane.b32.xlu1 %v7536_v22, %s6212_s14  ;;  %v7682_v47 = vrot.slane %v2581_v37, 5  ;;  %v7695_v37 = vpop.permute.xlu1 %1469  ;;  %v3543_v28 = vld [vmem:[#allocation3 + $0xe4] sm:$0xf] }
 0x1f7   : > { %v1765_v35 = vsel %vm1717_vm12, %v1696_v23, %v1619_v20  ;;  %2633 = vrot.lane.b32.xlu0 %v2560_v56, %s6213_s18  ;;  %v8931_v18 = vcombine.low %v7245_v44, %v6879_v62  ;;  %v7690_v45 = vrot.slane %v2570_v49, 4  ;;  %v1946_v3 = vor.u32 %v1945_v38, %v1942_v60  ;;  %v3544_v20 = vld [vmem:[#allocation3 + $0xe8] sm:$0xf]  ;;  %v7706_v60 = vld [vmem:[#allocation3 + $0x120] sm:$0xf] }
 0x1f8   : > { %v1955_v13 = vshrl.u32 %v1765_v35, 16  ;;  %v1958_v17 = vshll.u32 %v1765_v35, 16  ;;  %v1935_v31 = vrot.slane %v1933_v7, 3  ;;  %v1938_v34 = vrot.slane %v1936_v6, 4  ;;  %v7710_v38 = vld [vmem:[#allocation3 + $0x134] sm:$0xf] }
 0x1f9   : > { %v1694_v56 = vsel %vm1636_vm11, %v8931_v18, %v1466_v24  ;;  %v7697_v23 = vrot.slane %v2573_v41, 5  ;;  %v3778_v49 = vor.u32 %v7628_v43, %v7615_v26  ;;  %v2730_v35 = vrot.slane %v7608_v8, 5  ;;  %v3540_v26 = vld [vmem:[#allocation3 + $0xd0] sm:$0xf]  ;;  %v3541_v43 = vld [vmem:[#allocation3 + $0xd4] sm:$0xf] }
 0x1fa   : > { %v1957_v22 = vrot.slane %v1955_v13, 3  ;;  %v1763_v30 = vsel %vm1717_vm12, %v1694_v56, %v1617_v19  ;;  %v1939_v62 = vor.u32 %v1938_v34, %v1935_v31  ;;  %v1960_v44 = vrot.slane %v1958_v17, 4  ;;  %2783 = vrot.lane.b32.xlu1 %v7552_v57, %s6212_s14  ;;  %v1468_v13 = vpop.permute.xlu0 %1467  ;;  %v1623_v31 = vpop.permute.xlu1 %1622 }
 0x1fb   : > { %v1948_v24 = vshrl.u32 %v1763_v30, 16  ;;  %v1951_v7 = vshll.u32 %v1763_v30, 16  ;;  %2777 = vrot.lane.b32.xlu0 %v2721_v40, %s6212_s14  ;;  %v7716_v17 = vcombine.low %v3543_v28, %v3544_v20  ;;  %v8932_v18 = vcombine.low %v6914_v39, %v6914_v39 }
 0x1fc   : > { %v1947_v57 = vsel %vm1782_vm13, %v1939_v62, %v1946_v3  ;;  %v2584_v34 = vor.u32 %v7682_v47, %v7680_v52  ;;  %v7728_v19 = vsel %vm1523_vm8, %v8782_v12, %v2728_v33  ;;  %v2731_v3 = vrot.slane %v7692_v4, 5  ;;  %v7743_v4 = vld [vmem:[#allocation3 + $0x5c] sm:$0xf] }
 0x1fd   : > { %v1950_v50 = vrot.slane %v1948_v24, 3  ;;  %v1953_v40 = vrot.slane %v1951_v7, 4  ;;  %v1701_v56 = vsel %vm1636_vm11, %v8932_v18, %v1468_v13  ;;  %5849 = vmatprep.mubr.msk.bf16.mxu1 %vm2035_vm14, %v1947_v57  ;;  %v1961_v30 = vor.u32 %v1960_v44, %v1957_v22  ;;  %v7753_v18 = vld [vmem:[#allocation3 + $0x48] sm:$0xf]  ;;  %v2321_v22 = vld [vmem:[#allocation3 + $0x120] sm:$0xf] }
 0x1fe   : > { %v1769_v20 = vsel %vm1717_vm12, %v1701_v56, %v1623_v31  ;;  %v8933_v39 = vrot.slane %v7417_v16, 5  ;;  %v2576_v62 = vor.u32 %v7697_v23, %v7690_v45  ;;  %3865 = vrot.lane.b32.xlu1 %v3786_v59, %s6213_s18  ;;  %v7741_v33 = vcombine.low %v3540_v26, %v3541_v43  ;;  %v6100_v56 = vld [vmem:[#allocation3 + $0xd8] ss:$0 sps:$4 sm:$0x11]   ;;  %v7863_v45 = vld [vmem:[#allocation3 + $0x44] sm:$0xf] }
 0x1ff   : > { %v1954_v28 = vor.u32 %v1953_v40, %v1950_v50  ;;  %v1970_v24 = vshrl.u32 %v1769_v20, 16  ;;  %v1973_v7 = vshll.u32 %v1769_v20, 16  ;;  %v8934_v16 = vcombine.low %v7488_v11, %v7510_v58  ;;  %v1621_v50 = vpop.permute.xlu0 %1620 }
 0x200   : > { %2781 = vrot.lane.b32.xlu0 %v8933_v39, %s6212_s14  ;;  %v3796_v57 = vshrl.u32 %v7716_v17, 16  ;;  %v8936_v59 = vcombine.low %v8935_v42, %v8935_v42  ;;  %v3799_v20 = vshll.u32 %v7716_v17, 16  ;;  %v5478_v23 = vcombine.low %v7846_v63, %v7863_v45 }
 0x201   : > { %v1699_v44 = vsel %vm1636_vm11, %v8934_v16, %v1468_v13  ;;  %v1962_v40 = vsel %vm1782_vm13, %v1954_v28, %v1961_v30  ;;  %v1972_v43 = vrot.slane %v1970_v24, 3  ;;  %v1975_v11 = vrot.slane %v1973_v7, 4  ;;  %v1627_v13 = vpop.permute.xlu1 %1626 }
 0x202   : > { %v1706_v26 = vsel %vm1636_vm11, %v8936_v59, %v7695_v37  ;;  %v1767_v58 = vsel %vm1717_vm12, %v1699_v44, %v1621_v50  ;;  %5850 = vmatmul.mubr.msk.bf16.gmra.mrb[36].mxu1 %vm2035_vm14, %v1962_v40  ;;  %4005 = vrot.lane.b32.xlu1 %v7640_v5, %s6212_s14  ;;  %v3788_v24 = vshrl.u32 %v7741_v33, 16  ;;  %v3791_v7 = vshll.u32 %v7741_v33, 16 }
 0x203   : > { %v1963_v31 = vshrl.u32 %v1767_v58, 16  ;;  %v1966_v30 = vshll.u32 %v1767_v58, 16  ;;  %v1773_v28 = vsel %vm1717_vm12, %v1706_v26, %v1627_v13  ;;  %v8937_v44 = vcombine.low %v7478_v61, %v7501_v10  ;;  %v7783_v10 = vld [vmem:[#allocation3 + $0x54] sm:$0x8] }
 0x204   : > { %3863 = vrot.lane.b32.xlu0 %v3778_v49, %s6213_s18  ;;  %v1985_v39 = vshrl.u32 %v1773_v28, 16  ;;  %v1988_v16 = vshll.u32 %v1773_v28, 16  ;;  %v1625_v49 = vpop.permute.xlu0 %1624  ;;  %v3955_v59 = vrot.slane %v7741_v33, 5  ;;  %v1976_v26 = vor.u32 %v1975_v11, %v1972_v43 }
 0x205   : > { %v1704_v50 = vsel %vm1636_vm11, %v8937_v44, %v7695_v37  ;;  %v1965_v40 = vrot.slane %v1963_v31, 3  ;;  %v1968_v42 = vrot.slane %v1966_v30, 4  ;;  %v7778_v5 = vpop.permute.xlu1 %2619  ;;  %v3956_v28 = vrot.slane %v6100_v56, 5  ;;  %v7796_v56 = vld [vmem:[#allocation3 + $0xec] ss:$0 sps:$4 sm:$0x11]  }
 0x206   : > { %v1987_v58 = vrot.slane %v1985_v39, 3  ;;  %v1771_v13 = vsel %vm1717_vm12, %v1704_v50, %v1625_v49  ;;  %v1990_v41 = vrot.slane %v1988_v16, 4  ;;  %4009 = vrot.lane.b32.xlu1 %v7645_v2, %s6212_s14  ;;  %v7790_v37 = vsel %vm1523_vm8, %v2730_v35, %v2731_v3  ;;  %v2318_v2 = vld [vmem:[#allocation3 + $0x10c] sm:$0xf]  ;;  %v2319_v44 = vld [vmem:[#allocation3 + $0x110] sm:$0xf] }
 0x207   : > { %v1969_v6 = vor.u32 %v1968_v42, %v1965_v40  ;;  %v1978_v12 = vshrl.u32 %v1771_v13, 16  ;;  %v1981_v61 = vshll.u32 %v1771_v13, 16  ;;  %v7792_v43 = vrot.slane %v3796_v57, 4 }
 0x208   : > { %4003 = vrot.lane.b32.xlu0 %v3949_v9, %s6212_s14  ;;  %v7794_v11 = vrot.slane %v3799_v20, 5  ;;  %v3958_v31 = vrot.slane %v7716_v17, 5  ;;  %v2618_v30 = vpop.permute.xlu0 %2617  ;;  %v7800_v16 = vcombine.low %v2321_v22, %v2322_v1  ;;  %v8938_v3 = vcombine.low %v6935_v15, %v6935_v15 }
 0x209   : > { %v1980_v0 = vrot.slane %v1978_v12, 3  ;;  %v1983_v9 = vrot.slane %v1981_v61, 4  ;;  %v1977_v39 = vsel %vm1782_vm13, %v1969_v6, %v1976_v26  ;;  %v2748_v20 = vpop.permute.xlu1 %2747  ;;  %v7807_v50 = vrot.slane %v3788_v24, 4  ;;  %v7811_v12 = vld [vmem:[#allocation3 + $0x58] sm:$0xf] }
 0x20a   : > { %v2813_v57 = vsel %vm1636_vm11, %v8938_v3, %v2618_v30  ;;  %5853 = vmatprep.mubr.msk.bf16.mxu1 %vm2035_vm14, %v1977_v39  ;;  %v7809_v40 = vrot.slane %v3791_v7, 5  ;;  %v5480_v6 = vcombine.low %v7783_v10, %v7811_v12  ;;  %v1991_v22 = vor.u32 %v1990_v41, %v1987_v58  ;;  %2639 = vrot.lane.b32.xlu1 %v2584_v34, %s6213_s18  ;;  %v6108_v26 = vld [vmem:[#allocation3 + $0x114] ss:$0 sps:$4 sm:$0x11]  }
 0x20b   : > { %v1984_v1 = vor.u32 %v1983_v9, %v1980_v0  ;;  %v2892_v42 = vsel %vm1717_vm12, %v2813_v57, %v2748_v20  ;;  %v7822_v15 = vsel %vm1523_vm8, %v3955_v59, %v3956_v28  ;;  %v3802_v41 = vor.u32 %v7794_v11, %v7792_v43 }
 0x20c   : > { %4007 = vrot.lane.b32.xlu0 %v3952_v14, %s6212_s14  ;;  %v2960_v24 = vshrl.u32 %v2892_v42, 16  ;;  %v2963_v7 = vshll.u32 %v2892_v42, 16  ;;  %v7830_v49 = vcombine.low %v2318_v2, %v2319_v44  ;;  %v2811_v36 = vsel %vm1636_vm11, %v5474_v25, %v2618_v30  ;;  %v2746_v14 = vpop.permute.xlu0 %2745 }
 0x20d   : > { %v1992_v58 = vsel %vm1782_vm13, %v1984_v1, %v1991_v22  ;;  %v3959_v13 = vrot.slane %v7796_v56, 5  ;;  %v2594_v28 = vshrl.u32 %v7800_v16, 16  ;;  %v2816_v52 = vsel %vm1636_vm11, %v5476_v48, %v7778_v5  ;;  %v2750_v61 = vpop.permute.xlu1 %2749 }
 0x20e   : > { %v2962_v47 = vrot.slane %v2960_v24, 3  ;;  %v2890_v34 = vsel %vm1717_vm12, %v2811_v36, %v2746_v14  ;;  %5854 = vmatmul.mubr.msk.bf16.gmra.mrb[40].mxu1 %vm2035_vm14, %v1992_v58  ;;  %v2597_v29 = vshll.u32 %v7800_v16, 16  ;;  %v2965_v25 = vrot.slane %v2963_v7, 4  ;;  %2787 = vrot.lane.b32.xlu1 %v7728_v19, %s6212_s14  ;;  %v3550_v19 = vld [vmem:[#allocation3 + $0x110] sm:$0xf] }
 0x20f   : > { %v2953_v56 = vshrl.u32 %v2890_v34, 16  ;;  %v2956_v0 = vshll.u32 %v2890_v34, 16  ;;  %v2894_v9 = vsel %vm1717_vm12, %v2816_v52, %v2750_v61  ;;  %v2586_v55 = vshrl.u32 %v7830_v49, 16  ;;  %v3546_v52 = vld [vmem:[#allocation3 + $0xf8] sm:$0xf] }
 0x210   : > { %2637 = vrot.lane.b32.xlu0 %v2576_v62, %s6213_s18  ;;  %v2589_v48 = vshll.u32 %v7830_v49, 16  ;;  %v2733_v30 = vrot.slane %v7830_v49, 5  ;;  %v2734_v39 = vrot.slane %v6108_v26, 5  ;;  %v1472_v3 = vpop.permute.xlu0 %1471  ;;  %v3794_v57 = vor.u32 %v7809_v40, %v7807_v50  ;;  %v3549_v62 = vld [vmem:[#allocation3 + $0x10c] sm:$0xf] }
 0x211   : > { %v2955_v2 = vrot.slane %v2953_v56, 3  ;;  %v2958_v44 = vrot.slane %v2956_v0, 4  ;;  %v2968_v20 = vshrl.u32 %v2894_v9, 16  ;;  %v2971_v22 = vshll.u32 %v2894_v9, 16  ;;  %v1474_v1 = vpop.permute.xlu1 %1473 }
 0x212   : > { %v7867_v42 = vrot.slane %v2594_v28, 4  ;;  %v7869_v24 = vrot.slane %v2597_v29, 5  ;;  %v8939_v7 = vrot.slane %v7625_v53, 5  ;;  %v2966_v50 = vor.u32 %v2965_v25, %v2962_v47  ;;  %2791 = vrot.lane.b32.xlu1 %v7790_v37, %s6212_s14  ;;  %v3547_v47 = vld [vmem:[#allocation3 + $0xfc] sm:$0xf] }
 0x213   : > { %v2959_v26 = vor.u32 %v2958_v44, %v2955_v2  ;;  %v2736_v40 = vrot.slane %v7800_v16, 5  ;;  %v2737_v36 = vrot.slane %v7854_v46, 5  ;;  %v7881_v14 = vsel %vm1523_vm8, %v3958_v31, %v3959_v13  ;;  %v7900_v25 = vld [vmem:[#allocation3 + $0x48] sm:$0xf] }
 0x214   : > { %2785 = vrot.lane.b32.xlu0 %v8939_v7, %s6212_s14  ;;  %v7883_v58 = vrot.slane %v2586_v55, 4  ;;  %v7885_v28 = vrot.slane %v2589_v48, 5  ;;  %v7887_v53 = vcombine.low %v3549_v62, %v3550_v19  ;;  %v8940_v34 = vcombine.low %v6928_v32, %v6928_v32  ;;  %v2752_v37 = vpop.permute.xlu0 %2751 }
 0x215   : > { %v2967_v29 = vsel %vm1782_vm13, %v2959_v26, %v2966_v50  ;;  %v7898_v13 = vsel %vm1523_vm8, %v2733_v30, %v2734_v39  ;;  %v5562_v56 = vcombine.low %v7900_v25, %v7900_v25  ;;  %v2970_v0 = vrot.slane %v2968_v20, 3  ;;  %v1631_v48 = vpop.permute.xlu1 %1630 }
 0x216   : > { %v2818_v61 = vsel %vm1636_vm11, %v8940_v34, %v7778_v5  ;;  %v2973_v9 = vrot.slane %v2971_v22, 4  ;;  %v8941_v32 = vcombine.low %v8914_v54, %v8914_v54  ;;  %5865 = vmatprep.mubr.msk.bf16.mxu0 %vm2035_vm14, %v2967_v29  ;;  %v7914_v62 = vcombine.low %v3546_v52, %v3547_v47  ;;  %3869 = vrot.lane.b32.xlu1 %v3802_v41, %s6213_s18 }
 0x217   : > { %v2896_v55 = vsel %vm1717_vm12, %v2818_v61, %v2752_v37  ;;  %v3812_v54 = vshrl.u32 %v7887_v53, 16  ;;  %v3815_v22 = vshll.u32 %v7887_v53, 16  ;;  %v8942_v7 = vcombine.low %v7676_v51, %v7706_v60 }
 0x218   : > { %v1711_v5 = vsel %vm1636_vm11, %v8941_v32, %v1472_v3  ;;  %v2975_v2 = vshrl.u32 %v2896_v55, 16  ;;  %v2978_v39 = vshll.u32 %v2896_v55, 16  ;;  %2789 = vrot.lane.b32.xlu0 %v2730_v35, %s6212_s14  ;;  %v8943_v8 = vcombine.low %v7590_v21, %v7590_v21  ;;  %v1629_v47 = vpop.permute.xlu0 %1628 }
 0x219   : > { %v1777_v44 = vsel %vm1717_vm12, %v1711_v5, %v1631_v48  ;;  %v1709_v26 = vsel %vm1636_vm11, %v8942_v7, %v1472_v3  ;;  %v2974_v34 = vor.u32 %v2973_v9, %v2970_v0  ;;  %v1635_v61 = vpop.permute.xlu1 %1634  ;;  %v3804_v3 = vshrl.u32 %v7914_v62, 16 }
 0x21a   : > { %v2000_v19 = vshrl.u32 %v1777_v44, 16  ;;  %v2003_v20 = vshll.u32 %v1777_v44, 16  ;;  %v1716_v35 = vsel %vm1636_vm11, %v8943_v8, %v1474_v1  ;;  %v2977_v50 = vrot.slane %v2975_v2, 3  ;;  %4013 = vrot.lane.b32.xlu1 %v7822_v15, %s6212_s14  ;;  %v7953_v8 = vld [vmem:[#allocation3 + $0x2c] sm:$0x8] }
 0x21b   : > { %v2980_v52 = vrot.slane %v2978_v39, 4  ;;  %v1775_v41 = vsel %vm1717_vm12, %v1709_v26, %v1629_v47  ;;  %v1781_v51 = vsel %vm1717_vm12, %v1716_v35, %v1635_v61  ;;  %v3807_v0 = vshll.u32 %v7914_v62, 16  ;;  %v7957_v35 = vld [vmem:[#allocation3 + $0x44] sm:$0xf] }
 0x21c   : > { %v2002_v43 = vrot.slane %v2000_v19, 3  ;;  %v2005_v11 = vrot.slane %v2003_v20, 4  ;;  %v1993_v29 = vshrl.u32 %v1775_v41, 16  ;;  %v1996_v32 = vshll.u32 %v1775_v41, 16  ;;  %3867 = vrot.lane.b32.xlu0 %v3794_v57, %s6213_s18  ;;  %v1633_v2 = vpop.permute.xlu0 %1632  ;;  %v7942_v57 = vld [vmem:[#allocation3 + $0x40] sm:$0x8] }
 0x21d   : > { %v2981_v37 = vor.u32 %v2980_v52, %v2977_v50  ;;  %v2015_v60 = vshrl.u32 %v1781_v51, 16  ;;  %v2018_v21 = vshll.u32 %v1781_v51, 16  ;;  %v8944_v9 = vcombine.low %v7684_v27, %v7710_v38  ;;  %v7945_v20 = vpop.permute.xlu1 %2623  ;;  %v6116_v47 = vld [vmem:[#allocation3 + $0x100] ss:$0 sps:$4 sm:$0x11]  }
 0x21e   : > { %v1995_v55 = vrot.slane %v1993_v29, 3  ;;  %v1998_v48 = vrot.slane %v1996_v32, 4  ;;  %v2006_v44 = vor.u32 %v2005_v11, %v2002_v43  ;;  %v2600_v27 = vor.u32 %v7869_v24, %v7867_v42  ;;  %4017 = vrot.lane.b32.xlu1 %v7881_v14, %s6212_s14 }
 0x21f   : > { %v1714_v5 = vsel %vm1636_vm11, %v8944_v9, %v1474_v1  ;;  %v2982_v39 = vsel %vm1782_vm13, %v2974_v34, %v2981_v37  ;;  %v2017_v19 = vrot.slane %v2015_v60, 3  ;;  %v2020_v1 = vrot.slane %v2018_v21, 4  ;;  %v7982_v37 = vld [vmem:[#allocation3 + $0x30] sm:$0xf] }
 0x220   : > { %v1779_v15 = vsel %vm1717_vm12, %v1714_v5, %v1633_v2  ;;  %5866 = vmatmul.mubr.msk.bf16.vlgmr.msra.gmra.mrb[16].mxu0 %vm2035_vm14, %v2982_v39  ;;  %v1999_v38 = vor.u32 %v1998_v48, %v1995_v55  ;;  %4011 = vrot.lane.b32.xlu0 %v3955_v59, %s6212_s14  ;;  %v5561_v50 = vcombine.low %v7942_v57, %v7957_v35  ;;  %v7961_v52 = vrot.slane %v3812_v54, 4  ;;  %v2622_v59 = vpop.permute.xlu0 %2621  ;;  %v2328_v55 = vld [vmem:[#allocation3 + $0x14c] sm:$0xf]  ;;  %v2324_v48 = vld [vmem:[#allocation3 + $0x134] sm:$0xf] }
 0x221   : > { %v2008_v7 = vshrl.u32 %v1779_v15, 16  ;;  %v2011_v26 = vshll.u32 %v1779_v15, 16  ;;  %v7963_v42 = vrot.slane %v3815_v22, 5  ;;  %v7965_v24 = vrot.slane %v3804_v3, 4  ;;  %v2756_v61 = vpop.permute.xlu1 %2755  ;;  %v2327_v3 = vld [vmem:[#allocation3 + $0x148] sm:$0xf] }
 0x222   : > { %v2007_v43 = vsel %vm1782_vm13, %v1999_v38, %v2006_v44  ;;  %v7968_v11 = vrot.slane %v3807_v0, 5  ;;  %v8945_v14 = vcombine.low %v7753_v18, %v7753_v18  ;;  %v2592_v54 = vor.u32 %v7885_v28, %v7883_v58  ;;  %v7990_v58 = vld [vmem:[#allocation3 + $0x34] sm:$0xf]  ;;  %2643 = vrot.lane.b32.xlu1 %v2600_v27, %s6213_s18  ;;  %v2325_v2 = vld [vmem:[#allocation3 + $0x138] sm:$0xf] }
 0x223   : > { %v2010_v34 = vrot.slane %v2008_v7, 3  ;;  %v2013_v33 = vrot.slane %v2011_v26, 4  ;;  %5857 = vmatprep.mubr.msk.bf16.mxu1 %vm2035_vm14, %v2007_v43  ;;  %v2738_v22 = vsel %vm1523_vm8, %v2736_v40, %v2737_v36  ;;  %v5559_v29 = vcombine.low %v7953_v8, %v7982_v37  ;;  %v6120_v15 = vld [vmem:[#allocation3 + $0x114] ss:$0 sps:$4 sm:$0x11]  }
 0x224   : > { %v2823_v41 = vsel %vm1636_vm11, %v8945_v14, %v2622_v59  ;;  %v2021_v18 = vor.u32 %v2020_v1, %v2017_v19  ;;  %4015 = vrot.lane.b32.xlu0 %v3958_v31, %s6212_s14  ;;  %v5560_v46 = vcombine.low %v7990_v58, %v7990_v58  ;;  %v3961_v60 = vrot.slane %v7914_v62, 5  ;;  %v2754_v17 = vpop.permute.xlu0 %2753  ;;  %v8039_v58 = vld [vmem:[#allocation3 + $0x68] sm:$0x8] }
 0x225   : > { %v2014_v32 = vor.u32 %v2013_v33, %v2010_v34  ;;  %v2900_v51 = vsel %vm1717_vm12, %v2823_v41, %v2756_v61  ;;  %v3962_v21 = vrot.slane %v6116_v47, 5  ;;  %v2821_v0 = vsel %vm1636_vm11, %v5478_v23, %v2622_v59  ;;  %v2760_v19 = vpop.permute.xlu1 %2759 }
 0x226   : > { %v2990_v28 = vshrl.u32 %v2900_v51, 16  ;;  %v2993_v36 = vshll.u32 %v2900_v51, 16  ;;  %v3818_v9 = vor.u32 %v7963_v42, %v7961_v52  ;;  %v3810_v5 = vor.u32 %v7968_v11, %v7965_v24  ;;  %2795 = vrot.lane.b32.xlu1 %v7898_v13, %s6212_s14 }
 0x227   : > { %v2022_v31 = vsel %vm1782_vm13, %v2014_v32, %v2021_v18  ;;  %v8946_v39 = vcombine.low %v7743_v4, %v7743_v4  ;;  %v2898_v44 = vsel %vm1717_vm12, %v2821_v0, %v2754_v17  ;;  %v3964_v7 = vrot.slane %v7887_v53, 5  ;;  %v8034_v32 = vld [vmem:[#allocation3 + $0x7c] sm:$0x8] }
 0x228   : > { %v2992_v45 = vrot.slane %v2990_v28, 3  ;;  %v2995_v23 = vrot.slane %v2993_v36, 4  ;;  %5858 = vmatmul.mubr.msk.bf16.gmra.mrb[44].mxu1 %vm2035_vm14, %v2022_v31  ;;  %v2983_v27 = vshrl.u32 %v2898_v44, 16  ;;  %v2986_v38 = vshll.u32 %v2898_v44, 16  ;;  %2641 = vrot.lane.b32.xlu0 %v2592_v54, %s6213_s18  ;;  %v2758_v14 = vpop.permute.xlu0 %2757  ;;  %v8042_v28 = vld [vmem:[#allocation3 + $0x84] sm:$0xf] }
 0x229   : > { %v2828_v63 = vsel %vm1636_vm11, %v8946_v39, %v7945_v20  ;;  %v8017_v47 = vcombine.low %v2327_v3, %v2328_v55  ;;  %v8019_v34 = vcombine.low %v2324_v48, %v2325_v2  ;;  %v2826_v33 = vsel %vm1636_vm11, %v5480_v6, %v7945_v20  ;;  %v8032_v18 = vpop.permute.xlu1 %3853  ;;  %v8053_v2 = vld [vmem:[#allocation3 + $0x80] sm:$0xf] }
 0x22a   : > { %v2904_v1 = vsel %vm1717_vm12, %v2828_v63, %v2760_v19  ;;  %v2985_v59 = vrot.slane %v2983_v27, 3  ;;  %v2988_v43 = vrot.slane %v2986_v38, 4  ;;  %v8029_v41 = vsel %vm1523_vm8, %v3961_v60, %v3962_v21  ;;  %2799 = vrot.lane.b32.xlu1 %v2738_v22, %s6212_s14  ;;  %v8057_v63 = vld [vmem:[#allocation3 + $0x6c] sm:$0xf] }
 0x22b   : > { %v3005_v26 = vshrl.u32 %v2904_v1, 16  ;;  %v3008_v4 = vshll.u32 %v2904_v1, 16  ;;  %v2996_v61 = vor.u32 %v2995_v23, %v2992_v45  ;;  %v2902_v54 = vsel %vm1717_vm12, %v2826_v33, %v2758_v14  ;;  %v8061_v23 = vld [vmem:[#allocation3 + $0x70] sm:$0xf] }
 0x22c   : > { %v3965_v51 = vrot.slane %v6120_v15, 5  ;;  %v2989_v10 = vor.u32 %v2988_v43, %v2985_v59  ;;  %v2998_v6 = vshrl.u32 %v2902_v54, 16  ;;  %v3001_v20 = vshll.u32 %v2902_v54, 16  ;;  %2793 = vrot.lane.b32.xlu0 %v2733_v30, %s6212_s14  ;;  %v3852_v55 = vpop.permute.xlu0 %3851  ;;  %v6126_v38 = vld [vmem:[#allocation3 + $0x13c] ss:$0 sps:$4 sm:$0x11]  }
 0x22d   : > { %v3007_v13 = vrot.slane %v3005_v26, 3  ;;  %v3010_v12 = vrot.slane %v3008_v4, 4  ;;  %v5485_v36 = vcombine.low %v8042_v28, %v8042_v28  ;;  %v2610_v21 = vshrl.u32 %v8017_v47, 16  ;;  %v3982_v48 = vpop.permute.xlu1 %3981 }
 0x22e   : > { %v2613_v3 = vshll.u32 %v8017_v47, 16  ;;  %v2602_v0 = vshrl.u32 %v8019_v34, 16  ;;  %v3000_v17 = vrot.slane %v2998_v6, 3  ;;  %v3003_v31 = vrot.slane %v3001_v20, 4  ;;  %3873 = vrot.lane.b32.xlu1 %v3818_v9, %s6213_s18 }
 0x22f   : > { %v2997_v49 = vsel %vm1782_vm13, %v2989_v10, %v2996_v61  ;;  %v2605_v30 = vshll.u32 %v8019_v34, 16  ;;  %v4047_v22 = vsel %vm1636_vm11, %v5560_v46, %v3852_v55  ;;  %v5484_v39 = vcombine.low %v8034_v32, %v8053_v2  ;;  %v6127_v61 = vld [vmem:[#allocation3 + $0x150] ss:$0 sps:$4 sm:$0x11]   ;;  %v6158_v32 = vld [vmem:[#allocation3 + $0x58] sm:$0xf] }
 0x230   : > { %5869 = vmatprep.mubr.msk.bf16.mxu0 %vm2035_vm14, %v2997_v49  ;;  %v5482_v45 = vcombine.low %v8039_v58, %v8057_v63  ;;  %v5483_v44 = vcombine.low %v8061_v23, %v8061_v23  ;;  %v3011_v19 = vor.u32 %v3010_v12, %v3007_v13  ;;  %v3004_v46 = vor.u32 %v3003_v31, %v3000_v17 }
 0x231   : > { %v4126_v15 = vsel %vm1717_vm12, %v4047_v22, %v3982_v48  ;;  %2797 = vrot.lane.b32.xlu0 %v2736_v40, %s6212_s14  ;;  %v3966_v27 = vsel %vm1523_vm8, %v3964_v7, %v3965_v51  ;;  %v8076_v4 = vrot.slane %v2610_v21, 4  ;;  %v8078_v33 = vrot.slane %v2613_v3, 5  ;;  %v3980_v40 = vpop.permute.xlu0 %3979  ;;  %v3986_v37 = vpop.permute.xlu1 %3985  ;;  %v3553_v22 = vld [vmem:[#allocation3 + $0x124] sm:$0xf] }
 0x232   : > { %v4194_v1 = vshrl.u32 %v4126_v15, 16  ;;  %v4197_v26 = vshll.u32 %v4126_v15, 16  ;;  %v4045_v16 = vsel %vm1636_vm11, %v5559_v29, %v3852_v55  ;;  %v3012_v59 = vsel %vm1782_vm13, %v3004_v46, %v3011_v19  ;;  %v3555_v29 = vld [vmem:[#allocation3 + $0x134] sm:$0xf]  ;;  %4021 = vrot.lane.b32.xlu1 %v8029_v41, %s6212_s14  ;;  %v8128_v15 = vld [vmem:[#allocation3 + $0x6c] sm:$0xf] }
 0x233   : > { %v8085_v43 = vrot.slane %v2602_v0, 4  ;;  %v8087_v14 = vrot.slane %v2605_v30, 5  ;;  %v4052_v52 = vsel %vm1636_vm11, %v5562_v56, %v8032_v18  ;;  %v4124_v8 = vsel %vm1717_vm12, %v4045_v16, %v3980_v40  ;;  %5870 = vmatmul.mubr.msk.bf16.gmra.mrb[20].mxu0 %vm2035_vm14, %v3012_v59  ;;  %v3556_v56 = vld [vmem:[#allocation3 + $0x138] sm:$0xf]  ;;  %v3552_v30 = vld [vmem:[#allocation3 + $0x120] sm:$0xf] }
 0x234   : > { %v4196_v42 = vrot.slane %v4194_v1, 3  ;;  %v4199_v9 = vrot.slane %v4197_v26, 4  ;;  %v4187_v13 = vshrl.u32 %v4124_v8, 16  ;;  %v4190_v54 = vshll.u32 %v4124_v8, 16  ;;  %v8142_v40 = vld [vmem:[#allocation3 + $0x70] sm:$0xf] }
 0x235   : > { %v4130_v51 = vsel %vm1717_vm12, %v4052_v52, %v3986_v37  ;;  %3871 = vrot.lane.b32.xlu0 %v3810_v5, %s6213_s18  ;;  %v2739_v25 = vrot.slane %v8019_v34, 5  ;;  %v2740_v6 = vrot.slane %v6126_v38, 5  ;;  %v2742_v20 = vrot.slane %v8017_v47, 5  ;;  %v3984_v11 = vpop.permute.xlu0 %3983  ;;  %v8110_v5 = vld [vmem:[#allocation3 + $0x68] sm:$0x8]  ;;  %v8113_v41 = vpop.permute.xlu1 %2627 }
 0x236   : > { %v4209_v10 = vshrl.u32 %v4130_v51, 16  ;;  %v4212_v12 = vshll.u32 %v4130_v51, 16  ;;  %v4050_v21 = vsel %vm1636_vm11, %v5561_v50, %v8032_v18  ;;  %v4189_v3 = vrot.slane %v4187_v13, 3  ;;  %4025 = vrot.lane.b32.xlu1 %v3966_v27, %s6212_s14  ;;  %v8132_v1 = vld [vmem:[#allocation3 + $0x128] ss:$0 sps:$4 sm:$0x11]  }
 0x237   : > { %v4192_v24 = vrot.slane %v4190_v54, 4  ;;  %v2743_v0 = vrot.slane %v6127_v61, 5  ;;  %v4200_v17 = vor.u32 %v4199_v9, %v4196_v42  ;;  %v4128_v55 = vsel %vm1717_vm12, %v4050_v21, %v3984_v11 }
 0x238   : > { %v4211_v31 = vrot.slane %v4209_v10, 3  ;;  %v8115_v49 = vcombine.low %v3555_v29, %v3556_v56  ;;  %v4214_v57 = vrot.slane %v4212_v12, 4  ;;  %v4202_v35 = vshrl.u32 %v4128_v55, 16 }
 0x239   : > { %v4193_v48 = vor.u32 %v4192_v24, %v4189_v3  ;;  %v4205_v50 = vshll.u32 %v4128_v55, 16  ;;  %4019 = vrot.lane.b32.xlu0 %v3961_v60, %s6212_s14  ;;  %v2616_v18 = vor.u32 %v8078_v33, %v8076_v4  ;;  %v2608_v19 = vor.u32 %v8087_v14, %v8085_v43  ;;  %v2626_v27 = vpop.permute.xlu0 %2625  ;;  %v2764_v16 = vpop.permute.xlu1 %2763  ;;  %v8149_v14 = vld [vmem:[#allocation3 + $0x5c] sm:$0xf]  ;;  %v3521_v3 = vld [vmem:[#allocation3 + $0x54] sm:$0x8] }
 0x23a   : > { %v2741_v46 = vsel %vm1523_vm8, %v2739_v25, %v2740_v6  ;;  %v5565_v38 = vcombine.low %v8110_v5, %v8128_v15  ;;  %v4204_v62 = vrot.slane %v4202_v35, 3  ;;  %v8135_v4 = vcombine.low %v3552_v30, %v3553_v22  ;;  %v3562_v35 = vld [vmem:[#allocation3 + $0x160] sm:$0xf]  ;;  %v2302_v5 = vld [vmem:[#allocation3 + $0xa4] sm:$0x8] }
 0x23b   : > { %v4207_v60 = vrot.slane %v4205_v50, 4  ;;  %v4201_v26 = vsel %vm1782_vm13, %v4193_v48, %v4200_v17  ;;  %v2833_v33 = vsel %vm1636_vm11, %v5483_v44, %v2626_v27  ;;  %v5566_v59 = vcombine.low %v8142_v40, %v8142_v40  ;;  %2647 = vrot.lane.b32.xlu1 %v2616_v18, %s6213_s18  ;;  %v8179_v17 = vld [vmem:[#allocation3 + $0x13c] ss:$0 sps:$4 sm:$0x11]  }
 0x23c   : > { %5901 = vmatprep.mubr.msk.bf16.mxu1 %vm2035_vm14, %v4201_v26  ;;  %v2744_v43 = vsel %vm1523_vm8, %v2742_v20, %v2743_v0  ;;  %v5564_v61 = vcombine.low %v8149_v14, %v8149_v14  ;;  %v4215_v23 = vor.u32 %v4214_v57, %v4211_v31  ;;  %v2908_v44 = vsel %vm1717_vm12, %v2833_v33, %v2764_v16  ;;  %v3561_v31 = vld [vmem:[#allocation3 + $0x15c] sm:$0xf]  ;;  %v6134_v40 = vld [vmem:[#allocation3 + $0x150] ss:$0 sps:$4 sm:$0x11]  }
 0x23d   : > { %v4208_v52 = vor.u32 %v4207_v60, %v4204_v62  ;;  %4023 = vrot.lane.b32.xlu0 %v3964_v7, %s6212_s14  ;;  %v3828_v42 = vshrl.u32 %v8115_v49, 16  ;;  %v3020_v9 = vshrl.u32 %v2908_v44, 16  ;;  %v3023_v8 = vshll.u32 %v2908_v44, 16  ;;  %v2762_v54 = vpop.permute.xlu0 %2761  ;;  %v2768_v58 = vpop.permute.xlu1 %2767  ;;  %v3558_v62 = vld [vmem:[#allocation3 + $0x148] sm:$0xf] }
 0x23e   : > { %v3831_v37 = vshll.u32 %v8115_v49, 16  ;;  %v3968_v29 = vrot.slane %v8132_v1, 5  ;;  %v2831_v13 = vsel %vm1636_vm11, %v5482_v45, %v2626_v27  ;;  %v3820_v53 = vshrl.u32 %v8135_v4, 16  ;;  %v3559_v60 = vld [vmem:[#allocation3 + $0x14c] sm:$0xf] }
 0x23f   : > { %v4216_v51 = vsel %vm1782_vm13, %v4208_v52, %v4215_v23  ;;  %v3823_v7 = vshll.u32 %v8135_v4, 16  ;;  %v2838_v56 = vsel %vm1636_vm11, %v5485_v36, %v8113_v41  ;;  %v3022_v10 = vrot.slane %v3020_v9, 3  ;;  %2803 = vrot.lane.b32.xlu1 %v2741_v46, %s6212_s14 }
 0x240   : > { %v3025_v12 = vrot.slane %v3023_v8, 4  ;;  %v2906_v6 = vsel %vm1717_vm12, %v2831_v13, %v2762_v54  ;;  %5902 = vmatmul.mubr.msk.bf16.vlgmr.msra.gmra.mrb[48].mxu1 %vm2035_vm14, %v4216_v51  ;;  %v2912_v21 = vsel %vm1717_vm12, %v2838_v56, %v2768_v58  ;;  %v3830_v24 = vrot.slane %v3828_v42, 4 }
 0x241   : > { %v3013_v63 = vshrl.u32 %v2906_v6, 16  ;;  %v3016_v45 = vshll.u32 %v2906_v6, 16  ;;  %2645 = vrot.lane.b32.xlu0 %v2608_v19, %s6213_s18  ;;  %v3035_v11 = vshrl.u32 %v2912_v21, 16  ;;  %v3038_v0 = vshll.u32 %v2912_v21, 16  ;;  %v2766_v48 = vpop.permute.xlu0 %2765  ;;  %v3858_v46 = vpop.permute.xlu1 %3857 }
 0x242   : > { %v3833_v28 = vrot.slane %v3831_v37, 5  ;;  %v3967_v36 = vrot.slane %v8135_v4, 5  ;;  %v2836_v55 = vsel %vm1636_vm11, %v5484_v39, %v8113_v41  ;;  %v3822_v57 = vrot.slane %v3820_v53, 4  ;;  %v6159_v53 = vld [vmem:[#allocation3 + $0x98] sm:$0xf] }
 0x243   : > { %v3015_v30 = vrot.slane %v3013_v63, 3  ;;  %v3018_v22 = vrot.slane %v3016_v45, 4  ;;  %v3026_v50 = vor.u32 %v3025_v12, %v3022_v10  ;;  %v3037_v18 = vrot.slane %v3035_v11, 3  ;;  %2807 = vrot.lane.b32.xlu1 %v2744_v43, %s6212_s14 }
 0x244   : > { %v2910_v19 = vsel %vm1717_vm12, %v2836_v55, %v2766_v48  ;;  %v3825_v1 = vrot.slane %v3823_v7, 5  ;;  %v3040_v26 = vrot.slane %v3038_v0, 4  ;;  %v5563_v2 = vcombine.low %v3521_v3, %v6158_v32 }
 0x245   : > { %v3019_v27 = vor.u32 %v3018_v22, %v3015_v30  ;;  %v3028_v33 = vshrl.u32 %v2910_v19, 16  ;;  %v3031_v16 = vshll.u32 %v2910_v19, 16  ;;  %2801 = vrot.lane.b32.xlu0 %v2739_v25, %s6212_s14  ;;  %v3834_v39 = vor.u32 %v3833_v28, %v3830_v24  ;;  %v3856_v42 = vpop.permute.xlu0 %3855  ;;  %v3990_v25 = vpop.permute.xlu1 %3989 }
 0x246   : > { %v3969_v41 = vsel %vm1523_vm8, %v3967_v36, %v3968_v29  ;;  %v8194_v23 = vcombine.low %v3561_v31, %v3562_v35  ;;  %v8197_v8 = vcombine.low %v3558_v62, %v3559_v60  ;;  %v4057_v34 = vsel %vm1636_vm11, %v5564_v61, %v3856_v42  ;;  %v2299_v60 = vld [vmem:[#allocation3 + $0x90] sm:$0x8] }
 0x247   : > { %v3030_v52 = vrot.slane %v3028_v33, 3  ;;  %v3033_v44 = vrot.slane %v3031_v16, 4  ;;  %v3027_v9 = vsel %vm1782_vm13, %v3019_v27, %v3026_v50  ;;  %v3826_v43 = vor.u32 %v3825_v1, %v3822_v57  ;;  %3877 = vrot.lane.b32.xlu1 %v3834_v39, %s6213_s18 }
 0x248   : > { %5873 = vmatprep.mubr.msk.bf16.mxu0 %vm2035_vm14, %v3027_v9  ;;  %v3970_v37 = vrot.slane %v8115_v49, 5  ;;  %v3971_v29 = vrot.slane %v8179_v17, 5  ;;  %v3041_v13 = vor.u32 %v3040_v26, %v3037_v18  ;;  %v4134_v51 = vsel %vm1717_vm12, %v4057_v34, %v3990_v25  ;;  %v6135_v9 = vld [vmem:[#allocation3 + $0x164] ss:$0 sps:$4 sm:$0x11]  }
 0x249   : > { %v3034_v54 = vor.u32 %v3033_v44, %v3030_v52  ;;  %2805 = vrot.lane.b32.xlu0 %v2742_v20, %s6212_s14  ;;  %v5487_v14 = vcombine.low %v6159_v53, %v6159_v53  ;;  %v4224_v7 = vshrl.u32 %v4134_v51, 16  ;;  %v4227_v61 = vshll.u32 %v4134_v51, 16  ;;  %v3988_v6 = vpop.permute.xlu0 %3987  ;;  %v3994_v24 = vpop.permute.xlu1 %3993  ;;  %v6161_v34 = vld [vmem:[#allocation3 + $0xac] sm:$0xf] }
 0x24a   : > { %v3844_v56 = vshrl.u32 %v8194_v23, 16  ;;  %v3847_v10 = vshll.u32 %v8194_v23, 16  ;;  %v4055_v12 = vsel %vm1636_vm11, %v5563_v2, %v3856_v42  ;;  %v3836_v63 = vshrl.u32 %v8197_v8, 16 }
 0x24b   : > { %v3042_v58 = vsel %vm1782_vm13, %v3034_v54, %v3041_v13  ;;  %v3839_v47 = vshll.u32 %v8197_v8, 16  ;;  %v4062_v20 = vsel %vm1636_vm11, %v5566_v59, %v3858_v46  ;;  %v4226_v45 = vrot.slane %v4224_v7, 3  ;;  %4029 = vrot.lane.b32.xlu1 %v3969_v41, %s6212_s14  ;;  %v6160_v41 = vld [vmem:[#allocation3 + $0x94] sm:$0xf]  ;;  %v6162_v54 = vld [vmem:[#allocation3 + $0xa8] sm:$0xf] }
 0x24c   : > { %v4229_v21 = vrot.slane %v4227_v61, 4  ;;  %v4132_v3 = vsel %vm1717_vm12, %v4055_v12, %v3988_v6  ;;  %5874 = vmatmul.mubr.msk.bf16.gmra.mrb[24].mxu0 %vm2035_vm14, %v3042_v58  ;;  %v4138_v28 = vsel %vm1717_vm12, %v4062_v20, %v3994_v24  ;;  %v3972_v17 = vsel %vm1523_vm8, %v3970_v37, %v3971_v29 }
 0x24d   : > { %v4217_v11 = vshrl.u32 %v4132_v3, 16  ;;  %v4220_v0 = vshll.u32 %v4132_v3, 16  ;;  %3875 = vrot.lane.b32.xlu0 %v3826_v43, %s6213_s18  ;;  %v4239_v31 = vshrl.u32 %v4138_v28, 16  ;;  %v4242_v59 = vshll.u32 %v4138_v28, 16  ;;  %v3992_v35 = vpop.permute.xlu0 %3991  ;;  %v2632_v62 = vpop.permute.xlu1 %2631 }
 0x24e   : > { %v3846_v55 = vrot.slane %v3844_v56, 4  ;;  %v3849_v30 = vrot.slane %v3847_v10, 5  ;;  %v4060_v22 = vsel %vm1636_vm11, %v5565_v38, %v3858_v46  ;;  %v3838_v50 = vrot.slane %v3836_v63, 4 }
 0x24f   : > { %v4219_v48 = vrot.slane %v4217_v11, 3  ;;  %v4222_v57 = vrot.slane %v4220_v0, 4  ;;  %v4230_v18 = vor.u32 %v4229_v21, %v4226_v45  ;;  %v4241_v19 = vrot.slane %v4239_v31, 3  ;;  %4033 = vrot.lane.b32.xlu1 %v3972_v17, %s6212_s14 }
 0x250   : > { %v4136_v1 = vsel %vm1717_vm12, %v4060_v22, %v3992_v35  ;;  %v3841_v27 = vrot.slane %v3839_v47, 5  ;;  %v4244_v33 = vrot.slane %v4242_v59, 4  ;;  %v3850_v15 = vor.u32 %v3849_v30, %v3846_v55  ;;  %v3527_v30 = vld [vmem:[#allocation3 + $0x7c] sm:$0x8]  ;;  %v6163_v22 = vld [vmem:[#allocation3 + $0x84] sm:$0xf] }
 0x251   : > { %v4223_v26 = vor.u32 %v4222_v57, %v4219_v48  ;;  %v4232_v16 = vshrl.u32 %v4136_v1, 16  ;;  %v4235_v32 = vshll.u32 %v4136_v1, 16  ;;  %4027 = vrot.lane.b32.xlu0 %v3967_v36, %s6212_s14  ;;  %v3973_v38 = vrot.slane %v8197_v8, 5  ;;  %v2630_v44 = vpop.permute.xlu0 %2629  ;;  %v2772_v36 = vpop.permute.xlu1 %2771 }
 0x252   : > { %v3974_v46 = vrot.slane %v6134_v40, 5  ;;  %v5486_v52 = vcombine.low %v2299_v60, %v6160_v41  ;;  %v5489_v25 = vcombine.low %v6161_v34, %v6161_v34  ;;  %v2843_v4 = vsel %vm1636_vm11, %v5487_v14, %v2630_v44 }
 0x253   : > { %v4234_v2 = vrot.slane %v4232_v16, 3  ;;  %v4237_v39 = vrot.slane %v4235_v32, 4  ;;  %v4231_v42 = vsel %vm1782_vm13, %v4223_v26, %v4230_v18  ;;  %v4245_v43 = vor.u32 %v4244_v33, %v4241_v19  ;;  %3881 = vrot.lane.b32.xlu1 %v3850_v15, %s6213_s18  ;;  %v3530_v33 = vld [vmem:[#allocation3 + $0x90] sm:$0x8]  ;;  %v6165_v16 = vld [vmem:[#allocation3 + $0x98] sm:$0xf] }
 0x254   : > { %5905 = vmatprep.mubr.msk.bf16.mxu1 %vm2035_vm14, %v4231_v42  ;;  %v2916_v8 = vsel %vm1717_vm12, %v2843_v4, %v2772_v36  ;;  %v3842_v13 = vor.u32 %v3841_v27, %v3838_v50  ;;  %v5488_v51 = vcombine.low %v2302_v5, %v6162_v54  ;;  %v3975_v14 = vsel %vm1523_vm8, %v3973_v38, %v3974_v46 }
 0x255   : > { %v4238_v29 = vor.u32 %v4237_v39, %v4234_v2  ;;  %4031 = vrot.lane.b32.xlu0 %v3970_v37, %s6212_s14  ;;  %v3050_v53 = vshrl.u32 %v2916_v8, 16  ;;  %v3053_v7 = vshll.u32 %v2916_v8, 16  ;;  %v2841_v61 = vsel %vm1636_vm11, %v5486_v52, %v2630_v44  ;;  %v2770_v56 = vpop.permute.xlu0 %2769  ;;  %v2776_v47 = vpop.permute.xlu1 %2775  ;;  %v6166_v52 = vld [vmem:[#allocation3 + $0x94] sm:$0xf] }
 0x256   : > { %v3976_v12 = vrot.slane %v8194_v23, 5  ;;  %v3977_v6 = vrot.slane %v6135_v9, 5  ;;  %v2848_v49 = vsel %vm1636_vm11, %v5489_v25, %v2632_v62  ;;  %v2914_v63 = vsel %vm1717_vm12, %v2841_v61, %v2770_v56 }
 0x257   : > { %v4246_v10 = vsel %vm1782_vm13, %v4238_v29, %v4245_v43  ;;  %v3052_v37 = vrot.slane %v3050_v53, 3  ;;  %v3055_v58 = vrot.slane %v3053_v7, 4  ;;  %v3043_v20 = vshrl.u32 %v2914_v63, 16  ;;  %4037 = vrot.lane.b32.xlu1 %v3975_v14, %s6212_s14 }
 0x258   : > { %5906 = vmatmul.mubr.msk.bf16.gmra.mrb[52].mxu1 %vm2035_vm14, %v4246_v10  ;;  %v3046_v45 = vshll.u32 %v2914_v63, 16  ;;  %v2920_v21 = vsel %vm1717_vm12, %v2848_v49, %v2776_v47  ;;  %v2846_v23 = vsel %vm1636_vm11, %v5488_v51, %v2632_v62  ;;  %v3978_v17 = vsel %vm1523_vm8, %v3976_v12, %v3977_v6  ;;  %v6164_v62 = vld [vmem:[#allocation3 + $0x80] sm:$0xf] }
 0x259   : > { %3879 = vrot.lane.b32.xlu0 %v3842_v13, %s6213_s18  ;;  %v3065_v3 = vshrl.u32 %v2920_v21, 16  ;;  %v3068_v24 = vshll.u32 %v2920_v21, 16  ;;  %v3045_v11 = vrot.slane %v3043_v20, 3  ;;  %v2774_v28 = vpop.permute.xlu0 %2773  ;;  %v3056_v40 = vor.u32 %v3055_v58, %v3052_v37  ;;  %v3862_v55 = vpop.permute.xlu1 %3861  ;;  %v2305_v37 = vld [vmem:[#allocation3 + $0xb8] sm:$0x8] }
 0x25a   : > { %v3048_v0 = vrot.slane %v3046_v45, 4  ;;  %v2918_v59 = vsel %vm1717_vm12, %v2846_v23, %v2774_v28  ;;  %v5568_v48 = vcombine.low %v6163_v22, %v6163_v22  ;;  %v5567_v60 = vcombine.low %v3527_v30, %v6164_v62  ;;  %v6167_v58 = vld [vmem:[#allocation3 + $0xc0] sm:$0xf]  ;;  %v6168_v23 = vld [vmem:[#allocation3 + $0xbc] sm:$0xf] }
 0x25b   : > { %v3067_v31 = vrot.slane %v3065_v3, 3  ;;  %v3070_v35 = vrot.slane %v3068_v24, 4  ;;  %v3058_v50 = vshrl.u32 %v2918_v59, 16  ;;  %v3061_v18 = vshll.u32 %v2918_v59, 16  ;;  %4041 = vrot.lane.b32.xlu1 %v3978_v17, %s6212_s14  ;;  %v2308_v17 = vld [vmem:[#allocation3 + $0xcc] sm:$0x8] }
 0x25c   : > { %v3049_v57 = vor.u32 %v3048_v0, %v3045_v11  ;;  %v5570_v32 = vcombine.low %v6165_v16, %v6165_v16  ;;  %v5569_v44 = vcombine.low %v3530_v33, %v6166_v52  ;;  %v5491_v63 = vcombine.low %v6167_v58, %v6167_v58 }
 0x25d   : > { %4035 = vrot.lane.b32.xlu0 %v3973_v38, %s6212_s14  ;;  %v3060_v19 = vrot.slane %v3058_v50, 3  ;;  %v3063_v1 = vrot.slane %v3061_v18, 4  ;;  %v3860_v27 = vpop.permute.xlu0 %3859  ;;  %v3998_v15 = vpop.permute.xlu1 %3997  ;;  %v3071_v46 = vor.u32 %v3070_v35, %v3067_v31  ;;  %v5490_v11 = vcombine.low %v2305_v37, %v6168_v23  ;;  %v6170_v50 = vld [vmem:[#allocation3 + $0xd0] sm:$0xf] }
 0x25e   : > { %v3057_v26 = vsel %vm1782_vm13, %v3049_v57, %v3056_v40  ;;  %v4067_v5 = vsel %vm1636_vm11, %v5568_v48, %v3860_v27  ;;  %v4065_v42 = vsel %vm1636_vm11, %v5567_v60, %v3860_v27  ;;  %v4072_v25 = vsel %vm1636_vm11, %v5570_v32, %v3862_v55  ;;  %v6169_v40 = vld [vmem:[#allocation3 + $0xd4] sm:$0xf] }
 0x25f   : > { %5877 = vmatprep.mubr.msk.bf16.mxu0 %vm2035_vm14, %v3057_v26  ;;  %v3064_v2 = vor.u32 %v3063_v1, %v3060_v19  ;;  %v4142_v38 = vsel %vm1717_vm12, %v4067_v5, %v3998_v15  ;;  %v4070_v7 = vsel %vm1636_vm11, %v5569_v44, %v3862_v55  ;;  %v5493_v31 = vcombine.low %v6169_v40, %v6169_v40 }
 0x260   : > { %v4254_v39 = vshrl.u32 %v4142_v38, 16  ;;  %v4257_v41 = vshll.u32 %v4142_v38, 16  ;;  %v5492_v18 = vcombine.low %v2308_v17, %v6170_v50 }
 0x261   : > { %4039 = vrot.lane.b32.xlu0 %v3976_v12, %s6212_s14  ;;  %v3996_v9 = vpop.permute.xlu0 %3995  ;;  %v3072_v34 = vsel %vm1782_vm13, %v3064_v2, %v3071_v46  ;;  %v4002_v29 = vpop.permute.xlu1 %4001 }
 0x262   : > { %v4256_v4 = vrot.slane %v4254_v39, 3  ;;  %v4259_v36 = vrot.slane %v4257_v41, 4  ;;  %v4140_v43 = vsel %vm1717_vm12, %v4065_v42, %v3996_v9  ;;  %5878 = vmatmul.mubr.msk.bf16.gmra.mrb[28].mxu0 %vm2035_vm14, %v3072_v34  ;;  %v4146_v54 = vsel %vm1717_vm12, %v4072_v25, %v4002_v29  ;;  %v3533_v25 = vld [vmem:[#allocation3 + $0xa4] sm:$0x8] }
 0x263   : > { %v4247_v8 = vshrl.u32 %v4140_v43, 16  ;;  %v4250_v13 = vshll.u32 %v4140_v43, 16  ;;  %v4269_v51 = vshrl.u32 %v4146_v54, 16  ;;  %v4272_v53 = vshll.u32 %v4146_v54, 16 }
 0x264   : > { %v4260_v10 = vor.u32 %v4259_v36, %v4256_v4  ;;  %v6171_v4 = vld [vmem:[#allocation3 + $0xac] sm:$0xf] }
 0x265   : > { %v4249_v14 = vrot.slane %v4247_v8, 3  ;;  %v4252_v61 = vrot.slane %v4250_v13, 4  ;;  %v4000_v56 = vpop.permute.xlu0 %3999  ;;  %v4271_v12 = vrot.slane %v4269_v51, 3  ;;  %v2636_v49 = vpop.permute.xlu1 %2635  ;;  %v4274_v20 = vrot.slane %v4272_v53, 4  ;;  %v6172_v53 = vld [vmem:[#allocation3 + $0xa8] sm:$0xf] }
 0x266   : > { %v4144_v6 = vsel %vm1717_vm12, %v4070_v7, %v4000_v56  ;;  %v2858_v60 = vsel %vm1636_vm11, %v5493_v31, %v2636_v49  ;;  %v2856_v38 = vsel %vm1636_vm11, %v5492_v18, %v2636_v49  ;;  %v5572_v36 = vcombine.low %v6171_v4, %v6171_v4  ;;  %v3536_v56 = vld [vmem:[#allocation3 + $0xb8] sm:$0x8] }
 0x267   : > { %v4253_v47 = vor.u32 %v4252_v61, %v4249_v14  ;;  %v4262_v45 = vshrl.u32 %v4144_v6, 16  ;;  %v4265_v21 = vshll.u32 %v4144_v6, 16  ;;  %v4275_v30 = vor.u32 %v4274_v20, %v4271_v12 }
 0x268   : > { %v5571_v7 = vcombine.low %v3533_v25, %v6172_v53 }
 0x269   : > { %v4264_v3 = vrot.slane %v4262_v45, 3  ;;  %v4267_v24 = vrot.slane %v4265_v21, 4  ;;  %v2634_v0 = vpop.permute.xlu0 %2633  ;;  %v4261_v28 = vsel %vm1782_vm13, %v4253_v47, %v4260_v10  ;;  %v2780_v55 = vpop.permute.xlu1 %2779  ;;  %v6173_v10 = vld [vmem:[#allocation3 + $0xc0] sm:$0xf]  ;;  %v6174_v45 = vld [vmem:[#allocation3 + $0xbc] sm:$0xf] }
 0x26a   : > { %v2853_v59 = vsel %vm1636_vm11, %v5491_v63, %v2634_v0  ;;  %5909 = vmatprep.mubr.msk.bf16.mxu1 %vm2035_vm14, %v4261_v28  ;;  %v2851_v19 = vsel %vm1636_vm11, %v5490_v11, %v2634_v0  ;;  %v5574_v12 = vcombine.low %v6173_v10, %v6173_v10  ;;  %v5573_v21 = vcombine.low %v3536_v56, %v6174_v45 }
 0x26b   : > { %v4268_v22 = vor.u32 %v4267_v24, %v4264_v3  ;;  %v2924_v48 = vsel %vm1717_vm12, %v2853_v59, %v2780_v55 }
 0x26c   : > { %v3080_v57 = vshrl.u32 %v2924_v48, 16  ;;  %v3083_v35 = vshll.u32 %v2924_v48, 16 }
 0x26d   : > { %v2778_v1 = vpop.permute.xlu0 %2777  ;;  %v4276_v62 = vsel %vm1782_vm13, %v4268_v22, %v4275_v30  ;;  %v2784_v16 = vpop.permute.xlu1 %2783 }
 0x26e   : > { %v3082_v27 = vrot.slane %v3080_v57, 3  ;;  %v3085_v26 = vrot.slane %v3083_v35, 4  ;;  %v2922_v33 = vsel %vm1717_vm12, %v2851_v19, %v2778_v1  ;;  %5910 = vmatmul.mubr.msk.bf16.gmra.mrb[56].mxu1 %vm2035_vm14, %v4276_v62  ;;  %v2928_v15 = vsel %vm1717_vm12, %v2858_v60, %v2784_v16  ;;  %v2311_v60 = vld [vmem:[#allocation3 + $0xe0] sm:$0x8] }
 0x26f   : > { %v3073_v32 = vshrl.u32 %v2922_v33, 16  ;;  %v3076_v5 = vshll.u32 %v2922_v33, 16  ;;  %v3095_v46 = vshrl.u32 %v2928_v15, 16  ;;  %v3098_v2 = vshll.u32 %v2928_v15, 16 }
 0x270   : > { %v3086_v44 = vor.u32 %v3085_v26, %v3082_v27  ;;  %v6175_v27 = vld [vmem:[#allocation3 + $0xe8] sm:$0xf] }
 0x271   : > { %v3075_v39 = vrot.slane %v3073_v32, 3  ;;  %v3078_v41 = vrot.slane %v3076_v5, 4  ;;  %v3097_v42 = vrot.slane %v3095_v46, 3  ;;  %v3866_v34 = vpop.permute.xlu1 %3865  ;;  %v3100_v29 = vrot.slane %v3098_v2, 4  ;;  %v6176_v2 = vld [vmem:[#allocation3 + $0xe4] sm:$0xf] }
 0x272   : > { %v2782_v52 = vpop.permute.xlu0 %2781  ;;  %v4082_v11 = vsel %vm1636_vm11, %v5574_v12, %v3866_v34  ;;  %v4080_v48 = vsel %vm1636_vm11, %v5573_v21, %v3866_v34  ;;  %v5495_v26 = vcombine.low %v6175_v27, %v6175_v27 }
 0x273   : > { %v2926_v9 = vsel %vm1717_vm12, %v2856_v38, %v2782_v52  ;;  %v3079_v43 = vor.u32 %v3078_v41, %v3075_v39  ;;  %v3101_v37 = vor.u32 %v3100_v29, %v3097_v42  ;;  %v5494_v38 = vcombine.low %v2311_v60, %v6176_v2  ;;  %v2314_v52 = vld [vmem:[#allocation3 + $0xf4] sm:$0x8] }
 0x274   : > { %v3088_v8 = vshrl.u32 %v2926_v9, 16  ;;  %v3091_v13 = vshll.u32 %v2926_v9, 16 }
 0x275   : > { %v3087_v61 = vsel %vm1782_vm13, %v3079_v43, %v3086_v44  ;;  %v4006_v49 = vpop.permute.xlu1 %4005  ;;  %v6177_v44 = vld [vmem:[#allocation3 + $0xfc] sm:$0xf] }
 0x276   : > { %v3090_v54 = vrot.slane %v3088_v8, 3  ;;  %v3093_v51 = vrot.slane %v3091_v13, 4  ;;  %v3864_v14 = vpop.permute.xlu0 %3863  ;;  %5881 = vmatprep.mubr.msk.bf16.mxu0 %vm2035_vm14, %v3087_v61  ;;  %v5497_v42 = vcombine.low %v6177_v44, %v6177_v44  ;;  %v6178_v8 = vld [vmem:[#allocation3 + $0xf8] sm:$0xf] }
 0x277   : > { %v4077_v6 = vsel %vm1636_vm11, %v5572_v36, %v3864_v14  ;;  %v4075_v3 = vsel %vm1636_vm11, %v5571_v7, %v3864_v14  ;;  %v5496_v13 = vcombine.low %v2314_v52, %v6178_v8 }
 0x278   : > { %v3094_v58 = vor.u32 %v3093_v51, %v3090_v54  ;;  %v4150_v63 = vsel %vm1717_vm12, %v4077_v6, %v4006_v49 }
 0x279   : > { %v4284_v47 = vshrl.u32 %v4150_v63, 16  ;;  %v4287_v20 = vshll.u32 %v4150_v63, 16  ;;  %v4010_v40 = vpop.permute.xlu1 %4009 }
 0x27a   : > { %v4004_v24 = vpop.permute.xlu0 %4003  ;;  %v3102_v23 = vsel %vm1782_vm13, %v3094_v58, %v3101_v37  ;;  %v4154_v55 = vsel %vm1717_vm12, %v4082_v11, %v4010_v40  ;;  %v3539_v11 = vld [vmem:[#allocation3 + $0xcc] sm:$0x8] }
 0x27b   : > { %v4286_v0 = vrot.slane %v4284_v47, 3  ;;  %v4289_v28 = vrot.slane %v4287_v20, 4  ;;  %v4148_v17 = vsel %vm1717_vm12, %v4075_v3, %v4004_v24  ;;  %5882 = vmatmul.mubr.msk.bf16.gmra.mrb[32].mxu0 %vm2035_vm14, %v3102_v23  ;;  %v4299_v30 = vshrl.u32 %v4154_v55, 16 }
 0x27c   : > { %v4277_v31 = vshrl.u32 %v4148_v17, 16  ;;  %v4280_v59 = vshll.u32 %v4148_v17, 16  ;;  %v4302_v22 = vshll.u32 %v4154_v55, 16 }
 0x27d   : > { %v4290_v18 = vor.u32 %v4289_v28, %v4286_v0  ;;  %v4301_v19 = vrot.slane %v4299_v30, 3  ;;  %v2640_v62 = vpop.permute.xlu1 %2639  ;;  %v6179_v0 = vld [vmem:[#allocation3 + $0xd4] sm:$0xf] }
 0x27e   : > { %v4279_v57 = vrot.slane %v4277_v31, 3  ;;  %v4282_v35 = vrot.slane %v4280_v59, 4  ;;  %v4008_v50 = vpop.permute.xlu0 %4007  ;;  %v4304_v16 = vrot.slane %v4302_v22, 4  ;;  %v2868_v7 = vsel %vm1636_vm11, %v5497_v42, %v2640_v62  ;;  %v6180_v22 = vld [vmem:[#allocation3 + $0xd0] sm:$0xf] }
 0x27f   : > { %v4152_v1 = vsel %vm1717_vm12, %v4080_v48, %v4008_v50  ;;  %v2866_v63 = vsel %vm1636_vm11, %v5496_v13, %v2640_v62  ;;  %v5576_v28 = vcombine.low %v6179_v0, %v6179_v0  ;;  %v5575_v48 = vcombine.low %v3539_v11, %v6180_v22  ;;  %v3542_v50 = vld [vmem:[#allocation3 + $0xe0] sm:$0x8] }
 0x280   : > { %v4283_v33 = vor.u32 %v4282_v35, %v4279_v57  ;;  %v4292_v32 = vshrl.u32 %v4152_v1, 16  ;;  %v4295_v5 = vshll.u32 %v4152_v1, 16  ;;  %v4305_v25 = vor.u32 %v4304_v16, %v4301_v19 }
 0x281   : > { %v2788_v34 = vpop.permute.xlu1 %2787 }
 0x282   : > { %v4294_v15 = vrot.slane %v4292_v32, 3  ;;  %v4297_v46 = vrot.slane %v4295_v5, 4  ;;  %v2638_v39 = vpop.permute.xlu0 %2637  ;;  %v4291_v41 = vsel %vm1782_vm13, %v4283_v33, %v4290_v18  ;;  %v6181_v18 = vld [vmem:[#allocation3 + $0xe8] sm:$0xf]  ;;  %v6182_v32 = vld [vmem:[#allocation3 + $0xe4] sm:$0xf] }
 0x283   : > { %v2863_v9 = vsel %vm1636_vm11, %v5495_v26, %v2638_v39  ;;  %5913 = vmatprep.mubr.msk.bf16.mxu1 %vm2035_vm14, %v4291_v41  ;;  %v2861_v54 = vsel %vm1636_vm11, %v5494_v38, %v2638_v39  ;;  %v5578_v19 = vcombine.low %v6181_v18, %v6181_v18  ;;  %v5577_v5 = vcombine.low %v3542_v50, %v6182_v32 }
 0x284   : > { %v4298_v4 = vor.u32 %v4297_v46, %v4294_v15  ;;  %v2932_v36 = vsel %vm1717_vm12, %v2863_v9, %v2788_v34 }
 0x285   : > { %v3110_v43 = vshrl.u32 %v2932_v36, 16  ;;  %v3113_v29 = vshll.u32 %v2932_v36, 16  ;;  %v2792_v10 = vpop.permute.xlu1 %2791 }
 0x286   : > { %v2786_v51 = vpop.permute.xlu0 %2785  ;;  %v4306_v53 = vsel %vm1782_vm13, %v4298_v4, %v4305_v25  ;;  %v2936_v49 = vsel %vm1717_vm12, %v2868_v7, %v2792_v10  ;;  %v2317_v7 = vld [vmem:[#allocation3 + $0x108] sm:$0x8] }
 0x287   : > { %v3112_v14 = vrot.slane %v3110_v43, 3  ;;  %v3115_v61 = vrot.slane %v3113_v29, 4  ;;  %v2930_v56 = vsel %vm1717_vm12, %v2861_v54, %v2786_v51  ;;  %5914 = vmatmul.mubr.msk.bf16.gmra.mrb[60].mxu1 %vm2035_vm14, %v4306_v53  ;;  %v3125_v37 = vshrl.u32 %v2936_v49, 16 }
 0x288   : > { %v3103_v12 = vshrl.u32 %v2930_v56, 16  ;;  %v3106_v6 = vshll.u32 %v2930_v56, 16  ;;  %v3128_v58 = vshll.u32 %v2936_v49, 16 }
 0x289   : > { %v3116_v21 = vor.u32 %v3115_v61, %v3112_v14  ;;  %v3127_v3 = vrot.slane %v3125_v37, 3  ;;  %v3870_v23 = vpop.permute.xlu1 %3869  ;;  %v6183_v14 = vld [vmem:[#allocation3 + $0x110] sm:$0xf] }
 0x28a   : > { %v3105_v47 = vrot.slane %v3103_v12, 3  ;;  %v3108_v20 = vrot.slane %v3106_v6, 4  ;;  %v2790_v45 = vpop.permute.xlu0 %2789  ;;  %v3130_v40 = vrot.slane %v3128_v58, 4  ;;  %v4092_v38 = vsel %vm1636_vm11, %v5578_v19, %v3870_v23  ;;  %v6184_v58 = vld [vmem:[#allocation3 + $0x10c] sm:$0xf] }
 0x28b   : > { %v2934_v24 = vsel %vm1717_vm12, %v2866_v63, %v2790_v45  ;;  %v4090_v36 = vsel %vm1636_vm11, %v5577_v5, %v3870_v23  ;;  %v5499_v61 = vcombine.low %v6183_v14, %v6183_v14  ;;  %v5498_v63 = vcombine.low %v2317_v7, %v6184_v58  ;;  %v2320_v45 = vld [vmem:[#allocation3 + $0x11c] sm:$0x8]  ;;  %v3548_v14 = vld [vmem:[#allocation3 + $0x108] sm:$0x8] }
 0x28c   : > { %v3109_v17 = vor.u32 %v3108_v20, %v3105_v47  ;;  %v3118_v31 = vshrl.u32 %v2934_v24, 16  ;;  %v3121_v59 = vshll.u32 %v2934_v24, 16  ;;  %v3131_v60 = vor.u32 %v3130_v40, %v3127_v3 }
 0x28d   : > { %v4014_v62 = vpop.permute.xlu1 %4013 }
 0x28e   : > { %v3120_v55 = vrot.slane %v3118_v31, 3  ;;  %v3123_v30 = vrot.slane %v3121_v59, 4  ;;  %v3868_v57 = vpop.permute.xlu0 %3867  ;;  %v3117_v35 = vsel %vm1782_vm13, %v3109_v17, %v3116_v21  ;;  %v6185_v21 = vld [vmem:[#allocation3 + $0x124] sm:$0xf]  ;;  %v6186_v31 = vld [vmem:[#allocation3 + $0x120] sm:$0xf] }
 0x28f   : > { %v4087_v1 = vsel %vm1636_vm11, %v5576_v28, %v3868_v57  ;;  %5885 = vmatprep.mubr.msk.bf16.mxu0 %vm2035_vm14, %v3117_v35  ;;  %v4085_v15 = vsel %vm1636_vm11, %v5575_v48, %v3868_v57  ;;  %v5501_v3 = vcombine.low %v6185_v21, %v6185_v21  ;;  %v5500_v59 = vcombine.low %v2320_v45, %v6186_v31  ;;  %v4840_v48 = vld [vmem:[%s8712_s3] sm:$0xf] }
 0x290   : > { %v3124_v27 = vor.u32 %v3123_v30, %v3120_v55  ;;  %v4158_v26 = vsel %vm1717_vm12, %v4087_v1, %v4014_v62  ;;  %5974 = vmatprep.subr.msk.bf16.mxu0 %vm2084_vm10, %v4840_v48 }
 0x291   : > { %v4314_v33 = vshrl.u32 %v4158_v26, 16  ;;  %v4317_v16 = vshll.u32 %v4158_v26, 16  ;;  %v4018_v44 = vpop.permute.xlu1 %4017 }
 0x292   : > { %v4012_v46 = vpop.permute.xlu0 %4011  ;;  %v3132_v2 = vsel %vm1782_vm13, %v3124_v27, %v3131_v60  ;;  %v4162_v34 = vsel %vm1717_vm12, %v4092_v38, %v4018_v44 }
 0x293   : > { %v4316_v39 = vrot.slane %v4314_v33, 3  ;;  %v4319_v41 = vrot.slane %v4317_v16, 4  ;;  %v4156_v52 = vsel %vm1717_vm12, %v4085_v15, %v4012_v46  ;;  %5886 = vmatmul.mubr.msk.bf16.gmra.mrb[36].mxu0 %vm2035_vm14, %v3132_v2  ;;  %v4329_v25 = vshrl.u32 %v4162_v34, 16 }
 0x294   : > { %v4307_v42 = vshrl.u32 %v4156_v52, 16  ;;  %v4310_v9 = vshll.u32 %v4156_v52, 16  ;;  %v4332_v4 = vshll.u32 %v4162_v34, 16  ;;  %v4890_v33 = vsel %vm2084_vm10, %v4840_v48, 0  ;;  %v6187_v52 = vld [vmem:[#allocation3 + $0xfc] sm:$0xf] }
 0x295   : > { %v4320_v13 = vor.u32 %v4319_v41, %v4316_v39  ;;  %v4331_v54 = vrot.slane %v4329_v25, 3  ;;  %v2644_v53 = vpop.permute.xlu1 %2643  ;;  %5934 = vmatpush3.bf16.msra.mxu0 %v4890_v33  ;;  %v3545_v41 = vld [vmem:[#allocation3 + $0xf4] sm:$0x8]  ;;  %v5580_v44 = vcombine.low %v6187_v52, %v6187_v52  ;;  %v6191_v33 = vld [vmem:[#allocation3 + $0x138] sm:$0xf] }
 0x296   : > { %v4309_v43 = vrot.slane %v4307_v42, 3  ;;  %v4312_v29 = vrot.slane %v4310_v9, 4  ;;  %v4016_v8 = vpop.permute.xlu0 %4015  ;;  %v4334_v10 = vrot.slane %v4332_v4, 4  ;;  %v2878_v57 = vsel %vm1636_vm11, %v5501_v3, %v2644_v53 }
 0x297   : > { %v4160_v51 = vsel %vm1717_vm12, %v4090_v36, %v4016_v8  ;;  %v2876_v16 = vsel %vm1636_vm11, %v5500_v59, %v2644_v53 }
 0x298   : > { %v4313_v56 = vor.u32 %v4312_v29, %v4309_v43  ;;  %v4322_v12 = vshrl.u32 %v4160_v51, 16  ;;  %v4325_v6 = vshll.u32 %v4160_v51, 16  ;;  %v4335_v11 = vor.u32 %v4334_v10, %v4331_v54 }
 0x299   : > { %v2796_v23 = vpop.permute.xlu1 %2795 }
 0x29a   : > { %v4324_v49 = vrot.slane %v4322_v12, 3  ;;  %v4327_v37 = vrot.slane %v4325_v6, 4  ;;  %v2642_v47 = vpop.permute.xlu0 %2641  ;;  %v4321_v20 = vsel %vm1782_vm13, %v4313_v56, %v4320_v13  ;;  %v6188_v13 = vld [vmem:[#allocation3 + $0xf8] sm:$0xf] }
 0x29b   : > { %v2873_v24 = vsel %vm1636_vm11, %v5499_v61, %v2642_v47  ;;  %5917 = vmatprep.mubr.msk.bf16.mxu1 %vm2035_vm14, %v4321_v20  ;;  %v2871_v55 = vsel %vm1636_vm11, %v5498_v63, %v2642_v47  ;;  %v5831_v34 = vpop.f32.mrb[16].mxu1  ;;  %v5579_v54 = vcombine.low %v3545_v41, %v6188_v13  ;;  %v6189_v61 = vld [vmem:[#allocation3 + $0x110] sm:$0xf]  ;;  %v6190_v47 = vld [vmem:[#allocation3 + $0x10c] sm:$0xf] }
 0x29c   : > { %v4328_v0 = vor.u32 %v4327_v37, %v4324_v49  ;;  %v2940_v28 = vsel %vm1717_vm12, %v2873_v24, %v2796_v23  ;;  %2251 = vst.msk [vmem:[#allocation2 + $0x10] sm:$0xff] %vm1636_vm11, %v5831_v34  ;;  %v2122_v36 = vpop.f32.mrb[17].mxu1  ;;  %v5582_v56 = vcombine.low %v6189_v61, %v6189_v61  ;;  %v5581_v20 = vcombine.low %v3548_v14, %v6190_v47 }
 0x29d   : > { %v3140_v17 = vshrl.u32 %v2940_v28, 16  ;;  %v3143_v40 = vshll.u32 %v2940_v28, 16  ;;  %v2800_v19 = vpop.permute.xlu1 %2799  ;;  %2249 = vst.msk [vmem:[#allocation2] sm:$0xff] %vm1636_vm11, %v2122_v36  ;;  %v5832_v43 = vpop.f32.mrb[18].mxu1 }
 0x29e   : > { %v2794_v30 = vpop.permute.xlu0 %2793  ;;  %v4336_v22 = vsel %vm1782_vm13, %v4328_v0, %v4335_v11  ;;  %v2944_v60 = vsel %vm1717_vm12, %v2878_v57, %v2800_v19  ;;  %2252 = vst.msk [vmem:[#allocation2 + $0x18] sm:$0xff] %vm1636_vm11, %v5832_v43  ;;  %v2125_v7 = vpop.f32.mrb[19].mxu1 }
 0x29f   : > { %v3142_v35 = vrot.slane %v3140_v17, 3  ;;  %v3145_v50 = vrot.slane %v3143_v40, 4  ;;  %v2938_v18 = vsel %vm1717_vm12, %v2871_v55, %v2794_v30  ;;  %5918 = vmatmul.mubr.msk.bf16.gmra.mrb[64].mxu1 %vm2035_vm14, %v4336_v22  ;;  %v3155_v27 = vshrl.u32 %v2944_v60, 16  ;;  %2250 = vst.msk [vmem:[#allocation2 + $0x8] sm:$0xff] %vm1636_vm11, %v2125_v7 }
 0x2a0   : > { %v3133_v1 = vshrl.u32 %v2938_v18, 16  ;;  %v3136_v62 = vshll.u32 %v2938_v18, 16  ;;  %v3158_v26 = vshll.u32 %v2944_v60, 16 }
 0x2a1   : > { %v3146_v46 = vor.u32 %v3145_v50, %v3142_v35  ;;  %v3157_v2 = vrot.slane %v3155_v27, 3  ;;  %v3874_v39 = vpop.permute.xlu1 %3873 }
 0x2a2   : > { %v3135_v32 = vrot.slane %v3133_v1, 3  ;;  %v3138_v5 = vrot.slane %v3136_v62, 4  ;;  %v3160_v9 = vrot.slane %v3158_v26, 4  ;;  %v4102_v24 = vsel %vm1636_vm11, %v5582_v56, %v3874_v39  ;;  %v2323_v26 = vld [vmem:[#allocation3 + $0x130] sm:$0x8] }
 0x2a3   : > { %v2798_v15 = vpop.permute.xlu0 %2797  ;;  %v5835_v17 = vpop.f32.mrb[20].mxu1  ;;  %v4100_v48 = vsel %vm1636_vm11, %v5581_v20, %v3874_v39  ;;  %v6192_v39 = vld [vmem:[#allocation3 + $0x134] sm:$0xf] }
 0x2a4   : > { %v2942_v38 = vsel %vm1717_vm12, %v2876_v16, %v2798_v15  ;;  %v3139_v42 = vor.u32 %v3138_v5, %v3135_v32  ;;  %v3161_v6 = vor.u32 %v3160_v9, %v3157_v2  ;;  %2255 = vst.msk [vmem:[#allocation2 + $0x30] sm:$0xff] %vm1636_vm11, %v5835_v17  ;;  %v2138_v55 = vpop.f32.mrb[21].mxu1  ;;  %v5503_v16 = vcombine.low %v6191_v33, %v6191_v33  ;;  %v6193_v9 = vld [vmem:[#allocation3 + $0x14c] sm:$0xf]  ;;  %v6197_v33 = vld [vmem:[#allocation3 + $0x138] sm:$0xf] }
 0x2a5   : > { %v3148_v25 = vshrl.u32 %v2942_v38, 16  ;;  %v3151_v4 = vshll.u32 %v2942_v38, 16  ;;  %v4022_v12 = vpop.permute.xlu1 %4021  ;;  %2253 = vst.msk [vmem:[#allocation2 + $0x20] sm:$0xff] %vm1636_vm11, %v2138_v55  ;;  %v5836_v57 = vpop.f32.mrb[22].mxu1  ;;  %v5502_v41 = vcombine.low %v2323_v26, %v6192_v39  ;;  %v5505_v34 = vcombine.low %v6193_v9, %v6193_v9  ;;  %v6195_v55 = vld [vmem:[#allocation3 + $0x124] sm:$0xf] }
 0x2a6   : > { %v3147_v53 = vsel %vm1782_vm13, %v3139_v42, %v3146_v46  ;;  %2256 = vst.msk [vmem:[#allocation2 + $0x38] sm:$0xff] %vm1636_vm11, %v5836_v57  ;;  %v2141_v1 = vpop.f32.mrb[23].mxu1  ;;  %v2326_v42 = vld [vmem:[#allocation3 + $0x144] sm:$0x8]  ;;  %v3554_v26 = vld [vmem:[#allocation3 + $0x130] sm:$0x8] }
 0x2a7   : > { %v3150_v29 = vrot.slane %v3148_v25, 3  ;;  %v3153_v8 = vrot.slane %v3151_v4, 4  ;;  %v3872_v51 = vpop.permute.xlu0 %3871  ;;  %5889 = vmatprep.mubr.msk.bf16.mxu0 %vm2035_vm14, %v3147_v53  ;;  %2254 = vst.msk [vmem:[#allocation2 + $0x28] sm:$0xff] %vm1636_vm11, %v2141_v1  ;;  %v6194_v53 = vld [vmem:[#allocation3 + $0x148] sm:$0xf] }
 0x2a8   : > { %v4097_v10 = vsel %vm1636_vm11, %v5580_v44, %v3872_v51  ;;  %v4095_v45 = vsel %vm1636_vm11, %v5579_v54, %v3872_v51  ;;  %v5504_v7 = vcombine.low %v2326_v42, %v6194_v53  ;;  %v6198_v42 = vld [vmem:[#allocation3 + $0x134] sm:$0xf] }
 0x2a9   : > { %v3154_v49 = vor.u32 %v3153_v8, %v3150_v29  ;;  %v4166_v37 = vsel %vm1717_vm12, %v4097_v10, %v4022_v12  ;;  %v4026_v28 = vpop.permute.xlu1 %4025  ;;  %v5585_v9 = vcombine.low %v3554_v26, %v6198_v42 }
 0x2aa   : > { %v4344_v58 = vshrl.u32 %v4166_v37, 16  ;;  %v4347_v63 = vshll.u32 %v4166_v37, 16  ;;  %v4170_v59 = vsel %vm1717_vm12, %v4102_v24, %v4026_v28 }
 0x2ab   : > { %v4020_v21 = vpop.permute.xlu0 %4019  ;;  %v3162_v3 = vsel %vm1782_vm13, %v3154_v49, %v3161_v6  ;;  %v4359_v30 = vshrl.u32 %v4170_v59, 16  ;;  %v4362_v22 = vshll.u32 %v4170_v59, 16  ;;  %v3551_v59 = vld [vmem:[#allocation3 + $0x11c] sm:$0x8] }
 0x2ac   : > { %v4346_v23 = vrot.slane %v4344_v58, 3  ;;  %v4349_v11 = vrot.slane %v4347_v63, 4  ;;  %v4164_v0 = vsel %vm1717_vm12, %v4095_v45, %v4020_v21  ;;  %5890 = vmatmul.mubr.msk.bf16.gmra.mrb[40].mxu0 %vm2035_vm14, %v3162_v3  ;;  %v5839_v29 = vpop.f32.mrb[24].mxu1 }
 0x2ad   : > { %v4337_v40 = vshrl.u32 %v4164_v0, 16  ;;  %v4340_v31 = vshll.u32 %v4164_v0, 16  ;;  %v4361_v62 = vrot.slane %v4359_v30, 3  ;;  %v2648_v27 = vpop.permute.xlu1 %2647  ;;  %v4364_v5 = vrot.slane %v4362_v22, 4  ;;  %2259 = vst.msk [vmem:[#allocation2 + $0x50] sm:$0xff] %vm1636_vm11, %v5839_v29  ;;  %v2154_v51 = vpop.f32.mrb[25].mxu1 }
 0x2ae   : > { %v4350_v19 = vor.u32 %v4349_v11, %v4346_v23  ;;  %2257 = vst.msk [vmem:[#allocation2 + $0x40] sm:$0xff] %vm1636_vm11, %v2154_v51  ;;  %v5840_v61 = vpop.f32.mrb[26].mxu1  ;;  %v2888_v12 = vsel %vm1636_vm11, %v5505_v34, %v2648_v27  ;;  %v2886_v24 = vsel %vm1636_vm11, %v5504_v7, %v2648_v27  ;;  %v5584_v30 = vcombine.low %v6195_v55, %v6195_v55  ;;  %v6201_v55 = vld [vmem:[#allocation3 + $0x160] sm:$0xf] }
 0x2af   : > { %v4339_v35 = vrot.slane %v4337_v40, 3  ;;  %v4342_v50 = vrot.slane %v4340_v31, 4  ;;  %v4024_v18 = vpop.permute.xlu0 %4023  ;;  %v4365_v36 = vor.u32 %v4364_v5, %v4361_v62  ;;  %2260 = vst.msk [vmem:[#allocation2 + $0x58] sm:$0xff] %vm1636_vm11, %v5840_v61  ;;  %v2157_v37 = vpop.f32.mrb[27].mxu1 }
 0x2b0   : > { %v4168_v60 = vsel %vm1717_vm12, %v4100_v48, %v4024_v18  ;;  %2258 = vst.msk [vmem:[#allocation2 + $0x48] sm:$0xff] %vm1636_vm11, %v2157_v37 }
 0x2b1   : > { %v4343_v32 = vor.u32 %v4342_v50, %v4339_v35  ;;  %v4352_v15 = vshrl.u32 %v4168_v60, 16  ;;  %v4355_v46 = vshll.u32 %v4168_v60, 16  ;;  %v2804_v4 = vpop.permute.xlu1 %2803 }
 0x2b3   : > { %v4354_v2 = vrot.slane %v4352_v15, 3  ;;  %v4357_v38 = vrot.slane %v4355_v46, 4  ;;  %v2646_v52 = vpop.permute.xlu0 %2645  ;;  %v4351_v44 = vsel %vm1782_vm13, %v4343_v32, %v4350_v19  ;;  %v6196_v19 = vld [vmem:[#allocation3 + $0x120] sm:$0xf] }
 0x2b4   : > { %v2883_v25 = vsel %vm1636_vm11, %v5503_v16, %v2646_v52  ;;  %5921 = vmatprep.mubr.msk.bf16.mxu1 %vm2035_vm14, %v4351_v44  ;;  %v2881_v14 = vsel %vm1636_vm11, %v5502_v41, %v2646_v52  ;;  %v5583_v1 = vcombine.low %v3551_v59, %v6196_v19  ;;  %v5586_v16 = vcombine.low %v6197_v33, %v6197_v33  ;;  %v3560_v59 = vld [vmem:[#allocation3 + $0x158] sm:$0x8] }
 0x2b5   : > { %v4358_v43 = vor.u32 %v4357_v38, %v4354_v2  ;;  %v2948_v8 = vsel %vm1717_vm12, %v2883_v25, %v2804_v4  ;;  %v2808_v63 = vpop.permute.xlu1 %2807 }
 0x2b6   : > { %v3170_v13 = vshrl.u32 %v2948_v8, 16  ;;  %v3173_v54 = vshll.u32 %v2948_v8, 16  ;;  %v2952_v45 = vsel %vm1717_vm12, %v2888_v12, %v2808_v63  ;;  %v3557_v63 = vld [vmem:[#allocation3 + $0x144] sm:$0x8] }
 0x2b7   : > { %v2802_v56 = vpop.permute.xlu0 %2801  ;;  %v4366_v10 = vsel %vm1782_vm13, %v4358_v43, %v4365_v36  ;;  %v3185_v21 = vshrl.u32 %v2952_v45, 16  ;;  %v3188_v3 = vshll.u32 %v2952_v45, 16 }
 0x2b8   : > { %v3172_v6 = vrot.slane %v3170_v13, 3  ;;  %v3175_v49 = vrot.slane %v3173_v54, 4  ;;  %v2946_v58 = vsel %vm1717_vm12, %v2881_v14, %v2802_v56  ;;  %5922 = vmatmul.mubr.msk.bf16.gmra.mrb[68].mxu1 %vm2035_vm14, %v4366_v10 }
 0x2b9   : > { %v3163_v47 = vshrl.u32 %v2946_v58, 16  ;;  %v3166_v20 = vshll.u32 %v2946_v58, 16  ;;  %v3187_v17 = vrot.slane %v3185_v21, 3  ;;  %v3878_v31 = vpop.permute.xlu1 %3877  ;;  %v3190_v48 = vrot.slane %v3188_v3, 4 }
 0x2ba   : > { %v3176_v28 = vor.u32 %v3175_v49, %v3172_v6  ;;  %v5843_v60 = vpop.f32.mrb[28].mxu1  ;;  %v4112_v36 = vsel %vm1636_vm11, %v5586_v16, %v3878_v31  ;;  %v4110_v61 = vsel %vm1636_vm11, %v5585_v9, %v3878_v31 }
 0x2bb   : > { %v3165_v23 = vrot.slane %v3163_v47, 3  ;;  %v3168_v11 = vrot.slane %v3166_v20, 4  ;;  %v2806_v0 = vpop.permute.xlu0 %2805  ;;  %2263 = vst.msk [vmem:[#allocation2 + $0x70] sm:$0xff] %vm1636_vm11, %v5843_v60  ;;  %v2170_v15 = vpop.f32.mrb[29].mxu1  ;;  %v3191_v46 = vor.u32 %v3190_v48, %v3187_v17  ;;  %v6199_v47 = vld [vmem:[#allocation3 + $0x14c] sm:$0xf] }
 0x2bc   : > { %v2950_v40 = vsel %vm1717_vm12, %v2886_v24, %v2806_v0  ;;  %2261 = vst.msk [vmem:[#allocation2 + $0x60] sm:$0xff] %vm1636_vm11, %v2170_v15  ;;  %v5844_v39 = vpop.f32.mrb[30].mxu1  ;;  %v5588_v20 = vcombine.low %v6199_v47, %v6199_v47  ;;  %v6200_v0 = vld [vmem:[#allocation3 + $0x148] sm:$0xf] }
 0x2bd   : > { %v3169_v22 = vor.u32 %v3168_v11, %v3165_v23  ;;  %v3178_v57 = vshrl.u32 %v2950_v40, 16  ;;  %v3181_v35 = vshll.u32 %v2950_v40, 16  ;;  %v4030_v5 = vpop.permute.xlu1 %4029  ;;  %2264 = vst.msk [vmem:[#allocation2 + $0x78] sm:$0xff] %vm1636_vm11, %v5844_v39  ;;  %v2173_v44 = vpop.f32.mrb[31].mxu1 }
 0x2be   : > { %2262 = vst.msk [vmem:[#allocation2 + $0x68] sm:$0xff] %vm1636_vm11, %v2173_v44 }
 0x2bf   : > { %v3180_v50 = vrot.slane %v3178_v57, 3  ;;  %v3183_v18 = vrot.slane %v3181_v35, 4  ;;  %v3876_v62 = vpop.permute.xlu0 %3875  ;;  %v3177_v27 = vsel %vm1782_vm13, %v3169_v22, %v3176_v28  ;;  %v5587_v28 = vcombine.low %v3557_v63, %v6200_v0 }
 0x2c0   : > { %v4107_v32 = vsel %vm1636_vm11, %v5584_v30, %v3876_v62  ;;  %5893 = vmatprep.mubr.msk.bf16.mxu0 %vm2035_vm14, %v3177_v27  ;;  %v4105_v34 = vsel %vm1636_vm11, %v5583_v1, %v3876_v62  ;;  %v5590_v30 = vcombine.low %v6201_v55, %v6201_v55  ;;  %v6202_v27 = vld [vmem:[#allocation3 + $0x15c] sm:$0xf] }
 0x2c1   : > { %v3184_v2 = vor.u32 %v3183_v18, %v3180_v50  ;;  %v4174_v38 = vsel %vm1717_vm12, %v4107_v32, %v4030_v5  ;;  %v4034_v13 = vpop.permute.xlu1 %4033  ;;  %v5589_v26 = vcombine.low %v3560_v59, %v6202_v27 }
 0x2c2   : > { %v4374_v41 = vshrl.u32 %v4174_v38, 16  ;;  %v4377_v52 = vshll.u32 %v4174_v38, 16  ;;  %v4178_v53 = vsel %vm1717_vm12, %v4112_v36, %v4034_v13 }
 0x2c3   : > { %v4028_v25 = vpop.permute.xlu0 %4027  ;;  %v3192_v4 = vsel %vm1782_vm13, %v3184_v2, %v3191_v46  ;;  %v4389_v7 = vshrl.u32 %v4178_v53, 16  ;;  %v4392_v14 = vshll.u32 %v4178_v53, 16 }
 0x2c4   : > { %v4376_v43 = vrot.slane %v4374_v41, 3  ;;  %v4379_v29 = vrot.slane %v4377_v52, 4  ;;  %v4172_v8 = vsel %vm1717_vm12, %v4105_v34, %v4028_v25  ;;  %5894 = vmatmul.mubr.msk.bf16.gmra.mrb[44].mxu0 %vm2035_vm14, %v3192_v4 }
 0x2c5   : > { %v4367_v54 = vshrl.u32 %v4172_v8, 16  ;;  %v4370_v51 = vshll.u32 %v4172_v8, 16  ;;  %v4391_v49 = vrot.slane %v4389_v7, 3  ;;  %v3882_v58 = vpop.permute.xlu1 %3881  ;;  %v4394_v21 = vrot.slane %v4392_v14, 4 }
 0x2c6   : > { %v4380_v6 = vor.u32 %v4379_v29, %v4376_v43  ;;  %v4122_v5 = vsel %vm1636_vm11, %v5590_v30, %v3882_v58  ;;  %v4120_v9 = vsel %vm1636_vm11, %v5589_v26, %v3882_v58 }
 0x2c7   : > { %v4369_v56 = vrot.slane %v4367_v54, 3  ;;  %v4372_v10 = vrot.slane %v4370_v51, 4  ;;  %v4032_v12 = vpop.permute.xlu0 %4031  ;;  %v5847_v40 = vpop.f32.mrb[32].mxu1  ;;  %v4395_v35 = vor.u32 %v4394_v21, %v4391_v49  ;;  %v3420_v21 = vld [vmem:[#allocation2 + $0x10] sm:$0xff] }
 0x2c8   : > { %v4176_v37 = vsel %vm1717_vm12, %v4110_v61, %v4032_v12  ;;  %2267 = vst.msk [vmem:[#allocation2 + $0x90] sm:$0xff] %vm1636_vm11, %v5847_v40  ;;  %v2186_v57 = vpop.f32.mrb[33].mxu1 }
 0x2c9   : > { %v4373_v45 = vor.u32 %v4372_v10, %v4369_v56  ;;  %v4382_v3 = vshrl.u32 %v4176_v37, 16  ;;  %v4385_v24 = vshll.u32 %v4176_v37, 16  ;;  %v4038_v48 = vpop.permute.xlu1 %4037  ;;  %2265 = vst.msk [vmem:[#allocation2 + $0x80] sm:$0xff] %vm1636_vm11, %v2186_v57  ;;  %v5848_v19 = vpop.f32.mrb[34].mxu1 }
 0x2ca   : > { %2268 = vst.msk [vmem:[#allocation2 + $0x98] sm:$0xff] %vm1636_vm11, %v5848_v19  ;;  %v2189_v60 = vpop.f32.mrb[35].mxu1  ;;  %v3422_v19 = vld [vmem:[#allocation2 + $0x20] sm:$0xff] }
 0x2cb   : > { %v4384_v23 = vrot.slane %v4382_v3, 3  ;;  %v4387_v11 = vrot.slane %v4385_v24, 4  ;;  %v3880_v17 = vpop.permute.xlu0 %3879  ;;  %v4381_v31 = vsel %vm1782_vm13, %v4373_v45, %v4380_v6  ;;  %2266 = vst.msk [vmem:[#allocation2 + $0x88] sm:$0xff] %vm1636_vm11, %v2189_v60  ;;  %v3425_v60 = vld [vmem:[#allocation2 + $0x38] sm:$0xff] }
 0x2cc   : > { %v4117_v22 = vsel %vm1636_vm11, %v5588_v20, %v3880_v17  ;;  %5925 = vmatprep.mubr.msk.bf16.mxu1 %vm2035_vm14, %v4381_v31  ;;  %v4115_v33 = vsel %vm1636_vm11, %v5587_v28, %v3880_v17  ;;  %v3421_v28 = vld [vmem:[#allocation2 + $0x18] sm:$0xff]  ;;  %v3419_v31 = vld [vmem:[#allocation2 + $0x8] sm:$0xff] }
 0x2cd   : > { %v4388_v50 = vor.u32 %v4387_v11, %v4384_v23  ;;  %v4182_v18 = vsel %vm1717_vm12, %v4117_v22, %v4038_v48  ;;  %v4042_v38 = vpop.permute.xlu1 %4041  ;;  %v3418_v23 = vld [vmem:[#allocation2] sm:$0xff] }
 0x2ce   : > { %v4404_v1 = vshrl.u32 %v4182_v18, 16  ;;  %v4407_v62 = vshll.u32 %v4182_v18, 16  ;;  %v4186_v52 = vsel %vm1717_vm12, %v4122_v5, %v4042_v38 }
 0x2cf   : > { %v4036_v16 = vpop.permute.xlu0 %4035  ;;  %v4396_v32 = vsel %vm1782_vm13, %v4388_v50, %v4395_v35  ;;  %v4419_v44 = vshrl.u32 %v4186_v52, 16  ;;  %v4422_v42 = vshll.u32 %v4186_v52, 16  ;;  %v3424_v35 = vld [vmem:[#allocation2 + $0x30] sm:$0xff]  ;;  %v8947_v52 = vld [vmem:[#allocation20_spill] sm:$0xff] }
 0x2d0   : > { %v4406_v15 = vrot.slane %v4404_v1, 3  ;;  %v4409_v46 = vrot.slane %v4407_v62, 4  ;;  %v4180_v2 = vsel %vm1717_vm12, %v4115_v33, %v4036_v16  ;;  %5926 = vmatmul.mubr.msk.bf16.gmra.mrb[72].mxu1 %vm2035_vm14, %v4396_v32  ;;  %v3423_v33 = vld [vmem:[#allocation2 + $0x28] sm:$0xff] }
 0x2d1   : > { %v4397_v39 = vshrl.u32 %v4180_v2, 16  ;;  %v4400_v41 = vshll.u32 %v4180_v2, 16  ;;  %v4421_v43 = vrot.slane %v4419_v44, 3  ;;  %v4424_v13 = vrot.slane %v4422_v42, 4 }
 0x2d2   : > { %v4410_v36 = vor.u32 %v4409_v46, %v4406_v15 }
 0x2d3   : > { %v4399_v34 = vrot.slane %v4397_v39, 3  ;;  %v4402_v25 = vrot.slane %v4400_v41, 4  ;;  %v4040_v4 = vpop.permute.xlu0 %4039  ;;  %v4425_v10 = vor.u32 %v4424_v13, %v4421_v43 }
 0x2d4   : > { %v4184_v29 = vsel %vm1717_vm12, %v4120_v9, %v4040_v4 }
 0x2d5   : > { %v4403_v8 = vor.u32 %v4402_v25, %v4399_v34  ;;  %v4412_v54 = vshrl.u32 %v4184_v29, 16  ;;  %v4415_v51 = vshll.u32 %v4184_v29, 16  ;;  %v5851_v14 = vpop.f32.mrb[36].mxu1 }
 0x2d6   : > { %2271 = vst.msk [vmem:[#allocation2 + $0xb0] sm:$0xff] %vm1636_vm11, %v5851_v14  ;;  %v2202_v56 = vpop.f32.mrb[37].mxu1 }
 0x2d7   : > { %v4414_v53 = vrot.slane %v4412_v54, 3  ;;  %v4417_v7 = vrot.slane %v4415_v51, 4  ;;  %v4411_v61 = vsel %vm1782_vm13, %v4403_v8, %v4410_v36  ;;  %2269 = vst.msk [vmem:[#allocation2 + $0xa0] sm:$0xff] %vm1636_vm11, %v2202_v56  ;;  %v5852_v6 = vpop.f32.mrb[38].mxu1  ;;  %v8948_v36 = vld [vmem:[#allocation21_spill] sm:$0xff] }
 0x2d8   : > { %5929 = vmatprep.mubr.msk.bf16.mxu1 %vm2035_vm14, %v4411_v61  ;;  %2272 = vst.msk [vmem:[#allocation2 + $0xb8] sm:$0xff] %vm1636_vm11, %v5852_v6  ;;  %v2205_v49 = vpop.f32.mrb[39].mxu1  ;;  %v3428_v6 = vld [vmem:[#allocation2 + $0x50] sm:$0xff] }
 0x2d9   : > { %v4418_v12 = vor.u32 %v4417_v7, %v4414_v53  ;;  %2270 = vst.msk [vmem:[#allocation2 + $0xa8] sm:$0xff] %vm1636_vm11, %v2205_v49 }
 0x2db   : > { %v4426_v37 = vsel %vm1782_vm13, %v4418_v12, %v4425_v10 }
 0x2dc   : > { %5930 = vmatmul.mubr.msk.bf16.gmra.mrb[76].mxu1 %vm2035_vm14, %v4426_v37 }
 0x2e1   : > { %v5855_v58 = vpop.f32.mrb[40].mxu1 }
 0x2e2   : > { %2275 = vst.msk [vmem:[#allocation2 + $0xd0] sm:$0xff] %vm1636_vm11, %v5855_v58  ;;  %v2218_v63 = vpop.f32.mrb[41].mxu1  ;;  %v3426_v58 = vld [vmem:[#allocation2 + $0x40] sm:$0xff] }
 0x2e3   : > { %2273 = vst.msk [vmem:[#allocation2 + $0xc0] sm:$0xff] %vm1636_vm11, %v2218_v63  ;;  %v5856_v47 = vpop.f32.mrb[42].mxu1 }
 0x2e4   : > { %2276 = vst.msk [vmem:[#allocation2 + $0xd8] sm:$0xff] %vm1636_vm11, %v5856_v47  ;;  %v2221_v20 = vpop.f32.mrb[43].mxu1 }
 0x2e5   : > { %2274 = vst.msk [vmem:[#allocation2 + $0xc8] sm:$0xff] %vm1636_vm11, %v2221_v20  ;;  %v3429_v20 = vld [vmem:[#allocation2 + $0x58] sm:$0xff] }
 0x2f3   : > { %v5867_v45 = vpop.f32.mrb[16].mxu0 }
 0x2f4   : > { %v3452_v3 = vadd.f32 %v5867_v45, %v3420_v21  ;;  %v3291_v24 = vpop.f32.mrb[17].mxu0 }
 0x2f5   : > { %v3450_v11 = vadd.f32 %v3418_v23, %v3291_v24  ;;  %v5868_v0 = vpop.f32.mrb[18].mxu0 }
 0x2f6   : > { %3484 = vst.msk [vmem:[#allocation2 + $0x10] sm:$0xff] %vm1636_vm11, %v3452_v3  ;;  %v3453_v17 = vadd.f32 %v5868_v0, %v3421_v28  ;;  %v3294_v40 = vpop.f32.mrb[19].mxu0  ;;  %v3427_v3 = vld [vmem:[#allocation2 + $0x48] sm:$0xff] }
 0x2f7   : > { %3482 = vst.msk [vmem:[#allocation2] sm:$0xff] %vm1636_vm11, %v3450_v11  ;;  %v3451_v59 = vadd.f32 %v3419_v31, %v3294_v40 }
 0x2f8   : > { %3485 = vst.msk [vmem:[#allocation2 + $0x18] sm:$0xff] %vm1636_vm11, %v3453_v17 }
 0x2f9   : > { %3483 = vst.msk [vmem:[#allocation2 + $0x8] sm:$0xff] %vm1636_vm11, %v3451_v59 }
 0x2fb   : > { %v5859_v55 = vpop.f32.mrb[44].mxu1 }
 0x2fc   : > { %2279 = vst.msk [vmem:[#allocation2 + $0xf0] sm:$0xff] %vm1636_vm11, %v5859_v55  ;;  %v2234_v30 = vpop.f32.mrb[45].mxu1 }
 0x2fd   : > { %2277 = vst.msk [vmem:[#allocation2 + $0xe0] sm:$0xff] %vm1636_vm11, %v2234_v30  ;;  %v5860_v22 = vpop.f32.mrb[46].mxu1  ;;  %v4654_v5 = vld [vmem:[#allocation2 + $0x10] sm:$0xff] }
 0x2fe   : > { %2280 = vst.msk [vmem:[#allocation2 + $0xf8] sm:$0xff] %vm1636_vm11, %v5860_v22  ;;  %v2237_v48 = vpop.f32.mrb[47].mxu1  ;;  %v4652_v2 = vld [vmem:[#allocation2] sm:$0xff] }
 0x2ff   : > { %2278 = vst.msk [vmem:[#allocation2 + $0xe8] sm:$0xff] %vm1636_vm11, %v2237_v48  ;;  %v4655_v41 = vld [vmem:[#allocation2 + $0x18] sm:$0xff] }
 0x300   : > { %v4653_v34 = vld [vmem:[#allocation2 + $0x8] sm:$0xff] }
 0x306   : > { %v5871_v57 = vpop.f32.mrb[20].mxu0 }
 0x307   : > { %v3456_v50 = vadd.f32 %v5871_v57, %v3424_v35  ;;  %v3307_v18 = vpop.f32.mrb[21].mxu0 }
 0x308   : > { %v3454_v1 = vadd.f32 %v3422_v19, %v3307_v18  ;;  %v5872_v62 = vpop.f32.mrb[22].mxu0 }
 0x309   : > { %3488 = vst.msk [vmem:[#allocation2 + $0x30] sm:$0xff] %vm1636_vm11, %v3456_v50  ;;  %v3457_v27 = vadd.f32 %v5872_v62, %v3425_v60  ;;  %v3310_v26 = vpop.f32.mrb[23].mxu0 }
 0x30a   : > { %3486 = vst.msk [vmem:[#allocation2 + $0x20] sm:$0xff] %vm1636_vm11, %v3454_v1  ;;  %v3455_v16 = vadd.f32 %v3423_v33, %v3310_v26 }
 0x30b   : > { %3489 = vst.msk [vmem:[#allocation2 + $0x38] sm:$0xff] %vm1636_vm11, %v3457_v27 }
 0x30c   : > { %3487 = vst.msk [vmem:[#allocation2 + $0x28] sm:$0xff] %vm1636_vm11, %v3455_v16 }
 0x310   : > { %v4658_v11 = vld [vmem:[#allocation2 + $0x30] sm:$0xff] }
 0x311   : > { %v4656_v17 = vld [vmem:[#allocation2 + $0x20] sm:$0xff] }
 0x312   : > { %v4659_v59 = vld [vmem:[#allocation2 + $0x38] sm:$0xff] }
 0x313   : > { %v5903_v32 = vpop.f32.mrb[48].mxu1  ;;  %v4657_v48 = vld [vmem:[#allocation2 + $0x28] sm:$0xff] }
 0x314   : > { %v4686_v15 = vadd.f32 %v5903_v32, %v4654_v5  ;;  %v4525_v46 = vpop.f32.mrb[49].mxu1 }
 0x315   : > { %v4684_v38 = vadd.f32 %v4652_v2, %v4525_v46  ;;  %v5904_v39 = vpop.f32.mrb[50].mxu1  ;;  %v3432_v46 = vld [vmem:[#allocation2 + $0x70] sm:$0xff] }
 0x316   : > { %v4724_v44 = vmul.f32 %v8947_v52, %v4686_v15  ;;  %v4687_v42 = vadd.f32 %v5904_v39, %v4655_v41  ;;  %v4528_v9 = vpop.f32.mrb[51].mxu1  ;;  %v3430_v39 = vld [vmem:[#allocation2 + $0x60] sm:$0xff] }
 0x317   : > { %v4722_v25 = vmul.f32 %v8947_v52, %v4684_v38  ;;  %v4685_v4 = vadd.f32 %v4653_v34, %v4528_v9 }
 0x318   : > { %v4762_v43 = vadd.f32 %v8948_v36, %v4724_v44  ;;  %v4725_v29 = vmul.f32 %v8947_v52, %v4687_v42  ;;  %v3433_v42 = vld [vmem:[#allocation2 + $0x78] sm:$0xff] }
 0x319   : > { %v4760_v8 = vadd.f32 %v8948_v36, %v4722_v25  ;;  %v4723_v13 = vmul.f32 %v8947_v52, %v4685_v4  ;;  %v3431_v25 = vld [vmem:[#allocation2 + $0x68] sm:$0xff] }
 0x31a   : > { %v4763_v54 = vadd.f32 %v8948_v36, %v4725_v29  ;;  %v4794_v53 = vmax.f32 %v4762_v43, 0.0 }
 0x31b   : > { %v4761_v51 = vadd.f32 %v8948_v36, %v4723_v13  ;;  %v4792_v14 = vmax.f32 %v4760_v8, 0.0 }
 0x31c   : > { %v4795_v7 = vmax.f32 %v4763_v54, 0.0 }
 0x31d   : > { %v4793_v61 = vmax.f32 %v4761_v51, 0.0 }
 0x31e   : > { %v4825_v56 = vpack.c.bf16 %v4795_v7, %v4794_v53 }
 0x31f   : > { %v4824_v10 = vpack.c.bf16 %v4793_v61, %v4792_v14  ;;  %v5875_v12 = vpop.f32.mrb[24].mxu0 }
 0x320   : > { %v3460_v49 = vadd.f32 %v5875_v12, %v3428_v6  ;;  %v3323_v37 = vpop.f32.mrb[25].mxu0 }
 0x321   : > { %v3458_v63 = vadd.f32 %v3426_v58, %v3323_v37  ;;  %v5876_v47 = vpop.f32.mrb[26].mxu0  ;;  %5935 = vmatprep.mubr.msk.bf16.mxu0 %vm1636_vm11, %v4824_v10 }
 0x322   : > { %3492 = vst.msk [vmem:[#allocation2 + $0x50] sm:$0xff] %vm1636_vm11, %v3460_v49  ;;  %v3461_v45 = vadd.f32 %v5876_v47, %v3429_v20  ;;  %v3326_v21 = vpop.f32.mrb[27].mxu0  ;;  %5936 = vmatmul.mubr.msk.bf16.vlgmr.msra.gmra.mrb[48].mxu0 %vm1636_vm11, %v4825_v56 }
 0x323   : > { %3490 = vst.msk [vmem:[#allocation2 + $0x40] sm:$0xff] %vm1636_vm11, %v3458_v63  ;;  %v3459_v24 = vadd.f32 %v3427_v3, %v3326_v21 }
 0x324   : > { %3493 = vst.msk [vmem:[#allocation2 + $0x58] sm:$0xff] %vm1636_vm11, %v3461_v45 }
 0x325   : > { %3491 = vst.msk [vmem:[#allocation2 + $0x48] sm:$0xff] %vm1636_vm11, %v3459_v24 }
 0x329   : > { %v4662_v29 = vld [vmem:[#allocation2 + $0x50] sm:$0xff] }
 0x32a   : > { %v4660_v54 = vld [vmem:[#allocation2 + $0x40] sm:$0xff] }
 0x32b   : > { %v5907_v23 = vpop.f32.mrb[52].mxu1  ;;  %v4663_v7 = vld [vmem:[#allocation2 + $0x58] sm:$0xff] }
 0x32c   : > { %v4690_v0 = vadd.f32 %v5907_v23, %v4658_v11  ;;  %v4541_v28 = vpop.f32.mrb[53].mxu1  ;;  %v4661_v10 = vld [vmem:[#allocation2 + $0x48] sm:$0xff] }
 0x32d   : > { %v4688_v40 = vadd.f32 %v4656_v17, %v4541_v28  ;;  %v5908_v31 = vpop.f32.mrb[54].mxu1  ;;  %v3436_v28 = vld [vmem:[#allocation2 + $0x90] sm:$0xff] }
 0x32e   : > { %v4728_v55 = vmul.f32 %v8947_v52, %v4690_v0  ;;  %v4691_v30 = vadd.f32 %v5908_v31, %v4659_v59  ;;  %v4544_v22 = vpop.f32.mrb[55].mxu1  ;;  %v3434_v31 = vld [vmem:[#allocation2 + $0x80] sm:$0xff] }
 0x32f   : > { %v4726_v57 = vmul.f32 %v8947_v52, %v4688_v40  ;;  %v4689_v35 = vadd.f32 %v4657_v48, %v4544_v22 }
 0x330   : > { %v4766_v50 = vadd.f32 %v8948_v36, %v4728_v55  ;;  %v4729_v18 = vmul.f32 %v8947_v52, %v4691_v30  ;;  %v3437_v30 = vld [vmem:[#allocation2 + $0x98] sm:$0xff] }
 0x331   : > { %v4764_v19 = vadd.f32 %v8948_v36, %v4726_v57  ;;  %v4727_v1 = vmul.f32 %v8947_v52, %v4689_v35  ;;  %v3435_v57 = vld [vmem:[#allocation2 + $0x88] sm:$0xff] }
 0x332   : > { %v4767_v62 = vadd.f32 %v8948_v36, %v4729_v18  ;;  %v4798_v27 = vmax.f32 %v4766_v50, 0.0 }
 0x333   : > { %v4765_v60 = vadd.f32 %v8948_v36, %v4727_v1  ;;  %v4796_v33 = vmax.f32 %v4764_v19, 0.0 }
 0x334   : > { %v4799_v26 = vmax.f32 %v4767_v62, 0.0 }
 0x335   : > { %v4797_v16 = vmax.f32 %v4765_v60, 0.0  ;;  %v5879_v15 = vpop.f32.mrb[28].mxu0 }
 0x336   : > { %v4827_v32 = vpack.c.bf16 %v4799_v26, %v4798_v27  ;;  %v3464_v2 = vadd.f32 %v5879_v15, %v3432_v46  ;;  %v3339_v38 = vpop.f32.mrb[29].mxu0 }
 0x337   : > { %v4826_v5 = vpack.c.bf16 %v4797_v16, %v4796_v33  ;;  %v3462_v41 = vadd.f32 %v3430_v39, %v3339_v38  ;;  %v5880_v44 = vpop.f32.mrb[30].mxu0 }
 0x338   : > { %3496 = vst.msk [vmem:[#allocation2 + $0x70] sm:$0xff] %vm1636_vm11, %v3464_v2  ;;  %v3465_v9 = vadd.f32 %v5880_v44, %v3433_v42  ;;  %v3342_v34 = vpop.f32.mrb[31].mxu0 }
 0x339   : > { %5939 = vmatprep.mubr.msk.bf16.mxu0 %vm1636_vm11, %v4826_v5  ;;  %3494 = vst.msk [vmem:[#allocation2 + $0x60] sm:$0xff] %vm1636_vm11, %v3462_v41  ;;  %v3463_v4 = vadd.f32 %v3431_v25, %v3342_v34 }
 0x33a   : > { %5940 = vmatmul.mubr.msk.bf16.gmra.mrb[52].mxu0 %vm1636_vm11, %v4827_v32  ;;  %3497 = vst.msk [vmem:[#allocation2 + $0x78] sm:$0xff] %vm1636_vm11, %v3465_v9 }
 0x33b   : > { %3495 = vst.msk [vmem:[#allocation2 + $0x68] sm:$0xff] %vm1636_vm11, %v3463_v4 }
 0x33f   : > { %v4666_v18 = vld [vmem:[#allocation2 + $0x70] sm:$0xff] }
 0x340   : > { %v4664_v62 = vld [vmem:[#allocation2 + $0x60] sm:$0xff] }
 0x341   : > { %v5911_v43 = vpop.f32.mrb[56].mxu1  ;;  %v4667_v26 = vld [vmem:[#allocation2 + $0x78] sm:$0xff] }
 0x342   : > { %v4694_v8 = vadd.f32 %v5911_v43, %v4662_v29  ;;  %v4557_v13 = vpop.f32.mrb[57].mxu1  ;;  %v4665_v5 = vld [vmem:[#allocation2 + $0x68] sm:$0xff] }
 0x343   : > { %v4692_v51 = vadd.f32 %v4660_v54, %v4557_v13  ;;  %v5912_v53 = vpop.f32.mrb[58].mxu1  ;;  %v3440_v13 = vld [vmem:[#allocation2 + $0xb0] sm:$0xff] }
 0x344   : > { %v4732_v14 = vmul.f32 %v8947_v52, %v4694_v8  ;;  %v4695_v61 = vadd.f32 %v5912_v53, %v4663_v7  ;;  %v4560_v56 = vpop.f32.mrb[59].mxu1  ;;  %v3438_v53 = vld [vmem:[#allocation2 + $0xa0] sm:$0xff] }
 0x345   : > { %v4730_v12 = vmul.f32 %v8947_v52, %v4692_v51  ;;  %v4693_v6 = vadd.f32 %v4661_v10, %v4560_v56 }
 0x346   : > { %v4770_v49 = vadd.f32 %v8948_v36, %v4732_v14  ;;  %v4733_v37 = vmul.f32 %v8947_v52, %v4695_v61  ;;  %v3441_v61 = vld [vmem:[#allocation2 + $0xb8] sm:$0xff] }
 0x347   : > { %v4768_v58 = vadd.f32 %v8948_v36, %v4730_v12  ;;  %v4731_v63 = vmul.f32 %v8947_v52, %v4693_v6  ;;  %v3439_v12 = vld [vmem:[#allocation2 + $0xa8] sm:$0xff] }
 0x348   : > { %v4771_v47 = vadd.f32 %v8948_v36, %v4733_v37  ;;  %v4802_v45 = vmax.f32 %v4770_v49, 0.0 }
 0x349   : > { %v4769_v20 = vadd.f32 %v8948_v36, %v4731_v63  ;;  %v4800_v3 = vmax.f32 %v4768_v58, 0.0 }
 0x34a   : > { %v4803_v21 = vmax.f32 %v4771_v47, 0.0 }
 0x34b   : > { %v4801_v24 = vmax.f32 %v4769_v20, 0.0 }
 0x34c   : > { %v4829_v23 = vpack.c.bf16 %v4803_v21, %v4802_v45 }
 0x34d   : > { %v4828_v11 = vpack.c.bf16 %v4801_v24, %v4800_v3 }
 0x34e   : > { %v5883_v0 = vpop.f32.mrb[32].mxu0 }
 0x34f   : > { %v3468_v17 = vadd.f32 %v5883_v0, %v3436_v28  ;;  %v3355_v40 = vpop.f32.mrb[33].mxu0  ;;  %5943 = vmatprep.mubr.msk.bf16.mxu0 %vm1636_vm11, %v4828_v11 }
 0x350   : > { %v3466_v59 = vadd.f32 %v3434_v31, %v3355_v40  ;;  %v5884_v55 = vpop.f32.mrb[34].mxu0  ;;  %5944 = vmatmul.mubr.msk.bf16.gmra.mrb[56].mxu0 %vm1636_vm11, %v4829_v23 }
 0x351   : > { %3500 = vst.msk [vmem:[#allocation2 + $0x90] sm:$0xff] %vm1636_vm11, %v3468_v17  ;;  %v3469_v22 = vadd.f32 %v5884_v55, %v3437_v30  ;;  %v3358_v48 = vpop.f32.mrb[35].mxu0 }
 0x352   : > { %3498 = vst.msk [vmem:[#allocation2 + $0x80] sm:$0xff] %vm1636_vm11, %v3466_v59  ;;  %v3467_v35 = vadd.f32 %v3435_v57, %v3358_v48 }
 0x353   : > { %3501 = vst.msk [vmem:[#allocation2 + $0x98] sm:$0xff] %vm1636_vm11, %v3469_v22 }
 0x354   : > { %3499 = vst.msk [vmem:[#allocation2 + $0x88] sm:$0xff] %vm1636_vm11, %v3467_v35 }
 0x358   : > { %v4670_v37 = vld [vmem:[#allocation2 + $0x90] sm:$0xff] }
 0x359   : > { %v4668_v47 = vld [vmem:[#allocation2 + $0x80] sm:$0xff] }
 0x35a   : > { %v5915_v50 = vpop.f32.mrb[60].mxu1  ;;  %v4671_v21 = vld [vmem:[#allocation2 + $0x98] sm:$0xff] }
 0x35b   : > { %v4698_v19 = vadd.f32 %v5915_v50, %v4666_v18  ;;  %v4573_v1 = vpop.f32.mrb[61].mxu1  ;;  %v4669_v11 = vld [vmem:[#allocation2 + $0x88] sm:$0xff] }
 0x35c   : > { %v4696_v60 = vadd.f32 %v4664_v62, %v4573_v1  ;;  %v5916_v27 = vpop.f32.mrb[62].mxu1  ;;  %v3444_v1 = vld [vmem:[#allocation2 + $0xd0] sm:$0xff] }
 0x35d   : > { %v4736_v33 = vmul.f32 %v8947_v52, %v4698_v19  ;;  %v4699_v16 = vadd.f32 %v5916_v27, %v4667_v26  ;;  %v4576_v32 = vpop.f32.mrb[63].mxu1  ;;  %v3442_v27 = vld [vmem:[#allocation2 + $0xc0] sm:$0xff] }
 0x35e   : > { %v4734_v15 = vmul.f32 %v8947_v52, %v4696_v60  ;;  %v4697_v46 = vadd.f32 %v4665_v5, %v4576_v32 }
 0x35f   : > { %v4774_v2 = vadd.f32 %v8948_v36, %v4736_v33  ;;  %v4737_v38 = vmul.f32 %v8947_v52, %v4699_v16  ;;  %v3445_v16 = vld [vmem:[#allocation2 + $0xd8] sm:$0xff] }
 0x360   : > { %v4772_v39 = vadd.f32 %v8948_v36, %v4734_v15  ;;  %v4735_v41 = vmul.f32 %v8947_v52, %v4697_v46  ;;  %v3443_v15 = vld [vmem:[#allocation2 + $0xc8] sm:$0xff] }
 0x361   : > { %v4775_v44 = vadd.f32 %v8948_v36, %v4737_v38  ;;  %v4806_v9 = vmax.f32 %v4774_v2, 0.0 }
 0x362   : > { %v4773_v42 = vadd.f32 %v8948_v36, %v4735_v41  ;;  %v4804_v25 = vmax.f32 %v4772_v39, 0.0 }
 0x363   : > { %v4807_v34 = vmax.f32 %v4775_v44, 0.0 }
 0x364   : > { %v4805_v4 = vmax.f32 %v4773_v42, 0.0 }
 0x365   : > { %v4831_v43 = vpack.c.bf16 %v4807_v34, %v4806_v9 }
 0x366   : > { %v4830_v29 = vpack.c.bf16 %v4805_v4, %v4804_v25  ;;  %v5887_v8 = vpop.f32.mrb[36].mxu0 }
 0x367   : > { %v3472_v54 = vadd.f32 %v5887_v8, %v3440_v13  ;;  %v3371_v51 = vpop.f32.mrb[37].mxu0 }
 0x368   : > { %v3470_v7 = vadd.f32 %v3438_v53, %v3371_v51  ;;  %v5888_v14 = vpop.f32.mrb[38].mxu0  ;;  %5947 = vmatprep.mubr.msk.bf16.mxu0 %vm1636_vm11, %v4830_v29 }
 0x369   : > { %3504 = vst.msk [vmem:[#allocation2 + $0xb0] sm:$0xff] %vm1636_vm11, %v3472_v54  ;;  %v3473_v56 = vadd.f32 %v5888_v14, %v3441_v61  ;;  %v3374_v10 = vpop.f32.mrb[39].mxu0  ;;  %5948 = vmatmul.mubr.msk.bf16.gmra.mrb[60].mxu0 %vm1636_vm11, %v4831_v43 }
 0x36a   : > { %3502 = vst.msk [vmem:[#allocation2 + $0xa0] sm:$0xff] %vm1636_vm11, %v3470_v7  ;;  %v3471_v6 = vadd.f32 %v3439_v12, %v3374_v10 }
 0x36b   : > { %3505 = vst.msk [vmem:[#allocation2 + $0xb8] sm:$0xff] %vm1636_vm11, %v3473_v56 }
 0x36c   : > { %3503 = vst.msk [vmem:[#allocation2 + $0xa8] sm:$0xff] %vm1636_vm11, %v3471_v6 }
 0x370   : > { %v4674_v38 = vld [vmem:[#allocation2 + $0xb0] sm:$0xff] }
 0x371   : > { %v4672_v44 = vld [vmem:[#allocation2 + $0xa0] sm:$0xff] }
 0x372   : > { %v5919_v49 = vpop.f32.mrb[64].mxu1  ;;  %v4675_v34 = vld [vmem:[#allocation2 + $0xb8] sm:$0xff] }
 0x373   : > { %v4702_v58 = vadd.f32 %v5919_v49, %v4670_v37  ;;  %v4589_v63 = vpop.f32.mrb[65].mxu1  ;;  %v4673_v29 = vld [vmem:[#allocation2 + $0xa8] sm:$0xff] }
 0x374   : > { %v4700_v20 = vadd.f32 %v4668_v47, %v4589_v63  ;;  %v5920_v45 = vpop.f32.mrb[66].mxu1  ;;  %v3448_v63 = vld [vmem:[#allocation2 + $0xf0] sm:$0xff] }
 0x375   : > { %v4740_v3 = vmul.f32 %v8947_v52, %v4702_v58  ;;  %v4703_v24 = vadd.f32 %v5920_v45, %v4671_v21  ;;  %v4592_v23 = vpop.f32.mrb[67].mxu1  ;;  %v3446_v45 = vld [vmem:[#allocation2 + $0xe0] sm:$0xff] }
 0x376   : > { %v4738_v0 = vmul.f32 %v8947_v52, %v4700_v20  ;;  %v4701_v28 = vadd.f32 %v4669_v11, %v4592_v23 }
 0x377   : > { %v4778_v17 = vadd.f32 %v8948_v36, %v4740_v3  ;;  %v4741_v40 = vmul.f32 %v8947_v52, %v4703_v24  ;;  %v3449_v24 = vld [vmem:[#allocation2 + $0xf8] sm:$0xff] }
 0x378   : > { %v4776_v31 = vadd.f32 %v8948_v36, %v4738_v0  ;;  %v4739_v59 = vmul.f32 %v8947_v52, %v4701_v28  ;;  %v3447_v0 = vld [vmem:[#allocation2 + $0xe8] sm:$0xff] }
 0x379   : > { %v4779_v55 = vadd.f32 %v8948_v36, %v4741_v40  ;;  %v4810_v22 = vmax.f32 %v4778_v17, 0.0 }
 0x37a   : > { %v4777_v30 = vadd.f32 %v8948_v36, %v4739_v59  ;;  %v4808_v57 = vmax.f32 %v4776_v31, 0.0 }
 0x37b   : > { %v4811_v48 = vmax.f32 %v4779_v55, 0.0 }
 0x37c   : > { %v4809_v35 = vmax.f32 %v4777_v30, 0.0 }
 0x37d   : > { %v4833_v50 = vpack.c.bf16 %v4811_v48, %v4810_v22 }
 0x37e   : > { %v4832_v18 = vpack.c.bf16 %v4809_v35, %v4808_v57 }
 0x37f   : > { %v5891_v19 = vpop.f32.mrb[40].mxu0 }
 0x380   : > { %v3476_v62 = vadd.f32 %v5891_v19, %v3444_v1  ;;  %v3387_v60 = vpop.f32.mrb[41].mxu0  ;;  %5951 = vmatprep.mubr.msk.bf16.mxu0 %vm1636_vm11, %v4832_v18 }
 0x381   : > { %v3474_v26 = vadd.f32 %v3442_v27, %v3387_v60  ;;  %v5892_v33 = vpop.f32.mrb[42].mxu0  ;;  %5952 = vmatmul.mubr.msk.bf16.gmra.mrb[64].mxu0 %vm1636_vm11, %v4833_v50 }
 0x382   : > { %3508 = vst.msk [vmem:[#allocation2 + $0xd0] sm:$0xff] %vm1636_vm11, %v3476_v62  ;;  %v3477_v32 = vadd.f32 %v5892_v33, %v3445_v16  ;;  %v3390_v5 = vpop.f32.mrb[43].mxu0 }
 0x383   : > { %3506 = vst.msk [vmem:[#allocation2 + $0xc0] sm:$0xff] %vm1636_vm11, %v3474_v26  ;;  %v3475_v46 = vadd.f32 %v3443_v15, %v3390_v5 }
 0x384   : > { %3509 = vst.msk [vmem:[#allocation2 + $0xd8] sm:$0xff] %vm1636_vm11, %v3477_v32 }
 0x385   : > { %3507 = vst.msk [vmem:[#allocation2 + $0xc8] sm:$0xff] %vm1636_vm11, %v3475_v46 }
 0x389   : > { %v4678_v40 = vld [vmem:[#allocation2 + $0xd0] sm:$0xff] }
 0x38a   : > { %v4676_v55 = vld [vmem:[#allocation2 + $0xc0] sm:$0xff] }
 0x38b   : > { %v5923_v2 = vpop.f32.mrb[68].mxu1  ;;  %v4679_v48 = vld [vmem:[#allocation2 + $0xd8] sm:$0xff] }
 0x38c   : > { %v4706_v39 = vadd.f32 %v5923_v2, %v4674_v38  ;;  %v4605_v41 = vpop.f32.mrb[69].mxu1  ;;  %v4677_v18 = vld [vmem:[#allocation2 + $0xc8] sm:$0xff] }
 0x38d   : > { %v4704_v42 = vadd.f32 %v4672_v44, %v4605_v41  ;;  %v5924_v9 = vpop.f32.mrb[70].mxu1 }
 0x38e   : > { %v4744_v25 = vmul.f32 %v8947_v52, %v4706_v39  ;;  %v4707_v4 = vadd.f32 %v5924_v9, %v4675_v34  ;;  %v4608_v43 = vpop.f32.mrb[71].mxu1 }
 0x38f   : > { %v4742_v8 = vmul.f32 %v8947_v52, %v4704_v42  ;;  %v4705_v13 = vadd.f32 %v4673_v29, %v4608_v43 }
 0x390   : > { %v4782_v54 = vadd.f32 %v8948_v36, %v4744_v25  ;;  %v4745_v51 = vmul.f32 %v8947_v52, %v4707_v4 }
 0x391   : > { %v4780_v53 = vadd.f32 %v8948_v36, %v4742_v8  ;;  %v4743_v7 = vmul.f32 %v8947_v52, %v4705_v13 }
 0x392   : > { %v4783_v14 = vadd.f32 %v8948_v36, %v4745_v51  ;;  %v4814_v56 = vmax.f32 %v4782_v54, 0.0 }
 0x393   : > { %v4781_v61 = vadd.f32 %v8948_v36, %v4743_v7  ;;  %v4812_v12 = vmax.f32 %v4780_v53, 0.0 }
 0x394   : > { %v4815_v10 = vmax.f32 %v4783_v14, 0.0 }
 0x395   : > { %v4813_v6 = vmax.f32 %v4781_v61, 0.0 }
 0x396   : > { %v4835_v49 = vpack.c.bf16 %v4815_v10, %v4814_v56 }
 0x397   : > { %v4834_v37 = vpack.c.bf16 %v4813_v6, %v4812_v12  ;;  %v5895_v58 = vpop.f32.mrb[44].mxu0 }
 0x398   : > { %v3480_v47 = vadd.f32 %v5895_v58, %v3448_v63  ;;  %v3403_v20 = vpop.f32.mrb[45].mxu0 }
 0x399   : > { %v3478_v21 = vadd.f32 %v3446_v45, %v3403_v20  ;;  %v5896_v3 = vpop.f32.mrb[46].mxu0  ;;  %5955 = vmatprep.mubr.msk.bf16.mxu0 %vm1636_vm11, %v4834_v37  ;;  %v8949_v45 = vld [vmem:[#allocation6_spill] sm:$0xff] }
 0x39a   : > { %3512 = vst.msk [vmem:[#allocation2 + $0xf0] sm:$0xff] %vm1636_vm11, %v3480_v47  ;;  %v3481_v23 = vadd.f32 %v5896_v3, %v3449_v24  ;;  %v3406_v11 = vpop.f32.mrb[47].mxu0  ;;  %5956 = vmatmul.mubr.msk.bf16.gmra.mrb[68].mxu0 %vm1636_vm11, %v4835_v49  ;;  %v8539_v47 = vld [vmem:[%s8717_s8] ss:$0 sm:$0xff] }
 0x39b   : > { %3510 = vst.msk [vmem:[#allocation2 + $0xe0] sm:$0xff] %vm1636_vm11, %v3478_v21  ;;  %v3479_v28 = vadd.f32 %v3447_v0, %v3406_v11  ;;  %v5133_v21 = vunpack.c.l.bf16 %v8949_v45 }
 0x39c   : > { %3513 = vst.msk [vmem:[#allocation2 + $0xf8] sm:$0xff] %vm1636_vm11, %v3481_v23  ;;  %v8950_v23 = vld [vmem:[#allocation4_spill] sm:$0xff] }
 0x39d   : > { %3511 = vst.msk [vmem:[#allocation2 + $0xe8] sm:$0xff] %vm1636_vm11, %v3479_v28  ;;  %v5131_v11 = vunpack.c.l.bf16 %v8950_v23 }
 0x3a1   : > { %v4682_v41 = vld [vmem:[#allocation2 + $0xf0] sm:$0xff] }
 0x3a2   : > { %v4680_v9 = vld [vmem:[#allocation2 + $0xe0] sm:$0xff] }
 0x3a3   : > { %v5927_v17 = vpop.f32.mrb[72].mxu1  ;;  %v4683_v4 = vld [vmem:[#allocation2 + $0xf8] sm:$0xff] }
 0x3a4   : > { %v4710_v31 = vadd.f32 %v5927_v17, %v4678_v40  ;;  %v4621_v59 = vpop.f32.mrb[73].mxu1  ;;  %v4681_v13 = vld [vmem:[#allocation2 + $0xe8] sm:$0xff]  ;;  %v5134_v40 = vunpack.c.h.bf16 %v8949_v45 }
 0x3a5   : > { %v4708_v30 = vadd.f32 %v4676_v55, %v4621_v59  ;;  %v5928_v22 = vpop.f32.mrb[74].mxu1 }
 0x3a6   : > { %v4748_v57 = vmul.f32 %v8947_v52, %v4710_v31  ;;  %v4711_v35 = vadd.f32 %v5928_v22, %v4679_v48  ;;  %v4624_v50 = vpop.f32.mrb[75].mxu1 }
 0x3a7   : > { %v4746_v19 = vmul.f32 %v8947_v52, %v4708_v30  ;;  %v4709_v1 = vadd.f32 %v4677_v18, %v4624_v50  ;;  %v5132_v30 = vunpack.c.h.bf16 %v8950_v23 }
 0x3a8   : > { %v4786_v62 = vadd.f32 %v8948_v36, %v4748_v57  ;;  %v4749_v60 = vmul.f32 %v8947_v52, %v4711_v35 }
 0x3a9   : > { %v4784_v27 = vadd.f32 %v8948_v36, %v4746_v19  ;;  %v4747_v26 = vmul.f32 %v8947_v52, %v4709_v1 }
 0x3aa   : > { %v4787_v33 = vadd.f32 %v8948_v36, %v4749_v60  ;;  %v4818_v32 = vmax.f32 %v4786_v62, 0.0 }
 0x3ab   : > { %v4785_v16 = vadd.f32 %v8948_v36, %v4747_v26  ;;  %v4816_v15 = vmax.f32 %v4784_v27, 0.0 }
 0x3ac   : > { %v4819_v5 = vmax.f32 %v4787_v33, 0.0  ;;  %v8951_v33 = vld [vmem:[#allocation10_spill] sm:$0xff] }
 0x3ad   : > { %v4817_v46 = vmax.f32 %v4785_v16, 0.0  ;;  %v5137_v16 = vunpack.c.l.bf16 %v8951_v33 }
 0x3ae   : > { %v4837_v2 = vpack.c.bf16 %v4819_v5, %v4818_v32 }
 0x3af   : > { %v4836_v38 = vpack.c.bf16 %v4817_v46, %v4816_v15  ;;  %v5931_v39 = vpop.f32.mrb[76].mxu1  ;;  %v8952_v15 = vld [vmem:[#allocation8_spill] sm:$0xff] }
 0x3b0   : > { %v4714_v44 = vadd.f32 %v5931_v39, %v4682_v41  ;;  %v4637_v42 = vpop.f32.mrb[77].mxu1  ;;  %v5135_v46 = vunpack.c.l.bf16 %v8952_v15  ;;  %v5138_v41 = vunpack.c.h.bf16 %v8951_v33 }
 0x3b1   : > { %v4712_v34 = vadd.f32 %v4680_v9, %v4637_v42  ;;  %v5932_v25 = vpop.f32.mrb[78].mxu1  ;;  %5959 = vmatprep.mubr.msk.bf16.mxu0 %vm1636_vm11, %v4836_v38 }
 0x3b2   : > { %v4752_v43 = vmul.f32 %v8947_v52, %v4714_v44  ;;  %v4715_v29 = vadd.f32 %v5932_v25, %v4683_v4  ;;  %v4640_v8 = vpop.f32.mrb[79].mxu1  ;;  %5960 = vmatmul.mubr.msk.bf16.gmra.mrb[72].mxu0 %vm1636_vm11, %v4837_v2 }
 0x3b3   : > { %v4750_v54 = vmul.f32 %v8947_v52, %v4712_v34  ;;  %v4713_v51 = vadd.f32 %v4681_v13, %v4640_v8  ;;  %v5136_v34 = vunpack.c.h.bf16 %v8952_v15 }
 0x3b4   : > { %v4790_v53 = vadd.f32 %v8948_v36, %v4752_v43  ;;  %v4753_v7 = vmul.f32 %v8947_v52, %v4715_v29 }
 0x3b5   : > { %v4788_v14 = vadd.f32 %v8948_v36, %v4750_v54  ;;  %v4751_v61 = vmul.f32 %v8947_v52, %v4713_v51 }
 0x3b6   : > { %v4791_v56 = vadd.f32 %v8948_v36, %v4753_v7  ;;  %v4822_v12 = vmax.f32 %v4790_v53, 0.0 }
 0x3b7   : > { %v4789_v10 = vadd.f32 %v8948_v36, %v4751_v61  ;;  %v4820_v49 = vmax.f32 %v4788_v14, 0.0  ;;  %v8544_v36 = vld [vmem:[%s8718_s9] ss:$0 sm:$0xff] }
 0x3b8   : > { %v4823_v6 = vmax.f32 %v4791_v56, 0.0  ;;  %v8953_v56 = vld [vmem:[#allocation14_spill] sm:$0xff] }
 0x3b9   : > { %v4821_v37 = vmax.f32 %v4789_v10, 0.0  ;;  %v5141_v10 = vunpack.c.l.bf16 %v8953_v56 }
 0x3ba   : > { %v4839_v58 = vpack.c.bf16 %v4823_v6, %v4822_v12 }
 0x3bb   : > { %v4838_v63 = vpack.c.bf16 %v4821_v37, %v4820_v49  ;;  %v8954_v49 = vld [vmem:[#allocation12_spill] sm:$0xff] }
 0x3bc   : > { %v5139_v37 = vunpack.c.l.bf16 %v8954_v49 }
 0x3bd   : > { %5963 = vmatprep.mubr.msk.bf16.mxu0 %vm1636_vm11, %v4838_v63 }
 0x3be   : > { %5964 = vmatmul.mubr.msk.bf16.gmra.mrb[76].mxu0 %vm1636_vm11, %v4839_v58 }
 0x3f5   : > { %v5937_v52 = vpop.f32.mrb[48].mxu0 }
 0x3f6   : > { %v5062_v20 = vmul.f32 %v5937_v52, %v8539_v47  ;;  %v4926_v3 = vpop.f32.mrb[49].mxu0 }
 0x3f7   : > { %v5060_v24 = vmul.f32 %v8539_v47, %v4926_v3  ;;  %v5938_v0 = vpop.f32.mrb[50].mxu0 }
 0x3f8   : > { %v5101_v28 = vadd.f32 %v8544_v36, %v5062_v20  ;;  %v5063_v17 = vmul.f32 %v5938_v0, %v8539_v47  ;;  %v4929_v31 = vpop.f32.mrb[51].mxu0  ;;  %v5142_v20 = vunpack.c.h.bf16 %v8953_v56 }
 0x3f9   : > { %v5099_v59 = vadd.f32 %v8544_v36, %v5060_v24  ;;  %v5061_v55 = vmul.f32 %v8539_v47, %v4929_v31  ;;  %v5140_v24 = vunpack.c.h.bf16 %v8954_v49 }
 0x3fa   : > { %v5165_v22 = vadd.f32 %v5133_v21, %v5101_v28  ;;  %v5102_v48 = vadd.f32 %v8544_v36, %v5063_v17 }
 0x3fb   : > { %v5163_v57 = vadd.f32 %v5131_v11, %v5099_v59  ;;  %v5100_v35 = vadd.f32 %v8544_v36, %v5061_v55 }
 0x3fc   : > { %v5197_v50 = vmax.f32 %v5165_v22, 0.0  ;;  %v5166_v18 = vadd.f32 %v5134_v40, %v5102_v48 }
 0x3fd   : > { %v5195_v19 = vmax.f32 %v5163_v57, 0.0  ;;  %v5164_v1 = vadd.f32 %v5132_v30, %v5100_v35  ;;  %v8955_v57 = vld [vmem:[#allocation18_spill] sm:$0xff] }
 0x3fe   : > { %5229 = vst.msk [vmem:[%s6295_s27 + $0x10] sm:$0xff] %vm490_vm0, %v5197_v50  ;;  %v5198_v62 = vmax.f32 %v5166_v18, 0.0  ;;  %v5145_v35 = vunpack.c.l.bf16 %v8955_v57 }
 0x3ff   : > { %5227 = vst.msk [vmem:[%s6295_s27] sm:$0xff] %vm490_vm0, %v5195_v19  ;;  %v5196_v60 = vmax.f32 %v5164_v1, 0.0  ;;  %v8956_v19 = vld [vmem:[#allocation16_spill] sm:$0xff] }
 0x400   : > { %5230 = vst.msk [vmem:[%s6295_s27 + $0x18] sm:$0xff] %vm490_vm0, %v5198_v62  ;;  %v5143_v1 = vunpack.c.l.bf16 %v8956_v19 }
 0x401   : > { %5228 = vst.msk [vmem:[%s6295_s27 + $0x8] sm:$0xff] %vm490_vm0, %v5196_v60 }
 0x40d   : > { %v5941_v27 = vpop.f32.mrb[52].mxu0 }
 0x40e   : > { %v5066_v26 = vmul.f32 %v5941_v27, %v8539_v47  ;;  %v4942_v32 = vpop.f32.mrb[53].mxu0 }
 0x40f   : > { %v5064_v5 = vmul.f32 %v8539_v47, %v4942_v32  ;;  %v5942_v2 = vpop.f32.mrb[54].mxu0 }
 0x410   : > { %v5105_v38 = vadd.f32 %v8544_v36, %v5066_v26  ;;  %v5067_v39 = vmul.f32 %v5942_v2, %v8539_v47  ;;  %v4945_v44 = vpop.f32.mrb[55].mxu0  ;;  %v5146_v26 = vunpack.c.h.bf16 %v8955_v57 }
 0x411   : > { %v5103_v42 = vadd.f32 %v8544_v36, %v5064_v5  ;;  %v5065_v9 = vmul.f32 %v8539_v47, %v4945_v44  ;;  %v5144_v5 = vunpack.c.h.bf16 %v8956_v19 }
 0x412   : > { %v5169_v25 = vadd.f32 %v5137_v16, %v5105_v38  ;;  %v5106_v4 = vadd.f32 %v8544_v36, %v5067_v39 }
 0x413   : > { %v5167_v43 = vadd.f32 %v5135_v46, %v5103_v42  ;;  %v5104_v29 = vadd.f32 %v8544_v36, %v5065_v9 }
 0x414   : > { %v5201_v8 = vmax.f32 %v5169_v25, 0.0  ;;  %v5170_v13 = vadd.f32 %v5138_v41, %v5106_v4 }
 0x415   : > { %v5199_v54 = vmax.f32 %v5167_v43, 0.0  ;;  %v5168_v51 = vadd.f32 %v5136_v34, %v5104_v29  ;;  %v8957_v43 = vld [vmem:[#allocation7_spill] sm:$0xff] }
 0x416   : > { %5233 = vst.msk [vmem:[%s6295_s27 + $0x30] sm:$0xff] %vm490_vm0, %v5201_v8  ;;  %v5202_v53 = vmax.f32 %v5170_v13, 0.0  ;;  %v5149_v29 = vunpack.c.l.bf16 %v8957_v43 }
 0x417   : > { %5231 = vst.msk [vmem:[%s6295_s27 + $0x20] sm:$0xff] %vm490_vm0, %v5199_v54  ;;  %v5200_v7 = vmax.f32 %v5168_v51, 0.0  ;;  %v8958_v54 = vld [vmem:[#allocation5_spill] sm:$0xff] }
 0x418   : > { %5234 = vst.msk [vmem:[%s6295_s27 + $0x38] sm:$0xff] %vm490_vm0, %v5202_v53  ;;  %v5147_v51 = vunpack.c.l.bf16 %v8958_v54 }
 0x419   : > { %5232 = vst.msk [vmem:[%s6295_s27 + $0x28] sm:$0xff] %vm490_vm0, %v5200_v7 }
 0x423   : > { %v5945_v14 = vpop.f32.mrb[56].mxu0 }
 0x424   : > { %v5070_v61 = vmul.f32 %v5945_v14, %v8539_v47  ;;  %v4958_v12 = vpop.f32.mrb[57].mxu0 }
 0x425   : > { %v5068_v6 = vmul.f32 %v8539_v47, %v4958_v12  ;;  %v5946_v58 = vpop.f32.mrb[58].mxu0 }
 0x426   : > { %v5109_v63 = vadd.f32 %v8544_v36, %v5070_v61  ;;  %v5071_v52 = vmul.f32 %v5946_v58, %v8539_v47  ;;  %v4961_v45 = vpop.f32.mrb[59].mxu0  ;;  %v5150_v61 = vunpack.c.h.bf16 %v8957_v43 }
 0x427   : > { %v5107_v21 = vadd.f32 %v8544_v36, %v5068_v6  ;;  %v5069_v3 = vmul.f32 %v8539_v47, %v4961_v45  ;;  %v5148_v6 = vunpack.c.h.bf16 %v8958_v54 }
 0x428   : > { %v5173_v23 = vadd.f32 %v5141_v10, %v5109_v63  ;;  %v5110_v11 = vadd.f32 %v8544_v36, %v5071_v52 }
 0x429   : > { %v5171_v0 = vadd.f32 %v5139_v37, %v5107_v21  ;;  %v5108_v28 = vadd.f32 %v8544_v36, %v5069_v3 }
 0x42a   : > { %v5205_v17 = vmax.f32 %v5173_v23, 0.0  ;;  %v5174_v40 = vadd.f32 %v5142_v20, %v5110_v11 }
 0x42b   : > { %v5203_v31 = vmax.f32 %v5171_v0, 0.0  ;;  %v5172_v59 = vadd.f32 %v5140_v24, %v5108_v28  ;;  %v8959_v0 = vld [vmem:[#allocation11_spill] sm:$0xff] }
 0x42c   : > { %5237 = vst.msk [vmem:[%s6295_s27 + $0x50] sm:$0xff] %vm490_vm0, %v5205_v17  ;;  %v5206_v55 = vmax.f32 %v5174_v40, 0.0  ;;  %v5153_v28 = vunpack.c.l.bf16 %v8959_v0 }
 0x42d   : > { %5235 = vst.msk [vmem:[%s6295_s27 + $0x40] sm:$0xff] %vm490_vm0, %v5203_v31  ;;  %v5204_v30 = vmax.f32 %v5172_v59, 0.0  ;;  %v8960_v31 = vld [vmem:[#allocation9_spill] sm:$0xff] }
 0x42e   : > { %5238 = vst.msk [vmem:[%s6295_s27 + $0x58] sm:$0xff] %vm490_vm0, %v5206_v55  ;;  %v5151_v59 = vunpack.c.l.bf16 %v8960_v31 }
 0x42f   : > { %5236 = vst.msk [vmem:[%s6295_s27 + $0x48] sm:$0xff] %vm490_vm0, %v5204_v30 }
 0x43c   : > { %v5949_v22 = vpop.f32.mrb[60].mxu0 }
 0x43d   : > { %v5074_v48 = vmul.f32 %v5949_v22, %v8539_v47  ;;  %v4974_v50 = vpop.f32.mrb[61].mxu0 }
 0x43e   : > { %v5072_v18 = vmul.f32 %v8539_v47, %v4974_v50  ;;  %v5950_v62 = vpop.f32.mrb[62].mxu0 }
 0x43f   : > { %v5113_v60 = vadd.f32 %v8544_v36, %v5074_v48  ;;  %v5075_v27 = vmul.f32 %v5950_v62, %v8539_v47  ;;  %v4977_v33 = vpop.f32.mrb[63].mxu0  ;;  %v5154_v48 = vunpack.c.h.bf16 %v8959_v0 }
 0x440   : > { %v5111_v16 = vadd.f32 %v8544_v36, %v5072_v18  ;;  %v5073_v32 = vmul.f32 %v8539_v47, %v4977_v33  ;;  %v5152_v18 = vunpack.c.h.bf16 %v8960_v31 }
 0x441   : > { %v5177_v15 = vadd.f32 %v5145_v35, %v5113_v60  ;;  %v5114_v46 = vadd.f32 %v8544_v36, %v5075_v27 }
 0x442   : > { %v5175_v2 = vadd.f32 %v5143_v1, %v5111_v16  ;;  %v5112_v38 = vadd.f32 %v8544_v36, %v5073_v32 }
 0x443   : > { %v5209_v39 = vmax.f32 %v5177_v15, 0.0  ;;  %v5178_v41 = vadd.f32 %v5146_v26, %v5114_v46 }
 0x444   : > { %v5207_v44 = vmax.f32 %v5175_v2, 0.0  ;;  %v5176_v42 = vadd.f32 %v5144_v5, %v5112_v38  ;;  %v8961_v2 = vld [vmem:[#allocation15_spill] sm:$0xff] }
 0x445   : > { %5241 = vst.msk [vmem:[%s6295_s27 + $0x70] sm:$0xff] %vm490_vm0, %v5209_v39  ;;  %v5210_v9 = vmax.f32 %v5178_v41, 0.0  ;;  %v5157_v38 = vunpack.c.l.bf16 %v8961_v2 }
 0x446   : > { %5239 = vst.msk [vmem:[%s6295_s27 + $0x60] sm:$0xff] %vm490_vm0, %v5207_v44  ;;  %v5208_v34 = vmax.f32 %v5176_v42, 0.0  ;;  %v8962_v44 = vld [vmem:[#allocation13_spill] sm:$0xff] }
 0x447   : > { %5242 = vst.msk [vmem:[%s6295_s27 + $0x78] sm:$0xff] %vm490_vm0, %v5210_v9  ;;  %v5155_v42 = vunpack.c.l.bf16 %v8962_v44 }
 0x448   : > { %5240 = vst.msk [vmem:[%s6295_s27 + $0x68] sm:$0xff] %vm490_vm0, %v5208_v34 }
 0x454   : > { %v5953_v25 = vpop.f32.mrb[64].mxu0 }
 0x455   : > { %v5078_v4 = vmul.f32 %v5953_v25, %v8539_v47  ;;  %v4990_v8 = vpop.f32.mrb[65].mxu0 }
 0x456   : > { %v5076_v13 = vmul.f32 %v8539_v47, %v4990_v8  ;;  %v5954_v53 = vpop.f32.mrb[66].mxu0 }
 0x457   : > { %v5117_v7 = vadd.f32 %v8544_v36, %v5078_v4  ;;  %v5079_v14 = vmul.f32 %v5954_v53, %v8539_v47  ;;  %v4993_v56 = vpop.f32.mrb[67].mxu0  ;;  %v5158_v4 = vunpack.c.h.bf16 %v8961_v2 }
 0x458   : > { %v5115_v10 = vadd.f32 %v8544_v36, %v5076_v13  ;;  %v5077_v12 = vmul.f32 %v8539_v47, %v4993_v56  ;;  %v5156_v13 = vunpack.c.h.bf16 %v8962_v44 }
 0x459   : > { %v5181_v49 = vadd.f32 %v5149_v29, %v5117_v7  ;;  %v5118_v37 = vadd.f32 %v8544_v36, %v5079_v14 }
 0x45a   : > { %v5179_v58 = vadd.f32 %v5147_v51, %v5115_v10  ;;  %v5116_v63 = vadd.f32 %v8544_v36, %v5077_v12 }
 0x45b   : > { %v5213_v52 = vmax.f32 %v5181_v49, 0.0  ;;  %v5182_v20 = vadd.f32 %v5150_v61, %v5118_v37 }
 0x45c   : > { %v5211_v45 = vmax.f32 %v5179_v58, 0.0  ;;  %v5180_v21 = vadd.f32 %v5148_v6, %v5116_v63  ;;  %v8963_v58 = vld [vmem:[#allocation19_spill] sm:$0xff] }
 0x45d   : > { %5245 = vst.msk [vmem:[%s6295_s27 + $0x90] sm:$0xff] %vm490_vm0, %v5213_v52  ;;  %v5214_v3 = vmax.f32 %v5182_v20, 0.0  ;;  %v5161_v63 = vunpack.c.l.bf16 %v8963_v58 }
 0x45e   : > { %5243 = vst.msk [vmem:[%s6295_s27 + $0x80] sm:$0xff] %vm490_vm0, %v5211_v45  ;;  %v5212_v24 = vmax.f32 %v5180_v21, 0.0  ;;  %v8964_v45 = vld [vmem:[#allocation17_spill] sm:$0xff] }
 0x45f   : > { %5246 = vst.msk [vmem:[%s6295_s27 + $0x98] sm:$0xff] %vm490_vm0, %v5214_v3  ;;  %v5159_v21 = vunpack.c.l.bf16 %v8964_v45 }
 0x460   : > { %5244 = vst.msk [vmem:[%s6295_s27 + $0x88] sm:$0xff] %vm490_vm0, %v5212_v24 }
 0x46d   : > { %v5957_v23 = vpop.f32.mrb[68].mxu0 }
 0x46e   : > { %v5082_v11 = vmul.f32 %v5957_v23, %v8539_v47  ;;  %v5006_v17 = vpop.f32.mrb[69].mxu0 }
 0x46f   : > { %v5080_v40 = vmul.f32 %v8539_v47, %v5006_v17  ;;  %v5958_v55 = vpop.f32.mrb[70].mxu0 }
 0x470   : > { %v5121_v30 = vadd.f32 %v8544_v36, %v5082_v11  ;;  %v5083_v22 = vmul.f32 %v5958_v55, %v8539_v47  ;;  %v5009_v57 = vpop.f32.mrb[71].mxu0  ;;  %v5162_v11 = vunpack.c.h.bf16 %v8963_v58 }
 0x471   : > { %v5119_v35 = vadd.f32 %v8544_v36, %v5080_v40  ;;  %v5081_v50 = vmul.f32 %v8539_v47, %v5009_v57  ;;  %v5160_v40 = vunpack.c.h.bf16 %v8964_v45 }
 0x472   : > { %v5185_v19 = vadd.f32 %v5153_v28, %v5121_v30  ;;  %v5122_v1 = vadd.f32 %v8544_v36, %v5083_v22 }
 0x473   : > { %v5183_v62 = vadd.f32 %v5151_v59, %v5119_v35  ;;  %v5120_v60 = vadd.f32 %v8544_v36, %v5081_v50 }
 0x474   : > { %v5217_v27 = vmax.f32 %v5185_v19, 0.0  ;;  %v5186_v26 = vadd.f32 %v5154_v48, %v5122_v1 }
 0x475   : > { %v5215_v33 = vmax.f32 %v5183_v62, 0.0  ;;  %v5184_v16 = vadd.f32 %v5152_v18, %v5120_v60 }
 0x476   : > { %5249 = vst.msk [vmem:[%s6295_s27 + $0xb0] sm:$0xff] %vm490_vm0, %v5217_v27  ;;  %v5218_v32 = vmax.f32 %v5186_v26, 0.0 }
 0x477   : > { %5247 = vst.msk [vmem:[%s6295_s27 + $0xa0] sm:$0xff] %vm490_vm0, %v5215_v33  ;;  %v5216_v5 = vmax.f32 %v5184_v16, 0.0 }
 0x478   : > { %5250 = vst.msk [vmem:[%s6295_s27 + $0xb8] sm:$0xff] %vm490_vm0, %v5218_v32 }
 0x479   : > { %5248 = vst.msk [vmem:[%s6295_s27 + $0xa8] sm:$0xff] %vm490_vm0, %v5216_v5 }
 0x485   : > { %v5961_v15 = vpop.f32.mrb[72].mxu0 }
 0x486   : > { %v5086_v46 = vmul.f32 %v5961_v15, %v8539_v47  ;;  %v5022_v39 = vpop.f32.mrb[73].mxu0 }
 0x487   : > { %v5084_v41 = vmul.f32 %v8539_v47, %v5022_v39  ;;  %v5962_v9 = vpop.f32.mrb[74].mxu0 }
 0x488   : > { %v5125_v34 = vadd.f32 %v8544_v36, %v5086_v46  ;;  %v5087_v25 = vmul.f32 %v5962_v9, %v8539_v47  ;;  %v5025_v43 = vpop.f32.mrb[75].mxu0 }
 0x489   : > { %v5123_v29 = vadd.f32 %v8544_v36, %v5084_v41  ;;  %v5085_v8 = vmul.f32 %v8539_v47, %v5025_v43 }
 0x48a   : > { %v5189_v54 = vadd.f32 %v5157_v38, %v5125_v34  ;;  %v5126_v51 = vadd.f32 %v8544_v36, %v5087_v25 }
 0x48b   : > { %v5187_v53 = vadd.f32 %v5155_v42, %v5123_v29  ;;  %v5124_v7 = vadd.f32 %v8544_v36, %v5085_v8 }
 0x48c   : > { %v5221_v14 = vmax.f32 %v5189_v54, 0.0  ;;  %v5190_v61 = vadd.f32 %v5158_v4, %v5126_v51 }
 0x48d   : > { %v5219_v56 = vmax.f32 %v5187_v53, 0.0  ;;  %v5188_v10 = vadd.f32 %v5156_v13, %v5124_v7 }
 0x48e   : > { %5253 = vst.msk [vmem:[%s6295_s27 + $0xd0] sm:$0xff] %vm490_vm0, %v5221_v14  ;;  %v5222_v12 = vmax.f32 %v5190_v61, 0.0 }
 0x48f   : > { %5251 = vst.msk [vmem:[%s6295_s27 + $0xc0] sm:$0xff] %vm490_vm0, %v5219_v56  ;;  %v5220_v6 = vmax.f32 %v5188_v10, 0.0 }
 0x490   : > { %5254 = vst.msk [vmem:[%s6295_s27 + $0xd8] sm:$0xff] %vm490_vm0, %v5222_v12 }
 0x491   : > { %5252 = vst.msk [vmem:[%s6295_s27 + $0xc8] sm:$0xff] %vm490_vm0, %v5220_v6  ;;  %v5965_v49 = vpop.f32.mrb[76].mxu0 }
 0x492   : > { %v5090_v37 = vmul.f32 %v5965_v49, %v8539_v47  ;;  %v5038_v52 = vpop.f32.mrb[77].mxu0 }
 0x493   : > { %v5088_v20 = vmul.f32 %v8539_v47, %v5038_v52  ;;  %v5966_v3 = vpop.f32.mrb[78].mxu0 }
 0x494   : > { %v5129_v24 = vadd.f32 %v8544_v36, %v5090_v37  ;;  %v5091_v23 = vmul.f32 %v5966_v3, %v8539_v47  ;;  %v5041_v0 = vpop.f32.mrb[79].mxu0 }
 0x495   : > { %v5127_v28 = vadd.f32 %v8544_v36, %v5088_v20  ;;  %v5089_v17 = vmul.f32 %v8539_v47, %v5041_v0 }
 0x496   : > { %v5193_v31 = vadd.f32 %v5161_v63, %v5129_v24  ;;  %v5130_v59 = vadd.f32 %v8544_v36, %v5091_v23 }
 0x497   : > { %v5191_v55 = vadd.f32 %v5159_v21, %v5127_v28  ;;  %v5128_v30 = vadd.f32 %v8544_v36, %v5089_v17 }
 0x498   : > { %v5225_v22 = vmax.f32 %v5193_v31, 0.0  ;;  %v5194_v48 = vadd.f32 %v5162_v11, %v5130_v59 }
 0x499   : > { %v5223_v57 = vmax.f32 %v5191_v55, 0.0  ;;  %v5192_v35 = vadd.f32 %v5160_v40, %v5128_v30 }
 0x49a   : > { %5257 = vst.msk [vmem:[%s6295_s27 + $0xf0] sm:$0xff] %vm490_vm0, %v5225_v22  ;;  %v5226_v50 = vmax.f32 %v5194_v48, 0.0 }
 0x49b   : > { %5255 = vst.msk [vmem:[%s6295_s27 + $0xe0] sm:$0xff] %vm490_vm0, %v5223_v57  ;;  %v5224_v18 = vmax.f32 %v5192_v35, 0.0 }
 0x49c   : > { %5258 = vst.msk [vmem:[%s6295_s27 + $0xf8] sm:$0xff] %vm490_vm0, %v5226_v50 }
 0x49d   : > { %5256 = vst.msk [vmem:[%s6295_s27 + $0xe8] sm:$0xff] %vm490_vm0, %v5224_v18 }
 0x49e PF: > { %s20_s13 = sadd.s32 1, %s6209_s13  }
 0x49f   : > { %p17_p5 = scmp.ge.s32.totalorder %s20_s13, 4  }
 0x4a1   :  { %19 = sbr.rel (!%p17_p5) target bundleno = 1 (0x1), region = 99 }

</bundles_post_ra>
